<compile_context>
chip_gen: v6e
topology: v6e:2x2x1
jax: 0.10.0
libtpu: 0.0.40
codegen_flags: <defaults>
</compile_context>

<pallas_src>
import functools

import jax
import jax.numpy as jnp
from jax.experimental import pallas as pl
from jax.experimental.pallas import tpu as pltpu


# ----------------------------- Pallas kernels ------------------------------

def _conv_leaky_kernel(w_ref, p_ref, o_ref):
    # w: (Cout, K) bf16, p: (K, tm) bf16 -> o: (Cout, tm) bf16
    y = jnp.dot(w_ref[...], p_ref[...], preferred_element_type=jnp.float32)
    o_ref[...] = jnp.where(y > 0, y, 0.2 * y).astype(o_ref.dtype)


def _conv_bn_leaky_kernel(w_ref, p_ref, g_ref, b_ref, o_ref):
    # Single full-M invocation: BatchNorm2d training-mode semantics
    # (per-channel stats over N*H*W == axis 1 here), biased var, eps=1e-5.
    y = jnp.dot(w_ref[...], p_ref[...], preferred_element_type=jnp.float32)
    mean = jnp.mean(y, axis=1, keepdims=True)
    var = jnp.maximum(jnp.mean(y * y, axis=1, keepdims=True) - mean * mean, 0.0)
    yn = (y - mean) * jax.lax.rsqrt(var + 1e-5)
    z = yn * g_ref[...] + b_ref[...]
    o_ref[...] = jnp.where(z > 0, z, 0.2 * z).astype(o_ref.dtype)


def _conv_sigmoid_kernel(p_ref, w_ref, o_ref):
    # p: (N, K) bf16, w: (K, 1) bf16 -> o: (N, 1) f32
    y = jnp.dot(p_ref[...], w_ref[...], preferred_element_type=jnp.float32)
    o_ref[...] = jax.nn.sigmoid(y)


# ------------------------------ wrappers ------------------------------------

def _full_spec(shape):
    return pl.BlockSpec(shape, lambda: (0,) * len(shape))


def _im2col_cnhw(a, k, stride, pad):
    """a: (C, N, H, W) -> patches (C*k*k, N*Ho*Wo); K ordered (Cin, kh, kw)."""
    c, n, h, w = a.shape
    ho = (h + 2 * pad - k) // stride + 1
    wo = (w + 2 * pad - k) // stride + 1
    ap = jnp.pad(a, ((0, 0), (0, 0), (pad, pad), (pad, pad)))
    taps = [ap[:, :, i:i + ho * stride:stride, j:j + wo * stride:stride]
            for i in range(k) for j in range(k)]
    p = jnp.stack(taps, axis=1)                       # (C, k*k, N, Ho, Wo)
    return p.reshape(c * k * k, n * ho * wo), (n, ho, wo)


def conv_leaky_layer0(x_cnhw, w):
    """First layer: Conv(4,2,1,bias=False) + LeakyReLU, gridded over M."""
    cout, cin, k, _ = w.shape
    patches, (n, ho, wo) = _im2col_cnhw(x_cnhw, k, stride=2, pad=1)
    kk, m = patches.shape
    w_mat = w.reshape(cout, kk).astype(jnp.bfloat16)

    # Largest M-block <= 4096 that divides M (keeps >=2 parallel blocks for
    # v7x's two TensorCores at these sizes; blocks stay small in VMEM).
    tm = m
    for cand in (4096, 2048, 1024, 512, 256, 128):
        if m % cand == 0:
            tm = cand
            break

    out = pl.pallas_call(
        _conv_leaky_kernel,
        out_shape=jax.ShapeDtypeStruct((cout, m), jnp.bfloat16),
        grid=(m // tm,),
        in_specs=[pl.BlockSpec((cout, kk), lambda i: (0, 0)),
                  pl.BlockSpec((kk, tm), lambda i: (0, i))],
        out_specs=pl.BlockSpec((cout, tm), lambda i: (0, i)),
        compiler_params=pltpu.CompilerParams(
            dimension_semantics=("parallel",)),
    )(w_mat, patches)
    return out.reshape(cout, n, ho, wo)


def conv_bn_leaky(x_cnhw, w, gamma, beta):
    """Conv(4,2,1,bias=False) + BatchNorm2d (batch stats) + LeakyReLU, fused.

    Runs as a single invocation (full M in one tile) so BN statistics are
    exact; the largest such activation here is 16 x 2048 f32 = 128 KiB.
    """
    cout, cin, k, _ = w.shape
    patches, (n, ho, wo) = _im2col_cnhw(x_cnhw, k, stride=2, pad=1)
    kk, m = patches.shape
    w_mat = w.reshape(cout, kk).astype(jnp.bfloat16)
    g = gamma.reshape(cout, 1).astype(jnp.float32)
    b = beta.reshape(cout, 1).astype(jnp.float32)

    out = pl.pallas_call(
        _conv_bn_leaky_kernel,
        out_shape=jax.ShapeDtypeStruct((cout, m), jnp.bfloat16),
        in_specs=[_full_spec((cout, kk)), _full_spec((kk, m)),
                  _full_spec((cout, 1)), _full_spec((cout, 1))],
        out_specs=_full_spec((cout, m)),
    )(w_mat, patches, g, b)
    return out.reshape(cout, n, ho, wo)


def conv_sigmoid_final(x_cnhw, w):
    """Final Conv(4,1,0,bias=False) + Sigmoid, fused into one tiny call."""
    cout, cin, k, _ = w.shape
    c, n, h, wd = x_cnhw.shape
    assert h == k and wd == k, "final valid conv expects k x k spatial input"
    # patches: (N, Cin*k*k) with K ordered (Cin, kh, kw) to match w flattening.
    patches = jnp.transpose(x_cnhw, (1, 0, 2, 3)).reshape(n, c * h * wd)
    w_mat = w.reshape(cout, cin * k * k).T.astype(jnp.bfloat16)   # (K, 1)

    out = pl.pallas_call(
        _conv_sigmoid_kernel,
        out_shape=jax.ShapeDtypeStruct((n, cout), jnp.float32),
        in_specs=[_full_spec((n, c * h * wd)), _full_spec((c * h * wd, cout))],
        out_specs=_full_spec((n, cout)),
    )(patches.astype(jnp.bfloat16), w_mat)
    return out                                        # (N, 1)


# --------------------------- model definition -------------------------------

def init_params(nc, ndf, key):
    """Deterministic synthetic weights (PyTorch Conv2d weight layout)."""
    chans = [nc, ndf, ndf * 2, ndf * 4, ndf * 8, ndf * 16, 1]
    params = {}
    keys = jax.random.split(key, 6)
    for li in range(6):
        cin, cout = chans[li], chans[li + 1]
        params[f"w{li}"] = 0.02 * jax.random.normal(
            keys[li], (cout, cin, 4, 4), dtype=jnp.float32)
        if 1 <= li <= 4:                      # BatchNorm2d after convs 2..5
            params[f"g{li}"] = jnp.ones((cout,), jnp.float32)    # BN weight
            params[f"b{li}"] = jnp.zeros((cout,), jnp.float32)   # BN bias
    return params


@functools.partial(jax.jit)
def discriminator_forward(x_nchw, params):
    # NCHW -> CNHW, bf16 activations (f32 accumulation inside the kernels).
    x = jnp.transpose(x_nchw, (1, 0, 2, 3)).astype(jnp.bfloat16)

    # Conv(nc -> ndf, 4, 2, 1) + LeakyReLU(0.2)
    x = conv_leaky_layer0(x, params["w0"])

    # 4x [Conv(4,2,1) + BatchNorm2d + LeakyReLU(0.2)], each one fused call.
    for li in range(1, 5):
        x = conv_bn_leaky(x, params[f"w{li}"], params[f"g{li}"],
                          params[f"b{li}"])

    # Conv(ndf*16 -> 1, 4, 1, 0) + Sigmoid
    out = conv_sigmoid_final(x, params["w5"])         # (N, 1) f32
    return out.reshape(out.shape[0], 1, 1, 1)         # NCHW: (N, 1, 1, 1)


# --------------------------------- main --------------------------------------

if __name__ == "__main__":
    # The final 4x4 valid conv needs a 128x128 input to yield a 1x1 output.
    batch, nc, ndf, spatial = 2, 3, 8, 128

    key = jax.random.PRNGKey(0)
    k_x, k_p = jax.random.split(key)
    x = jax.random.normal(k_x, (batch, nc, spatial, spatial), dtype=jnp.float32)
    params = init_params(nc, ndf, k_p)

    out = discriminator_forward(x, params)
    jax.block_until_ready(out)

    assert out.shape == (batch, 1, 1, 1), out.shape
    assert bool(jnp.all((out >= 0.0) & (out <= 1.0)))
    print("KERNEL_OK")
</pallas_src>

<mosaic_0001>
module attributes {stable_mosaic.version = 11 : i64} {
  func.func @_conv_leaky_kernel(%arg0: i32, %arg1: memref<8x48xbf16, #tpu.memory_space<vmem>>, %arg2: memref<48x4096xbf16, #tpu.memory_space<vmem>>, %arg3: memref<8x4096xbf16, #tpu.memory_space<vmem>>) attributes {dimension_semantics = [#tpu.dimension_semantics<parallel>], iteration_bounds = array<i64: 2>, scalar_prefetch = 0 : i64, scratch_operands = 0 : i64, tpu.core_type = #tpu.core_type<tc>, window_params = [{pipeline_mode = #tpu.pipeline_mode<synchronous>, transform_indices = @transform_0, window_bounds = array<i64: 8, 48>}, {transform_indices = @transform_1, window_bounds = array<i64: 48, 4096>}, {transform_indices = @transform_2, window_bounds = array<i64: 8, 4096>}]} {
    %c0 = arith.constant 0 : index
    %c0_0 = arith.constant 0 : index
    %0 = vector.load %arg1[%c0, %c0_0] : memref<8x48xbf16, #tpu.memory_space<vmem>>, vector<8x48xbf16>
    %c0_1 = arith.constant 0 : index
    %c0_2 = arith.constant 0 : index
    %1 = vector.load %arg2[%c0_1, %c0_2] : memref<48x4096xbf16, #tpu.memory_space<vmem>>, vector<48x4096xbf16>
    %cst = arith.constant dense<0.000000e+00> : vector<8x4096xf32>
    %2 = tpu.matmul %0, %1, %cst {dimension_numbers = #tpu.dot_dimension_numbers<[1], [0], [0], [1], [0, 0, 1, 1], [], []>} : vector<8x48xbf16>, vector<48x4096xbf16>, vector<8x4096xf32> -> vector<8x4096xf32>
    %cst_3 = arith.constant 0.000000e+00 : f32
    %3 = vector.broadcast %cst_3 : f32 to vector<8x4096xf32>
    %4 = arith.cmpf ogt, %2, %3 : vector<8x4096xf32>
    %cst_4 = arith.constant 2.000000e-01 : f32
    %5 = vector.broadcast %cst_4 : f32 to vector<8x4096xf32>
    %6 = arith.mulf %5, %2 : vector<8x4096xf32>
    %7 = arith.select %4, %2, %6 : vector<8x4096xi1>, vector<8x4096xf32>
    %8 = arith.truncf %7 : vector<8x4096xf32> to vector<8x4096xbf16>
    %c0_5 = arith.constant 0 : index
    %c0_6 = arith.constant 0 : index
    %9 = vector.load %arg3[%c0_5, %c0_6] : memref<8x4096xbf16, #tpu.memory_space<vmem>>, vector<8x4096xbf16>
    tpu.vector_store %arg3[%c0_5, %c0_6], %8 {strides = array<i32>} : memref<8x4096xbf16, #tpu.memory_space<vmem>>, vector<8x4096xbf16>,
    return
  }
  func.func @transform_0(%arg0: i32) -> (i32, i32) {
    %c0_i32 = arith.constant 0 : i32
    %c0_i32_0 = arith.constant 0 : i32
    %c0_i32_1 = arith.constant 0 : i32
    return %c0_i32, %c0_i32_0 : i32, i32
  }
  func.func @transform_1(%arg0: i32) -> (i32, i32) {
    %c0_i32 = arith.constant 0 : i32
    %c0_i32_0 = arith.constant 0 : i32
    return %c0_i32, %arg0 : i32, i32
  }
  func.func @transform_2(%arg0: i32) -> (i32, i32) {
    %c0_i32 = arith.constant 0 : i32
    %c0_i32_0 = arith.constant 0 : i32
    return %c0_i32, %arg0 : i32, i32
  }
}

module attributes {stable_mosaic.version = 11 : i64} {
  func.func @_conv_bn_leaky_kernel(%arg0: memref<16x128xbf16, #tpu.memory_space<vmem>>, %arg1: memref<128x2048xbf16, #tpu.memory_space<vmem>>, %arg2: memref<16x1xf32, #tpu.memory_space<vmem>>, %arg3: memref<16x1xf32, #tpu.memory_space<vmem>>, %arg4: memref<16x2048xbf16, #tpu.memory_space<vmem>>) attributes {dimension_semantics = [], scalar_prefetch = 0 : i64, scratch_operands = 0 : i64, tpu.core_type = #tpu.core_type<tc>} {
    %c0 = arith.constant 0 : index
    %c0_0 = arith.constant 0 : index
    %0 = vector.load %arg0[%c0, %c0_0] : memref<16x128xbf16, #tpu.memory_space<vmem>>, vector<16x128xbf16>
    %c0_1 = arith.constant 0 : index
    %c0_2 = arith.constant 0 : index
    %1 = vector.load %arg1[%c0_1, %c0_2] : memref<128x2048xbf16, #tpu.memory_space<vmem>>, vector<128x2048xbf16>
    %cst = arith.constant dense<0.000000e+00> : vector<16x2048xf32>
    %2 = tpu.matmul %0, %1, %cst {dimension_numbers = #tpu.dot_dimension_numbers<[1], [0], [0], [1], [0, 0, 1, 1], [], []>} : vector<16x128xbf16>, vector<128x2048xbf16>, vector<16x2048xf32> -> vector<16x2048xf32>
    %cst_3 = arith.constant dense<0.000000e+00> : vector<16xf32>
    %3 = vector.multi_reduction <add>, %2, %cst_3 [1] : vector<16x2048xf32> to vector<16xf32>
    %4 = vector.shape_cast %3 : vector<16xf32> to vector<16x1xf32>
    %cst_4 = arith.constant 2.048000e+03 : f32
    %5 = vector.broadcast %cst_4 : f32 to vector<16x1xf32>
    %6 = arith.divf %4, %5 : vector<16x1xf32>
    %7 = arith.mulf %2, %2 : vector<16x2048xf32>
    %cst_5 = arith.constant dense<0.000000e+00> : vector<16xf32>
    %8 = vector.multi_reduction <add>, %7, %cst_5 [1] : vector<16x2048xf32> to vector<16xf32>
    %9 = vector.shape_cast %8 : vector<16xf32> to vector<16x1xf32>
    %cst_6 = arith.constant 2.048000e+03 : f32
    %10 = vector.broadcast %cst_6 : f32 to vector<16x1xf32>
    %11 = arith.divf %9, %10 : vector<16x1xf32>
    %12 = arith.mulf %6, %6 : vector<16x1xf32>
    %13 = arith.subf %11, %12 : vector<16x1xf32>
    %cst_7 = arith.constant 0.000000e+00 : f32
    %14 = vector.broadcast %cst_7 : f32 to vector<16x1xf32>
    %15 = arith.maximumf %13, %14 : vector<16x1xf32>
    %16 = vector.broadcast %6 : vector<16x1xf32> to vector<16x2048xf32>
    %17 = arith.subf %2, %16 : vector<16x2048xf32>
    %cst_8 = arith.constant 9.99999974E-6 : f32
    %18 = vector.broadcast %cst_8 : f32 to vector<16x1xf32>
    %19 = arith.addf %15, %18 : vector<16x1xf32>
    %20 = math.rsqrt %19 : vector<16x1xf32>
    %21 = vector.broadcast %20 : vector<16x1xf32> to vector<16x2048xf32>
    %22 = arith.mulf %17, %21 : vector<16x2048xf32>
    %c0_9 = arith.constant 0 : index
    %c0_10 = arith.constant 0 : index
    %23 = vector.load %arg2[%c0_9, %c0_10] : memref<16x1xf32, #tpu.memory_space<vmem>>, vector<16x1xf32>
    %24 = vector.broadcast %23 : vector<16x1xf32> to vector<16x2048xf32>
    %25 = arith.mulf %22, %24 : vector<16x2048xf32>
    %c0_11 = arith.constant 0 : index
    %c0_12 = arith.constant 0 : index
    %26 = vector.load %arg3[%c0_11, %c0_12] : memref<16x1xf32, #tpu.memory_space<vmem>>, vector<16x1xf32>
    %27 = vector.broadcast %26 : vector<16x1xf32> to vector<16x2048xf32>
    %28 = arith.addf %25, %27 : vector<16x2048xf32>
    %cst_13 = arith.constant 0.000000e+00 : f32
    %29 = vector.broadcast %cst_13 : f32 to vector<16x2048xf32>
    %30 = arith.cmpf ogt, %28, %29 : vector<16x2048xf32>
    %cst_14 = arith.constant 2.000000e-01 : f32
    %31 = vector.broadcast %cst_14 : f32 to vector<16x2048xf32>
    %32 = arith.mulf %31, %28 : vector<16x2048xf32>
    %33 = arith.select %30, %28, %32 : vector<16x2048xi1>, vector<16x2048xf32>
    %34 = arith.truncf %33 : vector<16x2048xf32> to vector<16x2048xbf16>
    %c0_15 = arith.constant 0 : index
    %c0_16 = arith.constant 0 : index
    %35 = vector.load %arg4[%c0_15, %c0_16] : memref<16x2048xbf16, #tpu.memory_space<vmem>>, vector<16x2048xbf16>
    tpu.vector_store %arg4[%c0_15, %c0_16], %34 {strides = array<i32>} : memref<16x2048xbf16, #tpu.memory_space<vmem>>, vector<16x2048xbf16>,
    return
  }
}

module attributes {stable_mosaic.version = 11 : i64} {
  func.func @_conv_bn_leaky_kernel(%arg0: memref<32x256xbf16, #tpu.memory_space<vmem>>, %arg1: memref<256x512xbf16, #tpu.memory_space<vmem>>, %arg2: memref<32x1xf32, #tpu.memory_space<vmem>>, %arg3: memref<32x1xf32, #tpu.memory_space<vmem>>, %arg4: memref<32x512xbf16, #tpu.memory_space<vmem>>) attributes {dimension_semantics = [], scalar_prefetch = 0 : i64, scratch_operands = 0 : i64, tpu.core_type = #tpu.core_type<tc>} {
    %c0 = arith.constant 0 : index
    %c0_0 = arith.constant 0 : index
    %0 = vector.load %arg0[%c0, %c0_0] : memref<32x256xbf16, #tpu.memory_space<vmem>>, vector<32x256xbf16>
    %c0_1 = arith.constant 0 : index
    %c0_2 = arith.constant 0 : index
    %1 = vector.load %arg1[%c0_1, %c0_2] : memref<256x512xbf16, #tpu.memory_space<vmem>>, vector<256x512xbf16>
    %cst = arith.constant dense<0.000000e+00> : vector<32x512xf32>
    %2 = tpu.matmul %0, %1, %cst {dimension_numbers = #tpu.dot_dimension_numbers<[1], [0], [0], [1], [0, 0, 1, 1], [], []>} : vector<32x256xbf16>, vector<256x512xbf16>, vector<32x512xf32> -> vector<32x512xf32>
    %cst_3 = arith.constant dense<0.000000e+00> : vector<32xf32>
    %3 = vector.multi_reduction <add>, %2, %cst_3 [1] : vector<32x512xf32> to vector<32xf32>
    %4 = vector.shape_cast %3 : vector<32xf32> to vector<32x1xf32>
    %cst_4 = arith.constant 5.120000e+02 : f32
    %5 = vector.broadcast %cst_4 : f32 to vector<32x1xf32>
    %6 = arith.divf %4, %5 : vector<32x1xf32>
    %7 = arith.mulf %2, %2 : vector<32x512xf32>
    %cst_5 = arith.constant dense<0.000000e+00> : vector<32xf32>
    %8 = vector.multi_reduction <add>, %7, %cst_5 [1] : vector<32x512xf32> to vector<32xf32>
    %9 = vector.shape_cast %8 : vector<32xf32> to vector<32x1xf32>
    %cst_6 = arith.constant 5.120000e+02 : f32
    %10 = vector.broadcast %cst_6 : f32 to vector<32x1xf32>
    %11 = arith.divf %9, %10 : vector<32x1xf32>
    %12 = arith.mulf %6, %6 : vector<32x1xf32>
    %13 = arith.subf %11, %12 : vector<32x1xf32>
    %cst_7 = arith.constant 0.000000e+00 : f32
    %14 = vector.broadcast %cst_7 : f32 to vector<32x1xf32>
    %15 = arith.maximumf %13, %14 : vector<32x1xf32>
    %16 = vector.broadcast %6 : vector<32x1xf32> to vector<32x512xf32>
    %17 = arith.subf %2, %16 : vector<32x512xf32>
    %cst_8 = arith.constant 9.99999974E-6 : f32
    %18 = vector.broadcast %cst_8 : f32 to vector<32x1xf32>
    %19 = arith.addf %15, %18 : vector<32x1xf32>
    %20 = math.rsqrt %19 : vector<32x1xf32>
    %21 = vector.broadcast %20 : vector<32x1xf32> to vector<32x512xf32>
    %22 = arith.mulf %17, %21 : vector<32x512xf32>
    %c0_9 = arith.constant 0 : index
    %c0_10 = arith.constant 0 : index
    %23 = vector.load %arg2[%c0_9, %c0_10] : memref<32x1xf32, #tpu.memory_space<vmem>>, vector<32x1xf32>
    %24 = vector.broadcast %23 : vector<32x1xf32> to vector<32x512xf32>
    %25 = arith.mulf %22, %24 : vector<32x512xf32>
    %c0_11 = arith.constant 0 : index
    %c0_12 = arith.constant 0 : index
    %26 = vector.load %arg3[%c0_11, %c0_12] : memref<32x1xf32, #tpu.memory_space<vmem>>, vector<32x1xf32>
    %27 = vector.broadcast %26 : vector<32x1xf32> to vector<32x512xf32>
    %28 = arith.addf %25, %27 : vector<32x512xf32>
    %cst_13 = arith.constant 0.000000e+00 : f32
    %29 = vector.broadcast %cst_13 : f32 to vector<32x512xf32>
    %30 = arith.cmpf ogt, %28, %29 : vector<32x512xf32>
    %cst_14 = arith.constant 2.000000e-01 : f32
    %31 = vector.broadcast %cst_14 : f32 to vector<32x512xf32>
    %32 = arith.mulf %31, %28 : vector<32x512xf32>
    %33 = arith.select %30, %28, %32 : vector<32x512xi1>, vector<32x512xf32>
    %34 = arith.truncf %33 : vector<32x512xf32> to vector<32x512xbf16>
    %c0_15 = arith.constant 0 : index
    %c0_16 = arith.constant 0 : index
    %35 = vector.load %arg4[%c0_15, %c0_16] : memref<32x512xbf16, #tpu.memory_space<vmem>>, vector<32x512xbf16>
    tpu.vector_store %arg4[%c0_15, %c0_16], %34 {strides = array<i32>} : memref<32x512xbf16, #tpu.memory_space<vmem>>, vector<32x512xbf16>,
    return
  }
}

module attributes {stable_mosaic.version = 11 : i64} {
  func.func @_conv_bn_leaky_kernel(%arg0: memref<64x512xbf16, #tpu.memory_space<vmem>>, %arg1: memref<512x128xbf16, #tpu.memory_space<vmem>>, %arg2: memref<64x1xf32, #tpu.memory_space<vmem>>, %arg3: memref<64x1xf32, #tpu.memory_space<vmem>>, %arg4: memref<64x128xbf16, #tpu.memory_space<vmem>>) attributes {dimension_semantics = [], scalar_prefetch = 0 : i64, scratch_operands = 0 : i64, tpu.core_type = #tpu.core_type<tc>} {
    %c0 = arith.constant 0 : index
    %c0_0 = arith.constant 0 : index
    %0 = vector.load %arg0[%c0, %c0_0] : memref<64x512xbf16, #tpu.memory_space<vmem>>, vector<64x512xbf16>
    %c0_1 = arith.constant 0 : index
    %c0_2 = arith.constant 0 : index
    %1 = vector.load %arg1[%c0_1, %c0_2] : memref<512x128xbf16, #tpu.memory_space<vmem>>, vector<512x128xbf16>
    %cst = arith.constant dense<0.000000e+00> : vector<64x128xf32>
    %2 = tpu.matmul %0, %1, %cst {dimension_numbers = #tpu.dot_dimension_numbers<[1], [0], [0], [1], [0, 0, 1, 1], [], []>} : vector<64x512xbf16>, vector<512x128xbf16>, vector<64x128xf32> -> vector<64x128xf32>
    %cst_3 = arith.constant dense<0.000000e+00> : vector<64xf32>
    %3 = vector.multi_reduction <add>, %2, %cst_3 [1] : vector<64x128xf32> to vector<64xf32>
    %4 = vector.shape_cast %3 : vector<64xf32> to vector<64x1xf32>
    %cst_4 = arith.constant 1.280000e+02 : f32
    %5 = vector.broadcast %cst_4 : f32 to vector<64x1xf32>
    %6 = arith.divf %4, %5 : vector<64x1xf32>
    %7 = arith.mulf %2, %2 : vector<64x128xf32>
    %cst_5 = arith.constant dense<0.000000e+00> : vector<64xf32>
    %8 = vector.multi_reduction <add>, %7, %cst_5 [1] : vector<64x128xf32> to vector<64xf32>
    %9 = vector.shape_cast %8 : vector<64xf32> to vector<64x1xf32>
    %cst_6 = arith.constant 1.280000e+02 : f32
    %10 = vector.broadcast %cst_6 : f32 to vector<64x1xf32>
    %11 = arith.divf %9, %10 : vector<64x1xf32>
    %12 = arith.mulf %6, %6 : vector<64x1xf32>
    %13 = arith.subf %11, %12 : vector<64x1xf32>
    %cst_7 = arith.constant 0.000000e+00 : f32
    %14 = vector.broadcast %cst_7 : f32 to vector<64x1xf32>
    %15 = arith.maximumf %13, %14 : vector<64x1xf32>
    %16 = vector.broadcast %6 : vector<64x1xf32> to vector<64x128xf32>
    %17 = arith.subf %2, %16 : vector<64x128xf32>
    %cst_8 = arith.constant 9.99999974E-6 : f32
    %18 = vector.broadcast %cst_8 : f32 to vector<64x1xf32>
    %19 = arith.addf %15, %18 : vector<64x1xf32>
    %20 = math.rsqrt %19 : vector<64x1xf32>
    %21 = vector.broadcast %20 : vector<64x1xf32> to vector<64x128xf32>
    %22 = arith.mulf %17, %21 : vector<64x128xf32>
    %c0_9 = arith.constant 0 : index
    %c0_10 = arith.constant 0 : index
    %23 = vector.load %arg2[%c0_9, %c0_10] : memref<64x1xf32, #tpu.memory_space<vmem>>, vector<64x1xf32>
    %24 = vector.broadcast %23 : vector<64x1xf32> to vector<64x128xf32>
    %25 = arith.mulf %22, %24 : vector<64x128xf32>
    %c0_11 = arith.constant 0 : index
    %c0_12 = arith.constant 0 : index
    %26 = vector.load %arg3[%c0_11, %c0_12] : memref<64x1xf32, #tpu.memory_space<vmem>>, vector<64x1xf32>
    %27 = vector.broadcast %26 : vector<64x1xf32> to vector<64x128xf32>
    %28 = arith.addf %25, %27 : vector<64x128xf32>
    %cst_13 = arith.constant 0.000000e+00 : f32
    %29 = vector.broadcast %cst_13 : f32 to vector<64x128xf32>
    %30 = arith.cmpf ogt, %28, %29 : vector<64x128xf32>
    %cst_14 = arith.constant 2.000000e-01 : f32
    %31 = vector.broadcast %cst_14 : f32 to vector<64x128xf32>
    %32 = arith.mulf %31, %28 : vector<64x128xf32>
    %33 = arith.select %30, %28, %32 : vector<64x128xi1>, vector<64x128xf32>
    %34 = arith.truncf %33 : vector<64x128xf32> to vector<64x128xbf16>
    %c0_15 = arith.constant 0 : index
    %c0_16 = arith.constant 0 : index
    %35 = vector.load %arg4[%c0_15, %c0_16] : memref<64x128xbf16, #tpu.memory_space<vmem>>, vector<64x128xbf16>
    tpu.vector_store %arg4[%c0_15, %c0_16], %34 {strides = array<i32>} : memref<64x128xbf16, #tpu.memory_space<vmem>>, vector<64x128xbf16>,
    return
  }
}

module attributes {stable_mosaic.version = 11 : i64} {
  func.func @_conv_bn_leaky_kernel(%arg0: memref<128x1024xbf16, #tpu.memory_space<vmem>>, %arg1: memref<1024x32xbf16, #tpu.memory_space<vmem>>, %arg2: memref<128x1xf32, #tpu.memory_space<vmem>>, %arg3: memref<128x1xf32, #tpu.memory_space<vmem>>, %arg4: memref<128x32xbf16, #tpu.memory_space<vmem>>) attributes {dimension_semantics = [], scalar_prefetch = 0 : i64, scratch_operands = 0 : i64, tpu.core_type = #tpu.core_type<tc>} {
    %c0 = arith.constant 0 : index
    %c0_0 = arith.constant 0 : index
    %0 = vector.load %arg0[%c0, %c0_0] : memref<128x1024xbf16, #tpu.memory_space<vmem>>, vector<128x1024xbf16>
    %c0_1 = arith.constant 0 : index
    %c0_2 = arith.constant 0 : index
    %1 = vector.load %arg1[%c0_1, %c0_2] : memref<1024x32xbf16, #tpu.memory_space<vmem>>, vector<1024x32xbf16>
    %cst = arith.constant dense<0.000000e+00> : vector<128x32xf32>
    %2 = tpu.matmul %0, %1, %cst {dimension_numbers = #tpu.dot_dimension_numbers<[1], [0], [0], [1], [0, 0, 1, 1], [], []>} : vector<128x1024xbf16>, vector<1024x32xbf16>, vector<128x32xf32> -> vector<128x32xf32>
    %cst_3 = arith.constant dense<0.000000e+00> : vector<128xf32>
    %3 = vector.multi_reduction <add>, %2, %cst_3 [1] : vector<128x32xf32> to vector<128xf32>
    %4 = vector.shape_cast %3 : vector<128xf32> to vector<128x1xf32>
    %cst_4 = arith.constant 3.200000e+01 : f32
    %5 = vector.broadcast %cst_4 : f32 to vector<128x1xf32>
    %6 = arith.divf %4, %5 : vector<128x1xf32>
    %7 = arith.mulf %2, %2 : vector<128x32xf32>
    %cst_5 = arith.constant dense<0.000000e+00> : vector<128xf32>
    %8 = vector.multi_reduction <add>, %7, %cst_5 [1] : vector<128x32xf32> to vector<128xf32>
    %9 = vector.shape_cast %8 : vector<128xf32> to vector<128x1xf32>
    %cst_6 = arith.constant 3.200000e+01 : f32
    %10 = vector.broadcast %cst_6 : f32 to vector<128x1xf32>
    %11 = arith.divf %9, %10 : vector<128x1xf32>
    %12 = arith.mulf %6, %6 : vector<128x1xf32>
    %13 = arith.subf %11, %12 : vector<128x1xf32>
    %cst_7 = arith.constant 0.000000e+00 : f32
    %14 = vector.broadcast %cst_7 : f32 to vector<128x1xf32>
    %15 = arith.maximumf %13, %14 : vector<128x1xf32>
    %16 = vector.broadcast %6 : vector<128x1xf32> to vector<128x32xf32>
    %17 = arith.subf %2, %16 : vector<128x32xf32>
    %cst_8 = arith.constant 9.99999974E-6 : f32
    %18 = vector.broadcast %cst_8 : f32 to vector<128x1xf32>
    %19 = arith.addf %15, %18 : vector<128x1xf32>
    %20 = math.rsqrt %19 : vector<128x1xf32>
    %21 = vector.broadcast %20 : vector<128x1xf32> to vector<128x32xf32>
    %22 = arith.mulf %17, %21 : vector<128x32xf32>
    %c0_9 = arith.constant 0 : index
    %c0_10 = arith.constant 0 : index
    %23 = vector.load %arg2[%c0_9, %c0_10] : memref<128x1xf32, #tpu.memory_space<vmem>>, vector<128x1xf32>
    %24 = vector.broadcast %23 : vector<128x1xf32> to vector<128x32xf32>
    %25 = arith.mulf %22, %24 : vector<128x32xf32>
    %c0_11 = arith.constant 0 : index
    %c0_12 = arith.constant 0 : index
    %26 = vector.load %arg3[%c0_11, %c0_12] : memref<128x1xf32, #tpu.memory_space<vmem>>, vector<128x1xf32>
    %27 = vector.broadcast %26 : vector<128x1xf32> to vector<128x32xf32>
    %28 = arith.addf %25, %27 : vector<128x32xf32>
    %cst_13 = arith.constant 0.000000e+00 : f32
    %29 = vector.broadcast %cst_13 : f32 to vector<128x32xf32>
    %30 = arith.cmpf ogt, %28, %29 : vector<128x32xf32>
    %cst_14 = arith.constant 2.000000e-01 : f32
    %31 = vector.broadcast %cst_14 : f32 to vector<128x32xf32>
    %32 = arith.mulf %31, %28 : vector<128x32xf32>
    %33 = arith.select %30, %28, %32 : vector<128x32xi1>, vector<128x32xf32>
    %34 = arith.truncf %33 : vector<128x32xf32> to vector<128x32xbf16>
    %c0_15 = arith.constant 0 : index
    %c0_16 = arith.constant 0 : index
    %35 = vector.load %arg4[%c0_15, %c0_16] : memref<128x32xbf16, #tpu.memory_space<vmem>>, vector<128x32xbf16>
    tpu.vector_store %arg4[%c0_15, %c0_16], %34 {strides = array<i32>} : memref<128x32xbf16, #tpu.memory_space<vmem>>, vector<128x32xbf16>,
    return
  }
}

module attributes {stable_mosaic.version = 11 : i64} {
  func.func @_conv_sigmoid_kernel(%arg0: memref<2x2048xbf16, #tpu.memory_space<vmem>>, %arg1: memref<2048x1xbf16, #tpu.memory_space<vmem>>, %arg2: memref<2x1xf32, #tpu.memory_space<vmem>>) attributes {dimension_semantics = [], scalar_prefetch = 0 : i64, scratch_operands = 0 : i64, tpu.core_type = #tpu.core_type<tc>} {
    %c0 = arith.constant 0 : index
    %c0_0 = arith.constant 0 : index
    %0 = vector.load %arg0[%c0, %c0_0] : memref<2x2048xbf16, #tpu.memory_space<vmem>>, vector<2x2048xbf16>
    %c0_1 = arith.constant 0 : index
    %c0_2 = arith.constant 0 : index
    %1 = vector.load %arg1[%c0_1, %c0_2] : memref<2048x1xbf16, #tpu.memory_space<vmem>>, vector<2048x1xbf16>
    %cst = arith.constant dense<0.000000e+00> : vector<2x1xf32>
    %2 = tpu.matmul %0, %1, %cst {dimension_numbers = #tpu.dot_dimension_numbers<[1], [0], [0], [1], [0, 0, 1, 1], [], []>} : vector<2x2048xbf16>, vector<2048x1xbf16>, vector<2x1xf32> -> vector<2x1xf32>
    %3 = arith.negf %2 : vector<2x1xf32>
    %4 = math.exp %3 : vector<2x1xf32>
    %cst_3 = arith.constant 1.000000e+00 : f32
    %5 = vector.broadcast %cst_3 : f32 to vector<2x1xf32>
    %6 = arith.addf %5, %4 : vector<2x1xf32>
    %7 = arith.divf %5, %6 : vector<2x1xf32>
    %c0_4 = arith.constant 0 : index
    %c0_5 = arith.constant 0 : index
    %8 = vector.load %arg2[%c0_4, %c0_5] : memref<2x1xf32, #tpu.memory_space<vmem>>, vector<2x1xf32>
    tpu.vector_store %arg2[%c0_4, %c0_5], %7 {strides = array<i32>} : memref<2x1xf32, #tpu.memory_space<vmem>>, vector<2x1xf32>,
    return
  }
}

</mosaic_0001>

<bundles_post_ra>
// kernel: discriminator_forward.6
= control target key start
LH: loop header
LB: loop body
LE: loop exit
PB: predicated region body
PF: predicated region fallthrough
CT: control target
= control target key end

     0   :  { %s2119_s9 = smov 0   ;;  %s2121_s10 = smov 0   ;;  %s2536_s0 = inlined_call_operand.vmem [shape: bf16[8,48], index: 0, kind: input, shape index: {}]   ;;  %s2537_s1 = inlined_call_operand.vmem [shape: bf16[48,8192], index: 1, kind: input, shape index: {}]   ;;  %s2538_s2 = inlined_call_operand.vmem [shape: bf16[8,8192], index: 2, kind: output, shape index: {}]  }
   0x1   :  { %s2123_s11 = smov 0  }
   0x2 LB: > { %s1896_s12 = sadd.s32 4294967295, %s2101_s11   ;;  %s2136_s13 = sadd.s32 1, %s2101_s11   ;;  %s2101_s11 = sphi %s2123_s11, %s2541_s11   ;;  %s2097_s10 = sphi %s2121_s10, %s2540_s10   ;;  %s2093_s9 = sphi %s2119_s9, %s2539_s9  }
   0x3   : > { %s37_s14 = ssub.s32 %s2101_s11, %s2136_s13  ;;  %s40_s15 = sadd.s32 1, %s2097_s10 }
   0x4   : > { %p38_p0 = scmp.eq.s32.totalorder %s37_s14, 0  ;;  %p47_p1 = scmp.ne.s32.totalorder %s2097_s10, %s2093_s9 }
   0x5   : > { %p48_p2 = scmp.eq.s32.totalorder %s2101_s11, 0  ;;  %p1899_p4 = scmp.ge.s32.totalorder %s2101_s11, 2 }
   0x6   : > { %s2145_s16 = scalar_select %p38_p0, %s2097_s10, %s40_s15  }
   0x7   : > { %p49_p3 = por %p48_p2, %p47_p1  ;;  %102 = sbr.rel (%p1899_p4) target bundleno = 65 (0x41), region = 20 }
   0xc   : > { %105 = sbr.rel (!%p49_p3) target bundleno = 65 (0x41), region = 24  ;;  %s107_s17 = sand.u32 (%p49_p3), 1, %s2097_s10  }
   0xd   : > { %s2035_s18 = sshll.u32 (%p49_p3), %s2101_s11, 7  ;;  %s2052_s19 = smul.u32 (%p49_p3), 768, %s107_s17 }
   0xe   : > { %s2153_s22 = scalar_lea.vmem (%p49_p3), %s2537_s1, %s2035_s18 }
   0xf   : > { %v125_v0 = vld [vmem:[%s2153_s22] sm:$0xff] (%p49_p3)  ;;  %v127_v1 = vld [vmem:[%s2153_s22 + $0x8] sm:$0xff] (%p49_p3)  ;;  %v129_v2 = vld [vmem:[%s2153_s22 + $0x10] sm:$0xff] (%p49_p3)  ;;  %s2161_s23 = scalar_lea.vmem (%p49_p3), [#allocation2], %s2052_s19 }
  0x10   : > { %v131_v3 = vld [vmem:[%s2153_s22 + $0x18] sm:$0xff] (%p49_p3)  ;;  %v133_v4 = vld [vmem:[%s2153_s22 + $0x20] sm:$0xff] (%p49_p3)  ;;  %v135_v5 = vld [vmem:[%s2153_s22 + $0x28] sm:$0xff] (%p49_p3)  ;;  %126 = vst [vmem:[%s2161_s23] sm:$0xff] (%p49_p3), %v125_v0 }
  0x11   : > { %128 = vst [vmem:[%s2161_s23 + $0x8] sm:$0xff] %v127_v1  ;;  %130 = vst [vmem:[%s2161_s23 + $0x10] sm:$0xff] %v129_v2  ;;  %v137_v6 = vld [vmem:[%s2153_s22 + $0x30] sm:$0xff]  ;;  %v139_v7 = vld [vmem:[%s2153_s22 + $0x38] sm:$0xff] }
  0x12   : > { %132 = vst [vmem:[%s2161_s23 + $0x18] sm:$0xff] %v131_v3  ;;  %134 = vst [vmem:[%s2161_s23 + $0x20] sm:$0xff] %v133_v4  ;;  %v141_v8 = vld [vmem:[%s2153_s22 + $0x40] sm:$0xff]  ;;  %v143_v9 = vld [vmem:[%s2153_s22 + $0x48] sm:$0xff] }
  0x13   : > { %136 = vst [vmem:[%s2161_s23 + $0x28] sm:$0xff] %v135_v5  ;;  %138 = vst [vmem:[%s2161_s23 + $0x30] sm:$0xff] %v137_v6  ;;  %v145_v10 = vld [vmem:[%s2153_s22 + $0x50] sm:$0xff]  ;;  %v147_v11 = vld [vmem:[%s2153_s22 + $0x58] sm:$0xff] }
  0x14   : > { %140 = vst [vmem:[%s2161_s23 + $0x38] sm:$0xff] %v139_v7  ;;  %142 = vst [vmem:[%s2161_s23 + $0x40] sm:$0xff] %v141_v8  ;;  %v149_v12 = vld [vmem:[%s2153_s22 + $0x60] sm:$0xff]  ;;  %v151_v13 = vld [vmem:[%s2153_s22 + $0x68] sm:$0xff] }
  0x15   : > { %144 = vst [vmem:[%s2161_s23 + $0x48] sm:$0xff] %v143_v9  ;;  %146 = vst [vmem:[%s2161_s23 + $0x50] sm:$0xff] %v145_v10  ;;  %v153_v14 = vld [vmem:[%s2153_s22 + $0x70] sm:$0xff]  ;;  %v155_v15 = vld [vmem:[%s2153_s22 + $0x78] sm:$0xff] }
  0x16   : > { %148 = vst [vmem:[%s2161_s23 + $0x58] sm:$0xff] %v147_v11  ;;  %150 = vst [vmem:[%s2161_s23 + $0x60] sm:$0xff] %v149_v12  ;;  %v157_v16 = vld [vmem:[%s2153_s22 + $0x100] sm:$0xff]  ;;  %v159_v17 = vld [vmem:[%s2153_s22 + $0x108] sm:$0xff] }
  0x17   : > { %152 = vst [vmem:[%s2161_s23 + $0x68] sm:$0xff] %v151_v13  ;;  %154 = vst [vmem:[%s2161_s23 + $0x70] sm:$0xff] %v153_v14  ;;  %v161_v18 = vld [vmem:[%s2153_s22 + $0x110] sm:$0xff]  ;;  %v163_v19 = vld [vmem:[%s2153_s22 + $0x118] sm:$0xff] }
  0x18   : > { %156 = vst [vmem:[%s2161_s23 + $0x78] sm:$0xff] %v155_v15  ;;  %158 = vst [vmem:[%s2161_s23 + $0x80] sm:$0xff] %v157_v16  ;;  %v165_v20 = vld [vmem:[%s2153_s22 + $0x120] sm:$0xff]  ;;  %v167_v21 = vld [vmem:[%s2153_s22 + $0x128] sm:$0xff] }
  0x19   : > { %160 = vst [vmem:[%s2161_s23 + $0x88] sm:$0xff] %v159_v17  ;;  %162 = vst [vmem:[%s2161_s23 + $0x90] sm:$0xff] %v161_v18  ;;  %v169_v22 = vld [vmem:[%s2153_s22 + $0x130] sm:$0xff]  ;;  %v171_v23 = vld [vmem:[%s2153_s22 + $0x138] sm:$0xff] }
  0x1a   : > { %164 = vst [vmem:[%s2161_s23 + $0x98] sm:$0xff] %v163_v19  ;;  %166 = vst [vmem:[%s2161_s23 + $0xa0] sm:$0xff] %v165_v20  ;;  %v173_v24 = vld [vmem:[%s2153_s22 + $0x140] sm:$0xff]  ;;  %v175_v25 = vld [vmem:[%s2153_s22 + $0x148] sm:$0xff] }
  0x1b   : > { %168 = vst [vmem:[%s2161_s23 + $0xa8] sm:$0xff] %v167_v21  ;;  %170 = vst [vmem:[%s2161_s23 + $0xb0] sm:$0xff] %v169_v22  ;;  %v177_v26 = vld [vmem:[%s2153_s22 + $0x150] sm:$0xff]  ;;  %v179_v27 = vld [vmem:[%s2153_s22 + $0x158] sm:$0xff] }
  0x1c   : > { %172 = vst [vmem:[%s2161_s23 + $0xb8] sm:$0xff] %v171_v23  ;;  %174 = vst [vmem:[%s2161_s23 + $0xc0] sm:$0xff] %v173_v24  ;;  %v181_v28 = vld [vmem:[%s2153_s22 + $0x160] sm:$0xff]  ;;  %v183_v29 = vld [vmem:[%s2153_s22 + $0x168] sm:$0xff] }
  0x1d   : > { %176 = vst [vmem:[%s2161_s23 + $0xc8] sm:$0xff] %v175_v25  ;;  %178 = vst [vmem:[%s2161_s23 + $0xd0] sm:$0xff] %v177_v26  ;;  %v185_v30 = vld [vmem:[%s2153_s22 + $0x170] sm:$0xff]  ;;  %v187_v31 = vld [vmem:[%s2153_s22 + $0x178] sm:$0xff] }
  0x1e   : > { %180 = vst [vmem:[%s2161_s23 + $0xd8] sm:$0xff] %v179_v27  ;;  %182 = vst [vmem:[%s2161_s23 + $0xe0] sm:$0xff] %v181_v28  ;;  %v189_v32 = vld [vmem:[%s2153_s22 + $0x200] sm:$0xff]  ;;  %v191_v33 = vld [vmem:[%s2153_s22 + $0x208] sm:$0xff] }
  0x1f   : > { %184 = vst [vmem:[%s2161_s23 + $0xe8] sm:$0xff] %v183_v29  ;;  %186 = vst [vmem:[%s2161_s23 + $0xf0] sm:$0xff] %v185_v30  ;;  %v193_v34 = vld [vmem:[%s2153_s22 + $0x210] sm:$0xff]  ;;  %v195_v35 = vld [vmem:[%s2153_s22 + $0x218] sm:$0xff] }
  0x20   : > { %188 = vst [vmem:[%s2161_s23 + $0xf8] sm:$0xff] %v187_v31  ;;  %190 = vst [vmem:[%s2161_s23 + $0x100] sm:$0xff] %v189_v32  ;;  %v197_v36 = vld [vmem:[%s2153_s22 + $0x220] sm:$0xff]  ;;  %v199_v37 = vld [vmem:[%s2153_s22 + $0x228] sm:$0xff] }
  0x21   : > { %192 = vst [vmem:[%s2161_s23 + $0x108] sm:$0xff] %v191_v33  ;;  %194 = vst [vmem:[%s2161_s23 + $0x110] sm:$0xff] %v193_v34  ;;  %v201_v38 = vld [vmem:[%s2153_s22 + $0x230] sm:$0xff]  ;;  %v203_v39 = vld [vmem:[%s2153_s22 + $0x238] sm:$0xff] }
  0x22   : > { %196 = vst [vmem:[%s2161_s23 + $0x118] sm:$0xff] %v195_v35  ;;  %198 = vst [vmem:[%s2161_s23 + $0x120] sm:$0xff] %v197_v36  ;;  %v205_v40 = vld [vmem:[%s2153_s22 + $0x240] sm:$0xff]  ;;  %v207_v41 = vld [vmem:[%s2153_s22 + $0x248] sm:$0xff] }
  0x23   : > { %200 = vst [vmem:[%s2161_s23 + $0x128] sm:$0xff] %v199_v37  ;;  %202 = vst [vmem:[%s2161_s23 + $0x130] sm:$0xff] %v201_v38  ;;  %v209_v42 = vld [vmem:[%s2153_s22 + $0x250] sm:$0xff]  ;;  %v211_v43 = vld [vmem:[%s2153_s22 + $0x258] sm:$0xff] }
  0x24   : > { %204 = vst [vmem:[%s2161_s23 + $0x138] sm:$0xff] %v203_v39  ;;  %206 = vst [vmem:[%s2161_s23 + $0x140] sm:$0xff] %v205_v40  ;;  %v213_v44 = vld [vmem:[%s2153_s22 + $0x260] sm:$0xff]  ;;  %v215_v45 = vld [vmem:[%s2153_s22 + $0x268] sm:$0xff] }
  0x25   : > { %208 = vst [vmem:[%s2161_s23 + $0x148] sm:$0xff] %v207_v41  ;;  %210 = vst [vmem:[%s2161_s23 + $0x150] sm:$0xff] %v209_v42  ;;  %v217_v46 = vld [vmem:[%s2153_s22 + $0x270] sm:$0xff]  ;;  %v219_v47 = vld [vmem:[%s2153_s22 + $0x278] sm:$0xff] }
  0x26   : > { %212 = vst [vmem:[%s2161_s23 + $0x158] sm:$0xff] %v211_v43  ;;  %214 = vst [vmem:[%s2161_s23 + $0x160] sm:$0xff] %v213_v44  ;;  %v221_v48 = vld [vmem:[%s2153_s22 + $0x300] sm:$0xff]  ;;  %v223_v49 = vld [vmem:[%s2153_s22 + $0x308] sm:$0xff] }
  0x27   : > { %216 = vst [vmem:[%s2161_s23 + $0x168] sm:$0xff] %v215_v45  ;;  %218 = vst [vmem:[%s2161_s23 + $0x170] sm:$0xff] %v217_v46  ;;  %v225_v50 = vld [vmem:[%s2153_s22 + $0x310] sm:$0xff]  ;;  %v227_v51 = vld [vmem:[%s2153_s22 + $0x318] sm:$0xff] }
  0x28   : > { %220 = vst [vmem:[%s2161_s23 + $0x178] sm:$0xff] %v219_v47  ;;  %222 = vst [vmem:[%s2161_s23 + $0x180] sm:$0xff] %v221_v48  ;;  %v229_v52 = vld [vmem:[%s2153_s22 + $0x320] sm:$0xff]  ;;  %v231_v53 = vld [vmem:[%s2153_s22 + $0x328] sm:$0xff] }
  0x29   : > { %224 = vst [vmem:[%s2161_s23 + $0x188] sm:$0xff] %v223_v49  ;;  %226 = vst [vmem:[%s2161_s23 + $0x190] sm:$0xff] %v225_v50  ;;  %v233_v54 = vld [vmem:[%s2153_s22 + $0x330] sm:$0xff]  ;;  %v235_v55 = vld [vmem:[%s2153_s22 + $0x338] sm:$0xff] }
  0x2a   : > { %228 = vst [vmem:[%s2161_s23 + $0x198] sm:$0xff] %v227_v51  ;;  %230 = vst [vmem:[%s2161_s23 + $0x1a0] sm:$0xff] %v229_v52  ;;  %v237_v56 = vld [vmem:[%s2153_s22 + $0x340] sm:$0xff]  ;;  %v239_v57 = vld [vmem:[%s2153_s22 + $0x348] sm:$0xff] }
  0x2b   : > { %232 = vst [vmem:[%s2161_s23 + $0x1a8] sm:$0xff] %v231_v53  ;;  %234 = vst [vmem:[%s2161_s23 + $0x1b0] sm:$0xff] %v233_v54  ;;  %v241_v58 = vld [vmem:[%s2153_s22 + $0x350] sm:$0xff]  ;;  %v243_v59 = vld [vmem:[%s2153_s22 + $0x358] sm:$0xff] }
  0x2c   : > { %236 = vst [vmem:[%s2161_s23 + $0x1b8] sm:$0xff] %v235_v55  ;;  %238 = vst [vmem:[%s2161_s23 + $0x1c0] sm:$0xff] %v237_v56  ;;  %v245_v60 = vld [vmem:[%s2153_s22 + $0x360] sm:$0xff]  ;;  %v247_v61 = vld [vmem:[%s2153_s22 + $0x368] sm:$0xff] }
  0x2d   : > { %240 = vst [vmem:[%s2161_s23 + $0x1c8] sm:$0xff] %v239_v57  ;;  %242 = vst [vmem:[%s2161_s23 + $0x1d0] sm:$0xff] %v241_v58  ;;  %v249_v62 = vld [vmem:[%s2153_s22 + $0x370] sm:$0xff]  ;;  %v251_v63 = vld [vmem:[%s2153_s22 + $0x378] sm:$0xff] }
  0x2e   : > { %244 = vst [vmem:[%s2161_s23 + $0x1d8] sm:$0xff] %v243_v59  ;;  %246 = vst [vmem:[%s2161_s23 + $0x1e0] sm:$0xff] %v245_v60  ;;  %v253_v0 = vld [vmem:[%s2153_s22 + $0x400] sm:$0xff]  ;;  %v255_v1 = vld [vmem:[%s2153_s22 + $0x408] sm:$0xff] }
  0x2f   : > { %248 = vst [vmem:[%s2161_s23 + $0x1e8] sm:$0xff] %v247_v61  ;;  %250 = vst [vmem:[%s2161_s23 + $0x1f0] sm:$0xff] %v249_v62  ;;  %v257_v2 = vld [vmem:[%s2153_s22 + $0x410] sm:$0xff]  ;;  %v259_v3 = vld [vmem:[%s2153_s22 + $0x418] sm:$0xff] }
  0x30   : > { %252 = vst [vmem:[%s2161_s23 + $0x1f8] sm:$0xff] %v251_v63  ;;  %254 = vst [vmem:[%s2161_s23 + $0x200] sm:$0xff] %v253_v0  ;;  %v261_v4 = vld [vmem:[%s2153_s22 + $0x420] sm:$0xff]  ;;  %v263_v5 = vld [vmem:[%s2153_s22 + $0x428] sm:$0xff] }
  0x31   : > { %256 = vst [vmem:[%s2161_s23 + $0x208] sm:$0xff] %v255_v1  ;;  %258 = vst [vmem:[%s2161_s23 + $0x210] sm:$0xff] %v257_v2  ;;  %v265_v6 = vld [vmem:[%s2153_s22 + $0x430] sm:$0xff]  ;;  %v267_v7 = vld [vmem:[%s2153_s22 + $0x438] sm:$0xff] }
  0x32   : > { %260 = vst [vmem:[%s2161_s23 + $0x218] sm:$0xff] %v259_v3  ;;  %262 = vst [vmem:[%s2161_s23 + $0x220] sm:$0xff] %v261_v4  ;;  %v269_v8 = vld [vmem:[%s2153_s22 + $0x440] sm:$0xff]  ;;  %v271_v9 = vld [vmem:[%s2153_s22 + $0x448] sm:$0xff] }
  0x33   : > { %264 = vst [vmem:[%s2161_s23 + $0x228] sm:$0xff] %v263_v5  ;;  %266 = vst [vmem:[%s2161_s23 + $0x230] sm:$0xff] %v265_v6  ;;  %v273_v10 = vld [vmem:[%s2153_s22 + $0x450] sm:$0xff]  ;;  %v275_v11 = vld [vmem:[%s2153_s22 + $0x458] sm:$0xff] }
  0x34   : > { %268 = vst [vmem:[%s2161_s23 + $0x238] sm:$0xff] %v267_v7  ;;  %270 = vst [vmem:[%s2161_s23 + $0x240] sm:$0xff] %v269_v8  ;;  %v277_v12 = vld [vmem:[%s2153_s22 + $0x460] sm:$0xff]  ;;  %v279_v13 = vld [vmem:[%s2153_s22 + $0x468] sm:$0xff] }
  0x35   : > { %272 = vst [vmem:[%s2161_s23 + $0x248] sm:$0xff] %v271_v9  ;;  %274 = vst [vmem:[%s2161_s23 + $0x250] sm:$0xff] %v273_v10  ;;  %v281_v14 = vld [vmem:[%s2153_s22 + $0x470] sm:$0xff]  ;;  %v283_v15 = vld [vmem:[%s2153_s22 + $0x478] sm:$0xff] }
  0x36   : > { %276 = vst [vmem:[%s2161_s23 + $0x258] sm:$0xff] %v275_v11  ;;  %278 = vst [vmem:[%s2161_s23 + $0x260] sm:$0xff] %v277_v12  ;;  %v285_v16 = vld [vmem:[%s2153_s22 + $0x500] sm:$0xff]  ;;  %v287_v17 = vld [vmem:[%s2153_s22 + $0x508] sm:$0xff] }
  0x37   : > { %280 = vst [vmem:[%s2161_s23 + $0x268] sm:$0xff] %v279_v13  ;;  %282 = vst [vmem:[%s2161_s23 + $0x270] sm:$0xff] %v281_v14  ;;  %v289_v18 = vld [vmem:[%s2153_s22 + $0x510] sm:$0xff]  ;;  %v291_v19 = vld [vmem:[%s2153_s22 + $0x518] sm:$0xff] }
  0x38   : > { %284 = vst [vmem:[%s2161_s23 + $0x278] sm:$0xff] %v283_v15  ;;  %286 = vst [vmem:[%s2161_s23 + $0x280] sm:$0xff] %v285_v16  ;;  %v293_v20 = vld [vmem:[%s2153_s22 + $0x520] sm:$0xff]  ;;  %v295_v21 = vld [vmem:[%s2153_s22 + $0x528] sm:$0xff] }
  0x39   : > { %288 = vst [vmem:[%s2161_s23 + $0x288] sm:$0xff] %v287_v17  ;;  %290 = vst [vmem:[%s2161_s23 + $0x290] sm:$0xff] %v289_v18  ;;  %v297_v22 = vld [vmem:[%s2153_s22 + $0x530] sm:$0xff]  ;;  %v299_v23 = vld [vmem:[%s2153_s22 + $0x538] sm:$0xff] }
  0x3a   : > { %292 = vst [vmem:[%s2161_s23 + $0x298] sm:$0xff] %v291_v19  ;;  %294 = vst [vmem:[%s2161_s23 + $0x2a0] sm:$0xff] %v293_v20  ;;  %v301_v24 = vld [vmem:[%s2153_s22 + $0x540] sm:$0xff]  ;;  %v303_v25 = vld [vmem:[%s2153_s22 + $0x548] sm:$0xff] }
  0x3b   : > { %296 = vst [vmem:[%s2161_s23 + $0x2a8] sm:$0xff] %v295_v21  ;;  %298 = vst [vmem:[%s2161_s23 + $0x2b0] sm:$0xff] %v297_v22  ;;  %v305_v26 = vld [vmem:[%s2153_s22 + $0x550] sm:$0xff]  ;;  %v307_v27 = vld [vmem:[%s2153_s22 + $0x558] sm:$0xff] }
  0x3c   : > { %300 = vst [vmem:[%s2161_s23 + $0x2b8] sm:$0xff] %v299_v23  ;;  %302 = vst [vmem:[%s2161_s23 + $0x2c0] sm:$0xff] %v301_v24  ;;  %v309_v28 = vld [vmem:[%s2153_s22 + $0x560] sm:$0xff]  ;;  %v311_v29 = vld [vmem:[%s2153_s22 + $0x568] sm:$0xff] }
  0x3d   : > { %304 = vst [vmem:[%s2161_s23 + $0x2c8] sm:$0xff] %v303_v25  ;;  %306 = vst [vmem:[%s2161_s23 + $0x2d0] sm:$0xff] %v305_v26  ;;  %v313_v30 = vld [vmem:[%s2153_s22 + $0x570] sm:$0xff]  ;;  %v315_v31 = vld [vmem:[%s2153_s22 + $0x578] sm:$0xff] }
  0x3e   : > { %308 = vst [vmem:[%s2161_s23 + $0x2d8] sm:$0xff] %v307_v27  ;;  %310 = vst [vmem:[%s2161_s23 + $0x2e0] sm:$0xff] %v309_v28 }
  0x3f   : > { %312 = vst [vmem:[%s2161_s23 + $0x2e8] sm:$0xff] %v311_v29  ;;  %314 = vst [vmem:[%s2161_s23 + $0x2f0] sm:$0xff] %v313_v30 }
  0x40   : > { %316 = vst [vmem:[%s2161_s23 + $0x2f8] sm:$0xff] %v315_v31 }
  0x41 PF: > { %p1902_p5 = scmp.ge.s32.totalorder %s2101_s11, 1  ;;  %p321_p6 = scmp.lt.s32.totalorder %s2101_s11, 3 }
  0x43   : > { %p322_p7 = pnand %p1902_p5, %p321_p6 }
  0x44   : > { %s328_s24 = sand.u32 (!%p322_p7), 1, %s2093_s9   ;;  %s1903_s29 = sshll.u32 (!%p322_p7), %s1896_s12, 5 }
  0x45   : > { %325 = sbr.rel (%p322_p7) target bundleno = 375 (0x177), region = 47  ;;  %p351_p8 = scmp.lt.s32.totalorder (!%p322_p7), %s1903_s29, 63 }
  0x46   : > { %s2053_s25 = smul.u32 (!%p322_p7), 768, %s328_s24 }
  0x48   : > { %s2354_s26 = scalar_lea.vmem (!%p322_p7), [#allocation2], %s2053_s25 }
  0x4a   : > { %v2103_v32 = vmov 0   ;;  %v422_v33 = vld [vmem:[%s2354_s26 + $0x200] sm:$0xff]  ;;  %v423_v35 = vld [vmem:[%s2354_s26 + $0x208] sm:$0xff]  ;;  %v424_v55 = vld [vmem:[%s2354_s26 + $0x210] sm:$0xff]  ;;  %vm934_vm0 = vcmask 392192   ;;  %s2543_s29 = smov (!%p351_p8, %s1903_s29), 63 }
  0x4b   : > { %970 = vmatprep.mubr.bf16.mxu0 %v2103_v32  ;;  %1011 = vmatprep.mubr.bf16.mxu1 %v2103_v32  ;;  %v438_v34 = vld [vmem:[%s2354_s26 + $0x280] sm:$0xff]  ;;  %v439_v37 = vld [vmem:[%s2354_s26 + $0x288] sm:$0xff]  ;;  %v440_v56 = vld [vmem:[%s2354_s26 + $0x290] sm:$0xff]  ;;  %s1904_s30 = sshll.u32 %s2543_s29, 2 }
  0x4c   : > { %v1970_v36 = vcombine.high %v422_v33, %v438_v34  ;;  %v1969_v38 = vcombine.low %v422_v33, %v438_v34  ;;  %v390_v39 = vld [vmem:[%s2354_s26 + $0x100] sm:$0xff]  ;;  %v1972_v41 = vcombine.high %v423_v35, %v439_v37  ;;  %v1971_v42 = vcombine.low %v423_v35, %v439_v37  ;;  %v391_v44 = vld [vmem:[%s2354_s26 + $0x108] sm:$0xff]  ;;  %v425_v57 = vld [vmem:[%s2354_s26 + $0x218] sm:$0xff]  ;;  %s2508_s5 = scalar_lea.vmem %s2538_s2, %s1904_s30 }
  0x4d   : > { %v406_v40 = vld [vmem:[%s2354_s26 + $0x180] sm:$0xff]  ;;  %v407_v45 = vld [vmem:[%s2354_s26 + $0x188] sm:$0xff]  ;;  %v441_v58 = vld [vmem:[%s2354_s26 + $0x298] sm:$0xff]  ;;  %v1974_v61 = vcombine.high %v424_v55, %v440_v56  ;;  %v1973_v4 = vcombine.low %v424_v55, %v440_v56 }
  0x4e   : > { %v1938_v43 = vcombine.high %v390_v39, %v406_v40  ;;  %v358_v46 = vld [vmem:[%s2354_s26] sm:$0xff]  ;;  %948 = vmatprep.subr.bf16.mxu0 %v1970_v36  ;;  %v1940_v47 = vcombine.high %v391_v44, %v407_v45  ;;  %v359_v49 = vld [vmem:[%s2354_s26 + $0x8] sm:$0xff]  ;;  %989 = vmatprep.subr.bf16.mxu1 %v1972_v41  ;;  %v1937_v51 = vcombine.low %v390_v39, %v406_v40  ;;  %v392_v63 = vld [vmem:[%s2354_s26 + $0x110] sm:$0xff] }
  0x4f   : > { %v374_v48 = vld [vmem:[%s2354_s26 + $0x80] sm:$0xff]  ;;  %v375_v50 = vld [vmem:[%s2354_s26 + $0x88] sm:$0xff]  ;;  %949 = vmatpush1.bf16.msra.mxu0 %v1969_v38  ;;  %990 = vmatpush1.bf16.msra.mxu1 %v1971_v42  ;;  %v1939_v52 = vcombine.low %v391_v44, %v407_v45  ;;  %v1976_v62 = vcombine.high %v425_v57, %v441_v58  ;;  %v408_v0 = vld [vmem:[%s2354_s26 + $0x190] sm:$0xff]  ;;  %v1975_v5 = vcombine.low %v425_v57, %v441_v58 }
  0x50   : > { %950 = vmatprep.subr.bf16.mxu0 %v1938_v43  ;;  %v1906_v53 = vcombine.high %v358_v46, %v374_v48  ;;  %991 = vmatprep.subr.bf16.mxu1 %v1940_v47  ;;  %v1908_v54 = vcombine.high %v359_v49, %v375_v50  ;;  %v1905_v59 = vcombine.low %v358_v46, %v374_v48  ;;  %v393_v1 = vld [vmem:[%s2354_s26 + $0x118] sm:$0xff]  ;;  %v2379_v3 = vld [vmem:[%s2536_s0] sm:$0xf]  ;;  %v360_v8 = vld [vmem:[%s2354_s26 + $0x10] sm:$0xff] }
  0x51   : > { %v1907_v60 = vcombine.low %v359_v49, %v375_v50  ;;  %v409_v2 = vld [vmem:[%s2354_s26 + $0x198] sm:$0xff]  ;;  %v1942_v6 = vcombine.high %v392_v63, %v408_v0  ;;  %v376_v9 = vld [vmem:[%s2354_s26 + $0x90] sm:$0xff]  ;;  %v1941_v12 = vcombine.low %v392_v63, %v408_v0  ;;  %v426_v16 = vld [vmem:[%s2354_s26 + $0x220] sm:$0xff] }
  0x52   : > { %v1944_v7 = vcombine.high %v393_v1, %v409_v2  ;;  %v361_v10 = vld [vmem:[%s2354_s26 + $0x18] sm:$0xff]  ;;  %v1943_v13 = vcombine.low %v393_v1, %v409_v2  ;;  %v1910_v14 = vcombine.high %v360_v8, %v376_v9  ;;  %v442_v17 = vld [vmem:[%s2354_s26 + $0x2a0] sm:$0xff]  ;;  %v427_v18 = vld [vmem:[%s2354_s26 + $0x228] sm:$0xff]  ;;  %v1909_v20 = vcombine.low %v360_v8, %v376_v9 }
  0x53   : > { %951 = vmatpush1.bf16.msra.mxu0 %v1937_v51  ;;  %992 = vmatpush1.bf16.msra.mxu1 %v1939_v52  ;;  %v377_v11 = vld [vmem:[%s2354_s26 + $0x98] sm:$0xff]  ;;  %v443_v19 = vld [vmem:[%s2354_s26 + $0x2a8] sm:$0xff]  ;;  %v1978_v22 = vcombine.high %v426_v16, %v442_v17  ;;  %v394_v24 = vld [vmem:[%s2354_s26 + $0x120] sm:$0xff]  ;;  %v1977_v28 = vcombine.low %v426_v16, %v442_v17 }
  0x54   : > { %952 = vmatprep.subr.bf16.mxu0 %v1906_v53  ;;  %993 = vmatprep.subr.bf16.mxu1 %v1908_v54  ;;  %v1912_v15 = vcombine.high %v361_v10, %v377_v11  ;;  %v1911_v21 = vcombine.low %v361_v10, %v377_v11  ;;  %v1980_v23 = vcombine.high %v427_v18, %v443_v19  ;;  %v410_v25 = vld [vmem:[%s2354_s26 + $0x1a0] sm:$0xff]  ;;  %v395_v26 = vld [vmem:[%s2354_s26 + $0x128] sm:$0xff]  ;;  %v428_v41 = vld [vmem:[%s2354_s26 + $0x230] sm:$0xff] }
  0x55   : > { %v411_v27 = vld [vmem:[%s2354_s26 + $0x1a8] sm:$0xff]  ;;  %v1979_v29 = vcombine.low %v427_v18, %v443_v19  ;;  %v1946_v30 = vcombine.high %v394_v24, %v410_v25  ;;  %v362_v33 = vld [vmem:[%s2354_s26 + $0x20] sm:$0xff]  ;;  %v1945_v37 = vcombine.low %v394_v24, %v410_v25  ;;  %v444_v42 = vld [vmem:[%s2354_s26 + $0x2b0] sm:$0xff] }
  0x56   : > { %v1948_v31 = vcombine.high %v395_v26, %v411_v27  ;;  %v378_v34 = vld [vmem:[%s2354_s26 + $0xa0] sm:$0xff]  ;;  %v363_v35 = vld [vmem:[%s2354_s26 + $0x28] sm:$0xff]  ;;  %v1947_v38 = vcombine.low %v395_v26, %v411_v27  ;;  %v429_v43 = vld [vmem:[%s2354_s26 + $0x238] sm:$0xff]  ;;  %v1982_v47 = vcombine.high %v428_v41, %v444_v42  ;;  %v1981_v53 = vcombine.low %v428_v41, %v444_v42 }
  0x57   : > { %953 = vmatpush1.bf16.msra.mxu0 %v1905_v59  ;;  %994 = vmatpush1.bf16.msra.mxu1 %v1907_v60  ;;  %v379_v36 = vld [vmem:[%s2354_s26 + $0xa8] sm:$0xff]  ;;  %v1914_v39 = vcombine.high %v362_v33, %v378_v34  ;;  %v445_v44 = vld [vmem:[%s2354_s26 + $0x2b8] sm:$0xff]  ;;  %v1913_v45 = vcombine.low %v362_v33, %v378_v34  ;;  %v396_v49 = vld [vmem:[%s2354_s26 + $0x130] sm:$0xff] }
  0x58   : > { %1030 = vmatprep.subr.bf16.mxu0 %v1974_v61  ;;  %1071 = vmatprep.subr.bf16.mxu1 %v1976_v62  ;;  %v1916_v40 = vcombine.high %v363_v35, %v379_v36  ;;  %v1915_v46 = vcombine.low %v363_v35, %v379_v36  ;;  %v1984_v48 = vcombine.high %v429_v43, %v445_v44  ;;  %v412_v50 = vld [vmem:[%s2354_s26 + $0x1b0] sm:$0xff]  ;;  %v397_v51 = vld [vmem:[%s2354_s26 + $0x138] sm:$0xff]  ;;  %v430_v1 = vld [vmem:[%s2354_s26 + $0x240] sm:$0xff] }
  0x59   : > { %v413_v52 = vld [vmem:[%s2354_s26 + $0x1b8] sm:$0xff]  ;;  %v1983_v54 = vcombine.low %v429_v43, %v445_v44  ;;  %v1950_v55 = vcombine.high %v396_v49, %v412_v50  ;;  %v364_v57 = vld [vmem:[%s2354_s26 + $0x30] sm:$0xff]  ;;  %v1949_v61 = vcombine.low %v396_v49, %v412_v50  ;;  %v446_v2 = vld [vmem:[%s2354_s26 + $0x2c0] sm:$0xff] }
  0x5a   : > { %2001 = vmatmul.mubr.msk.bf16.vlgmr.msra.gmra.mxu0 %vm934_vm0, %v2379_v3  ;;  %2002 = vmatmul.mubr.msk.bf16.vlgmr.msra.gmra.mxu1 %vm934_vm0, %v2379_v3  ;;  %v1952_v56 = vcombine.high %v397_v51, %v413_v52  ;;  %v380_v58 = vld [vmem:[%s2354_s26 + $0xb0] sm:$0xff]  ;;  %v365_v59 = vld [vmem:[%s2354_s26 + $0x38] sm:$0xff]  ;;  %v1951_v62 = vcombine.low %v397_v51, %v413_v52  ;;  %v1986_v8 = vcombine.high %v430_v1, %v446_v2  ;;  %v398_v10 = vld [vmem:[%s2354_s26 + $0x140] sm:$0xff] }
  0x5b   : > { %1031 = vmatpush1.bf16.msra.mxu0 %v1973_v4  ;;  %1072 = vmatpush1.bf16.msra.mxu1 %v1975_v5  ;;  %v381_v60 = vld [vmem:[%s2354_s26 + $0xb8] sm:$0xff]  ;;  %v1918_v63 = vcombine.high %v364_v57, %v380_v58  ;;  %v431_v4 = vld [vmem:[%s2354_s26 + $0x248] sm:$0xff]  ;;  %v414_v11 = vld [vmem:[%s2354_s26 + $0x1c0] sm:$0xff] }
  0x5c   : > { %1032 = vmatprep.subr.bf16.mxu0 %v1942_v6  ;;  %1073 = vmatprep.subr.bf16.mxu1 %v1944_v7  ;;  %v1920_v0 = vcombine.high %v365_v59, %v381_v60  ;;  %v447_v5 = vld [vmem:[%s2354_s26 + $0x2c8] sm:$0xff]  ;;  %v1917_v6 = vcombine.low %v364_v57, %v380_v58  ;;  %v1919_v7 = vcombine.low %v365_v59, %v381_v60  ;;  %v366_v18 = vld [vmem:[%s2354_s26 + $0x40] sm:$0xff]  ;;  %v432_v26 = vld [vmem:[%s2354_s26 + $0x250] sm:$0xff] }
  0x5d   : > { %1052 = vmatprep.mubr.bf16.mxu0 %v2103_v32  ;;  %1093 = vmatprep.mubr.bf16.mxu1 %v2103_v32  ;;  %v1988_v9 = vcombine.high %v431_v4, %v447_v5  ;;  %v1954_v16 = vcombine.high %v398_v10, %v414_v11  ;;  %v382_v19 = vld [vmem:[%s2354_s26 + $0xc0] sm:$0xff]  ;;  %v448_v27 = vld [vmem:[%s2354_s26 + $0x2d0] sm:$0xff] }
  0x5e   : > { %v1922_v24 = vcombine.high %v366_v18, %v382_v19  ;;  %v1990_v33 = vcombine.high %v432_v26, %v448_v27  ;;  %v400_v35 = vld [vmem:[%s2354_s26 + $0x150] sm:$0xff]  ;;  %v434_v51 = vld [vmem:[%s2354_s26 + $0x260] sm:$0xff] }
  0x5f   : > { %1033 = vmatpush1.bf16.msra.mxu0 %v1941_v12  ;;  %1074 = vmatpush1.bf16.msra.mxu1 %v1943_v13  ;;  %v399_v12 = vld [vmem:[%s2354_s26 + $0x148] sm:$0xff]  ;;  %v416_v36 = vld [vmem:[%s2354_s26 + $0x1d0] sm:$0xff]  ;;  %v450_v52 = vld [vmem:[%s2354_s26 + $0x2e0] sm:$0xff] }
  0x60   : > { %1034 = vmatprep.subr.bf16.mxu0 %v1910_v14  ;;  %1075 = vmatprep.subr.bf16.mxu1 %v1912_v15  ;;  %v415_v13 = vld [vmem:[%s2354_s26 + $0x1c8] sm:$0xff]  ;;  %v1985_v14 = vcombine.low %v430_v1, %v446_v2  ;;  %v1987_v15 = vcombine.low %v431_v4, %v447_v5  ;;  %v1958_v41 = vcombine.high %v400_v35, %v416_v36  ;;  %v368_v43 = vld [vmem:[%s2354_s26 + $0x50] sm:$0xff]  ;;  %v402_v59 = vld [vmem:[%s2354_s26 + $0x160] sm:$0xff] }
  0x61   : > { %v1956_v17 = vcombine.high %v399_v12, %v415_v13  ;;  %v384_v44 = vld [vmem:[%s2354_s26 + $0xd0] sm:$0xff]  ;;  %v1994_v57 = vcombine.high %v434_v51, %v450_v52  ;;  %v418_v60 = vld [vmem:[%s2354_s26 + $0x1e0] sm:$0xff] }
  0x62   : > { %v1926_v49 = vcombine.high %v368_v43, %v384_v44  ;;  %v1962_v1 = vcombine.high %v402_v59, %v418_v60  ;;  %v370_v4 = vld [vmem:[%s2354_s26 + $0x60] sm:$0xff] }
  0x63   : > { %1035 = vmatpush1.bf16.msra.mxu0 %v1909_v20  ;;  %1076 = vmatpush1.bf16.msra.mxu1 %v1911_v21  ;;  %v367_v20 = vld [vmem:[%s2354_s26 + $0x48] sm:$0xff]  ;;  %v386_v5 = vld [vmem:[%s2354_s26 + $0xe0] sm:$0xff] }
  0x64   : > { %1112 = vmatprep.subr.bf16.mxu0 %v1978_v22  ;;  %1153 = vmatprep.subr.bf16.mxu1 %v1980_v23  ;;  %v383_v21 = vld [vmem:[%s2354_s26 + $0xc8] sm:$0xff]  ;;  %v1953_v22 = vcombine.low %v398_v10, %v414_v11  ;;  %v1955_v23 = vcombine.low %v399_v12, %v415_v13  ;;  %v1930_v10 = vcombine.high %v370_v4, %v386_v5  ;;  %v436_v12 = vld [vmem:[%s2354_s26 + $0x270] sm:$0xff] }
  0x65   : > { %v1924_v25 = vcombine.high %v367_v20, %v383_v21  ;;  %v452_v13 = vld [vmem:[%s2354_s26 + $0x2f0] sm:$0xff] }
  0x66   : > { %2003 = vmatmul.mubr.msk.bf16.vlgmr.msra.gmra.mxu0 %vm934_vm0, %v2379_v3  ;;  %2004 = vmatmul.mubr.msk.bf16.vlgmr.msra.gmra.mxu1 %vm934_vm0, %v2379_v3 }
  0x67   : > { %1113 = vmatpush1.bf16.msra.mxu0 %v1977_v28  ;;  %1154 = vmatpush1.bf16.msra.mxu1 %v1979_v29  ;;  %v433_v28 = vld [vmem:[%s2354_s26 + $0x258] sm:$0xff] }
  0x68   : > { %1114 = vmatprep.subr.bf16.mxu0 %v1946_v30  ;;  %1155 = vmatprep.subr.bf16.mxu1 %v1948_v31  ;;  %v449_v29 = vld [vmem:[%s2354_s26 + $0x2d8] sm:$0xff]  ;;  %v1921_v30 = vcombine.low %v366_v18, %v382_v19  ;;  %v1923_v31 = vcombine.low %v367_v20, %v383_v21  ;;  %v1998_v18 = vcombine.high %v436_v12, %v452_v13  ;;  %v404_v20 = vld [vmem:[%s2354_s26 + $0x170] sm:$0xff] }
  0x69   : > { %1134 = vmatprep.mubr.bf16.mxu0 %v2103_v32  ;;  %1175 = vmatprep.mubr.bf16.mxu1 %v2103_v32  ;;  %v1992_v34 = vcombine.high %v433_v28, %v449_v29  ;;  %v420_v21 = vld [vmem:[%s2354_s26 + $0x1f0] sm:$0xff] }
  0x6b   : > { %1115 = vmatpush1.bf16.msra.mxu0 %v1945_v37  ;;  %1156 = vmatpush1.bf16.msra.mxu1 %v1947_v38  ;;  %v401_v37 = vld [vmem:[%s2354_s26 + $0x158] sm:$0xff] }
  0x6c   : > { %1116 = vmatprep.subr.bf16.mxu0 %v1914_v39  ;;  %1157 = vmatprep.subr.bf16.mxu1 %v1916_v40  ;;  %v417_v38 = vld [vmem:[%s2354_s26 + $0x1d8] sm:$0xff]  ;;  %v1989_v39 = vcombine.low %v432_v26, %v448_v27  ;;  %v1991_v40 = vcombine.low %v433_v28, %v449_v29  ;;  %v1966_v26 = vcombine.high %v404_v20, %v420_v21  ;;  %v372_v28 = vld [vmem:[%s2354_s26 + $0x70] sm:$0xff] }
  0x6d   : > { %v1960_v42 = vcombine.high %v401_v37, %v417_v38  ;;  %v388_v29 = vld [vmem:[%s2354_s26 + $0xf0] sm:$0xff] }
  0x6f   : > { %1117 = vmatpush1.bf16.msra.mxu0 %v1913_v45  ;;  %1158 = vmatpush1.bf16.msra.mxu1 %v1915_v46  ;;  %v369_v45 = vld [vmem:[%s2354_s26 + $0x58] sm:$0xff] }
  0x70   : > { %1194 = vmatprep.subr.bf16.mxu0 %v1982_v47  ;;  %1235 = vmatprep.subr.bf16.mxu1 %v1984_v48  ;;  %v385_v46 = vld [vmem:[%s2354_s26 + $0xd8] sm:$0xff]  ;;  %v1957_v47 = vcombine.low %v400_v35, %v416_v36  ;;  %v1959_v48 = vcombine.low %v401_v37, %v417_v38  ;;  %v1934_v35 = vcombine.high %v372_v28, %v388_v29 }
  0x71   : > { %v1928_v50 = vcombine.high %v369_v45, %v385_v46  ;;  %v1933_v37 = vcombine.low %v372_v28, %v388_v29 }
  0x72   : > { %2005 = vmatmul.mubr.msk.bf16.vlgmr.msra.gmra.mxu0 %vm934_vm0, %v2379_v3  ;;  %2006 = vmatmul.mubr.msk.bf16.vlgmr.msra.gmra.mxu1 %vm934_vm0, %v2379_v3 }
  0x73   : > { %1195 = vmatpush1.bf16.msra.mxu0 %v1981_v53  ;;  %1236 = vmatpush1.bf16.msra.mxu1 %v1983_v54  ;;  %v435_v53 = vld [vmem:[%s2354_s26 + $0x268] sm:$0xff] }
  0x74   : > { %1196 = vmatprep.subr.bf16.mxu0 %v1950_v55  ;;  %1237 = vmatprep.subr.bf16.mxu1 %v1952_v56  ;;  %v451_v54 = vld [vmem:[%s2354_s26 + $0x2e8] sm:$0xff]  ;;  %v1925_v55 = vcombine.low %v368_v43, %v384_v44  ;;  %v1927_v56 = vcombine.low %v369_v45, %v385_v46 }
  0x75   : > { %1216 = vmatprep.mubr.bf16.mxu0 %v2103_v32  ;;  %1257 = vmatprep.mubr.bf16.mxu1 %v2103_v32  ;;  %v1996_v58 = vcombine.high %v435_v53, %v451_v54 }
  0x77   : > { %1197 = vmatpush1.bf16.msra.mxu0 %v1949_v61  ;;  %1238 = vmatpush1.bf16.msra.mxu1 %v1951_v62  ;;  %v403_v61 = vld [vmem:[%s2354_s26 + $0x168] sm:$0xff] }
  0x78   : > { %1198 = vmatprep.subr.bf16.mxu0 %v1918_v63  ;;  %1239 = vmatprep.subr.bf16.mxu1 %v1920_v0  ;;  %v419_v62 = vld [vmem:[%s2354_s26 + $0x1e8] sm:$0xff]  ;;  %v1993_v63 = vcombine.low %v434_v51, %v450_v52  ;;  %v1995_v0 = vcombine.low %v435_v53, %v451_v54 }
  0x79   : > { %v1964_v2 = vcombine.high %v403_v61, %v419_v62 }
  0x7b   : > { %1199 = vmatpush1.bf16.msra.mxu0 %v1917_v6  ;;  %1240 = vmatpush1.bf16.msra.mxu1 %v1919_v7  ;;  %v371_v6 = vld [vmem:[%s2354_s26 + $0x68] sm:$0xff] }
  0x7c   : > { %1276 = vmatprep.subr.bf16.mxu0 %v1986_v8  ;;  %1317 = vmatprep.subr.bf16.mxu1 %v1988_v9  ;;  %v387_v7 = vld [vmem:[%s2354_s26 + $0xe8] sm:$0xff]  ;;  %v1961_v8 = vcombine.low %v402_v59, %v418_v60  ;;  %v1963_v9 = vcombine.low %v403_v61, %v419_v62 }
  0x7d   : > { %v1932_v11 = vcombine.high %v371_v6, %v387_v7 }
  0x7e   : > { %2007 = vmatmul.mubr.msk.bf16.vlgmr.msra.gmra.mxu0 %vm934_vm0, %v2379_v3  ;;  %2008 = vmatmul.mubr.msk.bf16.vlgmr.msra.gmra.mxu1 %vm934_vm0, %v2379_v3 }
  0x7f   : > { %1277 = vmatpush1.bf16.msra.mxu0 %v1985_v14  ;;  %1318 = vmatpush1.bf16.msra.mxu1 %v1987_v15  ;;  %v437_v14 = vld [vmem:[%s2354_s26 + $0x278] sm:$0xff] }
  0x80   : > { %1278 = vmatprep.subr.bf16.mxu0 %v1954_v16  ;;  %1319 = vmatprep.subr.bf16.mxu1 %v1956_v17  ;;  %v453_v15 = vld [vmem:[%s2354_s26 + $0x2f8] sm:$0xff]  ;;  %v1929_v16 = vcombine.low %v370_v4, %v386_v5  ;;  %v1931_v17 = vcombine.low %v371_v6, %v387_v7 }
  0x81   : > { %1298 = vmatprep.mubr.bf16.mxu0 %v2103_v32  ;;  %1339 = vmatprep.mubr.bf16.mxu1 %v2103_v32  ;;  %v2000_v19 = vcombine.high %v437_v14, %v453_v15 }
  0x83   : > { %1279 = vmatpush1.bf16.msra.mxu0 %v1953_v22  ;;  %1320 = vmatpush1.bf16.msra.mxu1 %v1955_v23  ;;  %v405_v22 = vld [vmem:[%s2354_s26 + $0x178] sm:$0xff] }
  0x84   : > { %1280 = vmatprep.subr.bf16.mxu0 %v1922_v24  ;;  %1321 = vmatprep.subr.bf16.mxu1 %v1924_v25  ;;  %v421_v23 = vld [vmem:[%s2354_s26 + $0x1f8] sm:$0xff]  ;;  %v1997_v24 = vcombine.low %v436_v12, %v452_v13  ;;  %v1999_v25 = vcombine.low %v437_v14, %v453_v15 }
  0x85   : > { %v1968_v27 = vcombine.high %v405_v22, %v421_v23 }
  0x87   : > { %1281 = vmatpush1.bf16.msra.mxu0 %v1921_v30  ;;  %1322 = vmatpush1.bf16.msra.mxu1 %v1923_v31  ;;  %v373_v30 = vld [vmem:[%s2354_s26 + $0x78] sm:$0xff] }
  0x88   : > { %1358 = vmatprep.subr.bf16.mxu0 %v1990_v33  ;;  %1399 = vmatprep.subr.bf16.mxu1 %v1992_v34  ;;  %v389_v31 = vld [vmem:[%s2354_s26 + $0xf8] sm:$0xff]  ;;  %v1965_v33 = vcombine.low %v404_v20, %v420_v21  ;;  %v1967_v34 = vcombine.low %v405_v22, %v421_v23 }
  0x89   : > { %v1936_v36 = vcombine.high %v373_v30, %v389_v31  ;;  %v1935_v38 = vcombine.low %v373_v30, %v389_v31 }
  0x8a   : > { %2009 = vmatmul.mubr.msk.bf16.vlgmr.msra.gmra.mxu0 %vm934_vm0, %v2379_v3  ;;  %2010 = vmatmul.mubr.msk.bf16.vlgmr.msra.gmra.mxu1 %vm934_vm0, %v2379_v3 }
  0x8b   : > { %1359 = vmatpush1.bf16.msra.mxu0 %v1989_v39  ;;  %1400 = vmatpush1.bf16.msra.mxu1 %v1991_v40 }
  0x8c   : > { %1360 = vmatprep.subr.bf16.mxu0 %v1958_v41  ;;  %1401 = vmatprep.subr.bf16.mxu1 %v1960_v42 }
  0x8d   : > { %1380 = vmatprep.mubr.bf16.mxu0 %v2103_v32  ;;  %1421 = vmatprep.mubr.bf16.mxu1 %v2103_v32 }
  0x8f   : > { %1361 = vmatpush1.bf16.msra.mxu0 %v1957_v47  ;;  %1402 = vmatpush1.bf16.msra.mxu1 %v1959_v48 }
  0x90   : > { %1362 = vmatprep.subr.bf16.mxu0 %v1926_v49  ;;  %1403 = vmatprep.subr.bf16.mxu1 %v1928_v50 }
  0x93   : > { %1363 = vmatpush1.bf16.msra.mxu0 %v1925_v55  ;;  %1404 = vmatpush1.bf16.msra.mxu1 %v1927_v56 }
  0x94   : > { %1440 = vmatprep.subr.bf16.mxu0 %v1994_v57  ;;  %1481 = vmatprep.subr.bf16.mxu1 %v1996_v58 }
  0x96   : > { %2011 = vmatmul.mubr.msk.bf16.vlgmr.msra.gmra.mxu0 %vm934_vm0, %v2379_v3  ;;  %2012 = vmatmul.mubr.msk.bf16.vlgmr.msra.gmra.mxu1 %vm934_vm0, %v2379_v3 }
  0x97   : > { %1441 = vmatpush1.bf16.msra.mxu0 %v1993_v63  ;;  %1482 = vmatpush1.bf16.msra.mxu1 %v1995_v0 }
  0x98   : > { %1442 = vmatprep.subr.bf16.mxu0 %v1962_v1  ;;  %1483 = vmatprep.subr.bf16.mxu1 %v1964_v2 }
  0x99   : > { %1462 = vmatprep.mubr.bf16.mxu0 %v2103_v32  ;;  %1503 = vmatprep.mubr.bf16.mxu1 %v2103_v32 }
  0x9b   : > { %1443 = vmatpush1.bf16.msra.mxu0 %v1961_v8  ;;  %1484 = vmatpush1.bf16.msra.mxu1 %v1963_v9 }
  0x9c   : > { %1444 = vmatprep.subr.bf16.mxu0 %v1930_v10  ;;  %1485 = vmatprep.subr.bf16.mxu1 %v1932_v11 }
  0x9f   : > { %1445 = vmatpush1.bf16.msra.mxu0 %v1929_v16  ;;  %1486 = vmatpush1.bf16.msra.mxu1 %v1931_v17 }
  0xa0   : > { %1522 = vmatprep.subr.bf16.mxu0 %v1998_v18  ;;  %1563 = vmatprep.subr.bf16.mxu1 %v2000_v19 }
  0xa2   : > { %2013 = vmatmul.mubr.msk.bf16.vlgmr.msra.gmra.mxu0 %vm934_vm0, %v2379_v3  ;;  %2014 = vmatmul.mubr.msk.bf16.vlgmr.msra.gmra.mxu1 %vm934_vm0, %v2379_v3 }
  0xa3   : > { %1523 = vmatpush1.bf16.msra.mxu0 %v1997_v24  ;;  %1564 = vmatpush1.bf16.msra.mxu1 %v1999_v25 }
  0xa4   : > { %1524 = vmatprep.subr.bf16.mxu0 %v1966_v26  ;;  %1565 = vmatprep.subr.bf16.mxu1 %v1968_v27 }
  0xa5   : > { %1544 = vmatprep.mubr.bf16.mxu0 %v2103_v32  ;;  %1585 = vmatprep.mubr.bf16.mxu1 %v2103_v32 }
  0xa7   : > { %1525 = vmatpush1.bf16.msra.mxu0 %v1965_v33  ;;  %1566 = vmatpush1.bf16.msra.mxu1 %v1967_v34 }
  0xa8   : > { %1526 = vmatprep.subr.bf16.mxu0 %v1934_v35  ;;  %1567 = vmatprep.subr.bf16.mxu1 %v1936_v36 }
  0xab   : > { %1527 = vmatpush1.bf16.msra.mxu0 %v1933_v37  ;;  %1568 = vmatpush1.bf16.msra.mxu1 %v1935_v38 }
  0xae   : > { %2015 = vmatmul.mubr.msk.bf16.vlgmr.msra.gmra.mxu0 %vm934_vm0, %v2379_v3  ;;  %2016 = vmatmul.mubr.msk.bf16.vlgmr.msra.gmra.mxu1 %vm934_vm0, %v2379_v3 }
 0x11a   : > { %v972_v39 = vpop.f32.mrf.mxu0  ;;  %v1013_v40 = vpop.f32.mrf.mxu1 }
 0x11b   : > { %v1626_v32 = vmul.f32 0.2, %v972_v39  ;;  %vm1594_vm1 = vcmp.gt.f32.partialorder %v972_v39, 0.0  ;;  %v1628_v41 = vmul.f32 0.2, %v1013_v40  ;;  %vm1596_vm2 = vcmp.gt.f32.partialorder %v1013_v40, 0.0 }
 0x11c   : > { %v974_v42 = vpop.f32.mrf.mxu0  ;;  %v1015_v44 = vpop.f32.mrf.mxu1 }
 0x11d   : > { %vm1595_vm3 = vcmp.gt.f32.partialorder %v974_v42, 0.0  ;;  %v1627_v43 = vmul.f32 0.2, %v974_v42  ;;  %vm1597_vm4 = vcmp.gt.f32.partialorder %v1015_v44, 0.0  ;;  %v1629_v45 = vmul.f32 0.2, %v1015_v44 }
 0x11e   : > { %v976_v46 = vpop.f32.mrf.mxu0  ;;  %v1658_v47 = vsel %vm1594_vm1, %v972_v39, %v1626_v32  ;;  %v1017_v48 = vpop.f32.mrf.mxu1  ;;  %v1660_v49 = vsel %vm1596_vm2, %v1013_v40, %v1628_v41 }
 0x11f   : > { %v1659_v3 = vsel %vm1595_vm3, %v974_v42, %v1627_v43  ;;  %v1661_v51 = vsel %vm1597_vm4, %v1015_v44, %v1629_v45 }
 0x120   : > { %v2036_v50 = vpack.c.bf16 %v1659_v3, %v1658_v47  ;;  %v977_v52 = vpop.f32.mrf.mxu0  ;;  %v2037_v53 = vpack.c.bf16 %v1661_v51, %v1660_v49  ;;  %v1018_v54 = vpop.f32.mrf.mxu1 }
 0x122   : > { %1818 = vst [vmem:[%s2508_s5] sm:$0xff] %v2036_v50  ;;  %1819 = vst [vmem:[%s2508_s5 + $0x8] sm:$0xff] %v2037_v53 }
 0x126   : > { %v1054_v55 = vpop.f32.mrf.mxu0  ;;  %v1095_v57 = vpop.f32.mrf.mxu1 }
 0x127   : > { %v1630_v56 = vmul.f32 0.2, %v1054_v55  ;;  %vm1598_vm5 = vcmp.gt.f32.partialorder %v1054_v55, 0.0  ;;  %v1632_v58 = vmul.f32 0.2, %v1095_v57  ;;  %vm1600_vm6 = vcmp.gt.f32.partialorder %v1095_v57, 0.0 }
 0x128   : > { %v1056_v59 = vpop.f32.mrf.mxu0  ;;  %v1097_v61 = vpop.f32.mrf.mxu1 }
 0x129   : > { %vm1599_vm7 = vcmp.gt.f32.partialorder %v1056_v59, 0.0  ;;  %v1631_v60 = vmul.f32 0.2, %v1056_v59  ;;  %vm1601_vm8 = vcmp.gt.f32.partialorder %v1097_v61, 0.0  ;;  %v1633_v62 = vmul.f32 0.2, %v1097_v61 }
 0x12a   : > { %v1058_v63 = vpop.f32.mrf.mxu0  ;;  %v1662_v0 = vsel %vm1598_vm5, %v1054_v55, %v1630_v56  ;;  %v1099_v2 = vpop.f32.mrf.mxu1  ;;  %v1664_v4 = vsel %vm1600_vm6, %v1095_v57, %v1632_v58 }
 0x12b   : > { %v1663_v1 = vsel %vm1599_vm7, %v1056_v59, %v1631_v60  ;;  %v1665_v6 = vsel %vm1601_vm8, %v1097_v61, %v1633_v62 }
 0x12c   : > { %v2038_v5 = vpack.c.bf16 %v1663_v1, %v1662_v0  ;;  %v1059_v7 = vpop.f32.mrf.mxu0  ;;  %v2039_v8 = vpack.c.bf16 %v1665_v6, %v1664_v4  ;;  %v1100_v9 = vpop.f32.mrf.mxu1 }
 0x12e   : > { %1820 = vst [vmem:[%s2508_s5 + $0x10] sm:$0xff] %v2038_v5  ;;  %1821 = vst [vmem:[%s2508_s5 + $0x18] sm:$0xff] %v2039_v8 }
 0x132   : > { %v1136_v10 = vpop.f32.mrf.mxu0  ;;  %v1177_v12 = vpop.f32.mrf.mxu1 }
 0x133   : > { %v1634_v11 = vmul.f32 0.2, %v1136_v10  ;;  %vm1602_vm9 = vcmp.gt.f32.partialorder %v1136_v10, 0.0  ;;  %v1636_v13 = vmul.f32 0.2, %v1177_v12  ;;  %vm1604_vm10 = vcmp.gt.f32.partialorder %v1177_v12, 0.0 }
 0x134   : > { %v1138_v14 = vpop.f32.mrf.mxu0  ;;  %v1179_v16 = vpop.f32.mrf.mxu1 }
 0x135   : > { %vm1603_vm11 = vcmp.gt.f32.partialorder %v1138_v14, 0.0  ;;  %v1635_v15 = vmul.f32 0.2, %v1138_v14  ;;  %vm1605_vm12 = vcmp.gt.f32.partialorder %v1179_v16, 0.0  ;;  %v1637_v17 = vmul.f32 0.2, %v1179_v16 }
 0x136   : > { %v1140_v18 = vpop.f32.mrf.mxu0  ;;  %v1666_v19 = vsel %vm1602_vm9, %v1136_v10, %v1634_v11  ;;  %v1181_v21 = vpop.f32.mrf.mxu1  ;;  %v1668_v22 = vsel %vm1604_vm10, %v1177_v12, %v1636_v13 }
 0x137   : > { %v1667_v20 = vsel %vm1603_vm11, %v1138_v14, %v1635_v15  ;;  %v1669_v24 = vsel %vm1605_vm12, %v1179_v16, %v1637_v17 }
 0x138   : > { %v2040_v23 = vpack.c.bf16 %v1667_v20, %v1666_v19  ;;  %v1141_v25 = vpop.f32.mrf.mxu0  ;;  %v2041_v26 = vpack.c.bf16 %v1669_v24, %v1668_v22  ;;  %v1182_v27 = vpop.f32.mrf.mxu1 }
 0x13a   : > { %1822 = vst [vmem:[%s2508_s5 + $0x20] sm:$0xff] %v2040_v23  ;;  %1823 = vst [vmem:[%s2508_s5 + $0x28] sm:$0xff] %v2041_v26 }
 0x13e   : > { %v1218_v28 = vpop.f32.mrf.mxu0  ;;  %v1259_v30 = vpop.f32.mrf.mxu1 }
 0x13f   : > { %v1638_v29 = vmul.f32 0.2, %v1218_v28  ;;  %vm1606_vm13 = vcmp.gt.f32.partialorder %v1218_v28, 0.0  ;;  %v1640_v31 = vmul.f32 0.2, %v1259_v30  ;;  %vm1608_vm14 = vcmp.gt.f32.partialorder %v1259_v30, 0.0 }
 0x140   : > { %v1220_v33 = vpop.f32.mrf.mxu0  ;;  %v1261_v35 = vpop.f32.mrf.mxu1 }
 0x141   : > { %vm1607_vm15 = vcmp.gt.f32.partialorder %v1220_v33, 0.0  ;;  %v1639_v34 = vmul.f32 0.2, %v1220_v33  ;;  %vm1609_vm0 = vcmp.gt.f32.partialorder %v1261_v35, 0.0  ;;  %v1641_v36 = vmul.f32 0.2, %v1261_v35 }
 0x142   : > { %v1222_v37 = vpop.f32.mrf.mxu0  ;;  %v1670_v38 = vsel %vm1606_vm13, %v1218_v28, %v1638_v29  ;;  %v1263_v32 = vpop.f32.mrf.mxu1  ;;  %v1672_v40 = vsel %vm1608_vm14, %v1259_v30, %v1640_v31 }
 0x143   : > { %v1671_v39 = vsel %vm1607_vm15, %v1220_v33, %v1639_v34  ;;  %v1673_v42 = vsel %vm1609_vm0, %v1261_v35, %v1641_v36 }
 0x144   : > { %v2042_v41 = vpack.c.bf16 %v1671_v39, %v1670_v38  ;;  %v1223_v43 = vpop.f32.mrf.mxu0  ;;  %v2043_v44 = vpack.c.bf16 %v1673_v42, %v1672_v40  ;;  %v1264_v45 = vpop.f32.mrf.mxu1 }
 0x146   : > { %1824 = vst [vmem:[%s2508_s5 + $0x30] sm:$0xff] %v2042_v41  ;;  %1825 = vst [vmem:[%s2508_s5 + $0x38] sm:$0xff] %v2043_v44 }
 0x14a   : > { %v1300_v46 = vpop.f32.mrf.mxu0  ;;  %v1341_v3 = vpop.f32.mrf.mxu1 }
 0x14b   : > { %v1642_v47 = vmul.f32 0.2, %v1300_v46  ;;  %vm1610_vm1 = vcmp.gt.f32.partialorder %v1300_v46, 0.0  ;;  %v1644_v48 = vmul.f32 0.2, %v1341_v3  ;;  %vm1612_vm2 = vcmp.gt.f32.partialorder %v1341_v3, 0.0 }
 0x14c   : > { %v1302_v49 = vpop.f32.mrf.mxu0  ;;  %v1343_v51 = vpop.f32.mrf.mxu1 }
 0x14d   : > { %vm1611_vm3 = vcmp.gt.f32.partialorder %v1302_v49, 0.0  ;;  %v1643_v50 = vmul.f32 0.2, %v1302_v49  ;;  %vm1613_vm4 = vcmp.gt.f32.partialorder %v1343_v51, 0.0  ;;  %v1645_v52 = vmul.f32 0.2, %v1343_v51 }
 0x14e   : > { %v1304_v53 = vpop.f32.mrf.mxu0  ;;  %v1674_v54 = vsel %vm1610_vm1, %v1300_v46, %v1642_v47  ;;  %v1345_v56 = vpop.f32.mrf.mxu1  ;;  %v1676_v57 = vsel %vm1612_vm2, %v1341_v3, %v1644_v48 }
 0x14f   : > { %v1675_v55 = vsel %vm1611_vm3, %v1302_v49, %v1643_v50  ;;  %v1677_v59 = vsel %vm1613_vm4, %v1343_v51, %v1645_v52 }
 0x150   : > { %v2044_v58 = vpack.c.bf16 %v1675_v55, %v1674_v54  ;;  %v1305_v60 = vpop.f32.mrf.mxu0  ;;  %v2045_v61 = vpack.c.bf16 %v1677_v59, %v1676_v57  ;;  %v1346_v62 = vpop.f32.mrf.mxu1 }
 0x152   : > { %1826 = vst [vmem:[%s2508_s5 + $0x40] sm:$0xff] %v2044_v58  ;;  %1827 = vst [vmem:[%s2508_s5 + $0x48] sm:$0xff] %v2045_v61 }
 0x156   : > { %v1382_v63 = vpop.f32.mrf.mxu0  ;;  %v1423_v1 = vpop.f32.mrf.mxu1 }
 0x157   : > { %v1646_v0 = vmul.f32 0.2, %v1382_v63  ;;  %vm1614_vm5 = vcmp.gt.f32.partialorder %v1382_v63, 0.0  ;;  %v1648_v2 = vmul.f32 0.2, %v1423_v1  ;;  %vm1616_vm6 = vcmp.gt.f32.partialorder %v1423_v1, 0.0 }
 0x158   : > { %v1384_v4 = vpop.f32.mrf.mxu0  ;;  %v1425_v6 = vpop.f32.mrf.mxu1 }
 0x159   : > { %vm1615_vm7 = vcmp.gt.f32.partialorder %v1384_v4, 0.0  ;;  %v1647_v5 = vmul.f32 0.2, %v1384_v4  ;;  %vm1617_vm8 = vcmp.gt.f32.partialorder %v1425_v6, 0.0  ;;  %v1649_v7 = vmul.f32 0.2, %v1425_v6 }
 0x15a   : > { %v1386_v8 = vpop.f32.mrf.mxu0  ;;  %v1678_v9 = vsel %vm1614_vm5, %v1382_v63, %v1646_v0  ;;  %v1427_v11 = vpop.f32.mrf.mxu1  ;;  %v1680_v12 = vsel %vm1616_vm6, %v1423_v1, %v1648_v2 }
 0x15b   : > { %v1679_v10 = vsel %vm1615_vm7, %v1384_v4, %v1647_v5  ;;  %v1681_v14 = vsel %vm1617_vm8, %v1425_v6, %v1649_v7 }
 0x15c   : > { %v2046_v13 = vpack.c.bf16 %v1679_v10, %v1678_v9  ;;  %v1387_v15 = vpop.f32.mrf.mxu0  ;;  %v2047_v16 = vpack.c.bf16 %v1681_v14, %v1680_v12  ;;  %v1428_v17 = vpop.f32.mrf.mxu1 }
 0x15e   : > { %1828 = vst [vmem:[%s2508_s5 + $0x50] sm:$0xff] %v2046_v13  ;;  %1829 = vst [vmem:[%s2508_s5 + $0x58] sm:$0xff] %v2047_v16 }
 0x162   : > { %v1464_v18 = vpop.f32.mrf.mxu0  ;;  %v1505_v20 = vpop.f32.mrf.mxu1 }
 0x163   : > { %v1650_v19 = vmul.f32 0.2, %v1464_v18  ;;  %vm1618_vm9 = vcmp.gt.f32.partialorder %v1464_v18, 0.0  ;;  %v1652_v21 = vmul.f32 0.2, %v1505_v20  ;;  %vm1620_vm10 = vcmp.gt.f32.partialorder %v1505_v20, 0.0 }
 0x164   : > { %v1466_v22 = vpop.f32.mrf.mxu0  ;;  %v1507_v24 = vpop.f32.mrf.mxu1 }
 0x165   : > { %vm1619_vm11 = vcmp.gt.f32.partialorder %v1466_v22, 0.0  ;;  %v1651_v23 = vmul.f32 0.2, %v1466_v22  ;;  %vm1621_vm12 = vcmp.gt.f32.partialorder %v1507_v24, 0.0  ;;  %v1653_v25 = vmul.f32 0.2, %v1507_v24 }
 0x166   : > { %v1468_v26 = vpop.f32.mrf.mxu0  ;;  %v1682_v27 = vsel %vm1618_vm9, %v1464_v18, %v1650_v19  ;;  %v1509_v29 = vpop.f32.mrf.mxu1  ;;  %v1684_v30 = vsel %vm1620_vm10, %v1505_v20, %v1652_v21 }
 0x167   : > { %v1683_v28 = vsel %vm1619_vm11, %v1466_v22, %v1651_v23  ;;  %v1685_v33 = vsel %vm1621_vm12, %v1507_v24, %v1653_v25 }
 0x168   : > { %v2048_v31 = vpack.c.bf16 %v1683_v28, %v1682_v27  ;;  %v1469_v34 = vpop.f32.mrf.mxu0  ;;  %v2049_v35 = vpack.c.bf16 %v1685_v33, %v1684_v30  ;;  %v1510_v36 = vpop.f32.mrf.mxu1 }
 0x16a   : > { %1830 = vst [vmem:[%s2508_s5 + $0x60] sm:$0xff] %v2048_v31  ;;  %1831 = vst [vmem:[%s2508_s5 + $0x68] sm:$0xff] %v2049_v35 }
 0x16e   : > { %v1546_v37 = vpop.f32.mrf.mxu0  ;;  %v1587_v39 = vpop.f32.mrf.mxu1 }
 0x16f   : > { %v1654_v38 = vmul.f32 0.2, %v1546_v37  ;;  %vm1622_vm13 = vcmp.gt.f32.partialorder %v1546_v37, 0.0  ;;  %v1656_v32 = vmul.f32 0.2, %v1587_v39  ;;  %vm1624_vm14 = vcmp.gt.f32.partialorder %v1587_v39, 0.0 }
 0x170   : > { %v1548_v40 = vpop.f32.mrf.mxu0  ;;  %v1589_v42 = vpop.f32.mrf.mxu1 }
 0x171   : > { %vm1623_vm15 = vcmp.gt.f32.partialorder %v1548_v40, 0.0  ;;  %v1655_v41 = vmul.f32 0.2, %v1548_v40  ;;  %vm1625_vm0 = vcmp.gt.f32.partialorder %v1589_v42, 0.0  ;;  %v1657_v43 = vmul.f32 0.2, %v1589_v42 }
 0x172   : > { %v1550_v44 = vpop.f32.mrf.mxu0  ;;  %v1686_v45 = vsel %vm1622_vm13, %v1546_v37, %v1654_v38  ;;  %v1591_v47 = vpop.f32.mrf.mxu1  ;;  %v1688_v3 = vsel %vm1624_vm14, %v1587_v39, %v1656_v32 }
 0x173   : > { %v1687_v46 = vsel %vm1623_vm15, %v1548_v40, %v1655_v41  ;;  %v1689_v49 = vsel %vm1625_vm0, %v1589_v42, %v1657_v43 }
 0x174   : > { %v2050_v48 = vpack.c.bf16 %v1687_v46, %v1686_v45  ;;  %v1551_v50 = vpop.f32.mrf.mxu0  ;;  %v2051_v51 = vpack.c.bf16 %v1689_v49, %v1688_v3  ;;  %v1592_v52 = vpop.f32.mrf.mxu1 }
 0x176   : > { %1832 = vst [vmem:[%s2508_s5 + $0x70] sm:$0xff] %v2050_v48  ;;  %1833 = vst [vmem:[%s2508_s5 + $0x78] sm:$0xff] %v2051_v51 }
 0x177 PF: > { %p9_p9 = scmp.ge.s32.totalorder %s2136_s13, 4   ;;  %s2539_s9 = smov %s2097_s10 }
 0x178   : > { %s2540_s10 = smov %s2145_s16  ;;  %s2541_s11 = smov %s2136_s13 }
 0x179   :  { %11 = sbr.rel (!%p9_p9) target bundleno = 2 (0x2), region = 86 }

// kernel: discriminator_forward.7
= control target key start
LH: loop header
LB: loop body
LE: loop exit
PB: predicated region body
PF: predicated region fallthrough
CT: control target
= control target key end

     0   :  { %v1786_v3 = vmov 0   ;;  %s2524_s1 = inlined_call_operand.vmem [shape: bf16[128,2048], index: 1, kind: input, shape index: {}]   ;;  %s2525_s0 = inlined_call_operand.vmem [shape: bf16[16,128], index: 0, kind: input, shape index: {}]   ;;  %s2526_s2 = inlined_call_operand.vmem [shape: f32[16,1], index: 2, kind: input, shape index: {}]   ;;  %s2527_s3 = inlined_call_operand.vmem [shape: f32[16,1], index: 3, kind: input, shape index: {}]   ;;  %s2528_s4 = inlined_call_operand.vmem [shape: bf16[16,2048], index: 4, kind: output, shape index: {}]  }
   0x1   :  { %v132_v0 = vld [vmem:[%s2524_s1 + $0x380] sm:$0xff]  ;;  %v133_v2 = vld [vmem:[%s2524_s1 + $0x388] sm:$0xff]  ;;  %826 = vmatprep.mubr.bf16.mxu0 %v1786_v3  ;;  %869 = vmatprep.mubr.bf16.mxu1 %v1786_v3  ;;  %v134_v63 = vld [vmem:[%s2524_s1 + $0x390] sm:$0xff] }
   0x2   :  { %v140_v1 = vld [vmem:[%s2524_s1 + $0x3c0] sm:$0xff]  ;;  %v141_v5 = vld [vmem:[%s2524_s1 + $0x3c8] sm:$0xff]  ;;  %1780 = vset.pattern.permute.xlu1 %v1786_v3  ;;  %1779 = vset.pattern.permute.xlu0 %v1786_v3 }
   0x3   :  { %v1731_v4 = vcombine.high %v132_v0, %v140_v1  ;;  %v1730_v6 = vcombine.low %v132_v0, %v140_v1  ;;  %v116_v7 = vld [vmem:[%s2524_s1 + $0x300] sm:$0xff]  ;;  %v1733_v9 = vcombine.high %v133_v2, %v141_v5  ;;  %v1732_v10 = vcombine.low %v133_v2, %v141_v5  ;;  %v117_v12 = vld [vmem:[%s2524_s1 + $0x308] sm:$0xff]  ;;  %v142_v0 = vld [vmem:[%s2524_s1 + $0x3d0] sm:$0xff] }
   0x4   :  { %v124_v8 = vld [vmem:[%s2524_s1 + $0x340] sm:$0xff]  ;;  %v125_v13 = vld [vmem:[%s2524_s1 + $0x348] sm:$0xff]  ;;  %v135_v1 = vld [vmem:[%s2524_s1 + $0x398] sm:$0xff] }
   0x5   :  { %v1715_v11 = vcombine.high %v116_v7, %v124_v8  ;;  %v100_v14 = vld [vmem:[%s2524_s1 + $0x280] sm:$0xff]  ;;  %794 = vmatprep.subr.bf16.mxu0 %v1731_v4  ;;  %v1717_v15 = vcombine.high %v117_v12, %v125_v13  ;;  %v101_v17 = vld [vmem:[%s2524_s1 + $0x288] sm:$0xff]  ;;  %837 = vmatprep.subr.bf16.mxu1 %v1733_v9  ;;  %v1714_v19 = vcombine.low %v116_v7, %v124_v8  ;;  %v143_v2 = vld [vmem:[%s2524_s1 + $0x3d8] sm:$0xff] }
   0x6   :  { %v108_v16 = vld [vmem:[%s2524_s1 + $0x2c0] sm:$0xff]  ;;  %v109_v18 = vld [vmem:[%s2524_s1 + $0x2c8] sm:$0xff]  ;;  %795 = vmatpush1.bf16.msra.mxu0 %v1730_v6  ;;  %838 = vmatpush1.bf16.msra.mxu1 %v1732_v10  ;;  %v1716_v20 = vcombine.low %v117_v12, %v125_v13  ;;  %v1735_v6 = vcombine.high %v134_v63, %v142_v0  ;;  %v1737_v7 = vcombine.high %v135_v1, %v143_v2  ;;  %v118_v8 = vld [vmem:[%s2524_s1 + $0x310] sm:$0xff] }
   0x7   :  { %796 = vmatprep.subr.bf16.mxu0 %v1715_v11  ;;  %v1699_v21 = vcombine.high %v100_v14, %v108_v16  ;;  %839 = vmatprep.subr.bf16.mxu1 %v1717_v15  ;;  %v1701_v22 = vcombine.high %v101_v17, %v109_v18  ;;  %v84_v23 = vld [vmem:[%s2524_s1 + $0x200] sm:$0xff]  ;;  %v85_v25 = vld [vmem:[%s2524_s1 + $0x208] sm:$0xff]  ;;  %v1698_v27 = vcombine.low %v100_v14, %v108_v16  ;;  %v126_v9 = vld [vmem:[%s2524_s1 + $0x350] sm:$0xff] }
   0x8   :  { %v92_v24 = vld [vmem:[%s2524_s1 + $0x240] sm:$0xff]  ;;  %v93_v26 = vld [vmem:[%s2524_s1 + $0x248] sm:$0xff]  ;;  %v1700_v28 = vcombine.low %v101_v17, %v109_v18  ;;  %v119_v11 = vld [vmem:[%s2524_s1 + $0x318] sm:$0xff]  ;;  %v1734_v13 = vcombine.low %v134_v63, %v142_v0  ;;  %v1736_v14 = vcombine.low %v135_v1, %v143_v2  ;;  %v1719_v15 = vcombine.high %v118_v8, %v126_v9 }
   0x9   :  { %v1683_v29 = vcombine.high %v84_v23, %v92_v24  ;;  %v1685_v30 = vcombine.high %v85_v25, %v93_v26  ;;  %v68_v31 = vld [vmem:[%s2524_s1 + $0x180] sm:$0xff]  ;;  %v69_v33 = vld [vmem:[%s2524_s1 + $0x188] sm:$0xff]  ;;  %v1682_v35 = vcombine.low %v84_v23, %v92_v24  ;;  %v1684_v36 = vcombine.low %v85_v25, %v93_v26  ;;  %v127_v12 = vld [vmem:[%s2524_s1 + $0x358] sm:$0xff] }
   0xa   :  { %797 = vmatpush1.bf16.msra.mxu0 %v1714_v19  ;;  %840 = vmatpush1.bf16.msra.mxu1 %v1716_v20  ;;  %v76_v32 = vld [vmem:[%s2524_s1 + $0x1c0] sm:$0xff]  ;;  %v77_v34 = vld [vmem:[%s2524_s1 + $0x1c8] sm:$0xff]  ;;  %v1721_v16 = vcombine.high %v119_v11, %v127_v12  ;;  %v102_v17 = vld [vmem:[%s2524_s1 + $0x290] sm:$0xff] }
   0xb   :  { %798 = vmatprep.subr.bf16.mxu0 %v1699_v21  ;;  %841 = vmatprep.subr.bf16.mxu1 %v1701_v22  ;;  %v1667_v37 = vcombine.high %v68_v31, %v76_v32  ;;  %v1669_v38 = vcombine.high %v69_v33, %v77_v34  ;;  %v52_v39 = vld [vmem:[%s2524_s1 + $0x100] sm:$0xff]  ;;  %v53_v41 = vld [vmem:[%s2524_s1 + $0x108] sm:$0xff]  ;;  %v1666_v43 = vcombine.low %v68_v31, %v76_v32  ;;  %v110_v18 = vld [vmem:[%s2524_s1 + $0x2d0] sm:$0xff] }
   0xc   :  { %v60_v40 = vld [vmem:[%s2524_s1 + $0x140] sm:$0xff]  ;;  %v61_v42 = vld [vmem:[%s2524_s1 + $0x148] sm:$0xff]  ;;  %v1668_v44 = vcombine.low %v69_v33, %v77_v34  ;;  %v103_v19 = vld [vmem:[%s2524_s1 + $0x298] sm:$0xff]  ;;  %v1718_v21 = vcombine.low %v118_v8, %v126_v9  ;;  %v1720_v22 = vcombine.low %v119_v11, %v127_v12  ;;  %v1703_v23 = vcombine.high %v102_v17, %v110_v18 }
   0xd   :  { %v1651_v45 = vcombine.high %v52_v39, %v60_v40  ;;  %v1653_v46 = vcombine.high %v53_v41, %v61_v42  ;;  %v36_v47 = vld [vmem:[%s2524_s1 + $0x80] sm:$0xff]  ;;  %v37_v49 = vld [vmem:[%s2524_s1 + $0x88] sm:$0xff]  ;;  %v1650_v51 = vcombine.low %v52_v39, %v60_v40  ;;  %v1652_v52 = vcombine.low %v53_v41, %v61_v42  ;;  %v111_v20 = vld [vmem:[%s2524_s1 + $0x2d8] sm:$0xff] }
   0xe   :  { %799 = vmatpush1.bf16.msra.mxu0 %v1698_v27  ;;  %842 = vmatpush1.bf16.msra.mxu1 %v1700_v28  ;;  %v44_v48 = vld [vmem:[%s2524_s1 + $0xc0] sm:$0xff]  ;;  %v45_v50 = vld [vmem:[%s2524_s1 + $0xc8] sm:$0xff]  ;;  %v1705_v24 = vcombine.high %v103_v19, %v111_v20  ;;  %v86_v25 = vld [vmem:[%s2524_s1 + $0x210] sm:$0xff] }
   0xf   :  { %800 = vmatprep.subr.bf16.mxu0 %v1683_v29  ;;  %843 = vmatprep.subr.bf16.mxu1 %v1685_v30  ;;  %v1635_v53 = vcombine.high %v36_v47, %v44_v48  ;;  %v1637_v54 = vcombine.high %v37_v49, %v45_v50  ;;  %v20_v55 = vld [vmem:[%s2524_s1] sm:$0xff]  ;;  %v21_v57 = vld [vmem:[%s2524_s1 + $0x8] sm:$0xff]  ;;  %v1634_v59 = vcombine.low %v36_v47, %v44_v48  ;;  %v94_v26 = vld [vmem:[%s2524_s1 + $0x250] sm:$0xff] }
  0x10   :  { %v28_v56 = vld [vmem:[%s2524_s1 + $0x40] sm:$0xff]  ;;  %v29_v58 = vld [vmem:[%s2524_s1 + $0x48] sm:$0xff]  ;;  %v1636_v60 = vcombine.low %v37_v49, %v45_v50  ;;  %v87_v27 = vld [vmem:[%s2524_s1 + $0x218] sm:$0xff]  ;;  %v1702_v29 = vcombine.low %v102_v17, %v110_v18  ;;  %v1704_v30 = vcombine.low %v103_v19, %v111_v20  ;;  %v1687_v31 = vcombine.high %v86_v25, %v94_v26 }
  0x11   :  { %v1619_v61 = vcombine.high %v20_v55, %v28_v56  ;;  %v1621_v62 = vcombine.high %v21_v57, %v29_v58  ;;  %v1618_v4 = vcombine.low %v20_v55, %v28_v56  ;;  %v1620_v5 = vcombine.low %v21_v57, %v29_v58  ;;  %v1933_v10 = vld [vmem:[%s2525_s0] sm:$0xff]   ;;  %v95_v28 = vld [vmem:[%s2524_s1 + $0x258] sm:$0xff]  ;;  %v70_v33 = vld [vmem:[%s2524_s1 + $0x190] sm:$0xff] }
  0x12   :  { %801 = vmatpush1.bf16.msra.mxu0 %v1682_v35  ;;  %844 = vmatpush1.bf16.msra.mxu1 %v1684_v36  ;;  %v1689_v32 = vcombine.high %v87_v27, %v95_v28  ;;  %v78_v34 = vld [vmem:[%s2524_s1 + $0x1d0] sm:$0xff]  ;;  %v71_v35 = vld [vmem:[%s2524_s1 + $0x198] sm:$0xff]  ;;  %v136_v1 = vld [vmem:[%s2524_s1 + $0x3a0] sm:$0xff] }
  0x13   :  { %802 = vmatprep.subr.bf16.mxu0 %v1667_v37  ;;  %845 = vmatprep.subr.bf16.mxu1 %v1669_v38  ;;  %v79_v36 = vld [vmem:[%s2524_s1 + $0x1d8] sm:$0xff]  ;;  %v1686_v37 = vcombine.low %v86_v25, %v94_v26  ;;  %v1688_v38 = vcombine.low %v87_v27, %v95_v28  ;;  %v1671_v39 = vcombine.high %v70_v33, %v78_v34  ;;  %v54_v41 = vld [vmem:[%s2524_s1 + $0x110] sm:$0xff]  ;;  %v144_v2 = vld [vmem:[%s2524_s1 + $0x3e0] sm:$0xff] }
  0x14   :  { %v1673_v40 = vcombine.high %v71_v35, %v79_v36  ;;  %v62_v42 = vld [vmem:[%s2524_s1 + $0x150] sm:$0xff]  ;;  %v1739_v8 = vcombine.high %v136_v1, %v144_v2  ;;  %v120_v11 = vld [vmem:[%s2524_s1 + $0x320] sm:$0xff] }
  0x15   :  { %v1655_v47 = vcombine.high %v54_v41, %v62_v42  ;;  %v38_v49 = vld [vmem:[%s2524_s1 + $0x90] sm:$0xff]  ;;  %v128_v12 = vld [vmem:[%s2524_s1 + $0x360] sm:$0xff] }
  0x16   :  { %803 = vmatpush1.bf16.msra.mxu0 %v1666_v43  ;;  %846 = vmatpush1.bf16.msra.mxu1 %v1668_v44  ;;  %v55_v43 = vld [vmem:[%s2524_s1 + $0x118] sm:$0xff]  ;;  %v46_v50 = vld [vmem:[%s2524_s1 + $0xd0] sm:$0xff]  ;;  %v1723_v17 = vcombine.high %v120_v11, %v128_v12  ;;  %v104_v19 = vld [vmem:[%s2524_s1 + $0x2a0] sm:$0xff] }
  0x17   :  { %804 = vmatprep.subr.bf16.mxu0 %v1651_v45  ;;  %847 = vmatprep.subr.bf16.mxu1 %v1653_v46  ;;  %v63_v44 = vld [vmem:[%s2524_s1 + $0x158] sm:$0xff]  ;;  %v1670_v45 = vcombine.low %v70_v33, %v78_v34  ;;  %v1672_v46 = vcombine.low %v71_v35, %v79_v36  ;;  %v1639_v55 = vcombine.high %v38_v49, %v46_v50  ;;  %v22_v57 = vld [vmem:[%s2524_s1 + $0x10] sm:$0xff]  ;;  %v112_v20 = vld [vmem:[%s2524_s1 + $0x2e0] sm:$0xff] }
  0x18   :  { %v1657_v48 = vcombine.high %v55_v43, %v63_v44  ;;  %v30_v58 = vld [vmem:[%s2524_s1 + $0x50] sm:$0xff]  ;;  %v1707_v25 = vcombine.high %v104_v19, %v112_v20  ;;  %v88_v27 = vld [vmem:[%s2524_s1 + $0x220] sm:$0xff] }
  0x19   :  { %v1623_v63 = vcombine.high %v22_v57, %v30_v58  ;;  %v96_v28 = vld [vmem:[%s2524_s1 + $0x260] sm:$0xff] }
  0x1a   :  { %805 = vmatpush1.bf16.msra.mxu0 %v1650_v51  ;;  %848 = vmatpush1.bf16.msra.mxu1 %v1652_v52  ;;  %v39_v51 = vld [vmem:[%s2524_s1 + $0x98] sm:$0xff]  ;;  %v1691_v33 = vcombine.high %v88_v27, %v96_v28  ;;  %v72_v35 = vld [vmem:[%s2524_s1 + $0x1a0] sm:$0xff] }
  0x1b   :  { %806 = vmatprep.subr.bf16.mxu0 %v1635_v53  ;;  %849 = vmatprep.subr.bf16.mxu1 %v1637_v54  ;;  %v47_v52 = vld [vmem:[%s2524_s1 + $0xd8] sm:$0xff]  ;;  %v1654_v53 = vcombine.low %v54_v41, %v62_v42  ;;  %v1656_v54 = vcombine.low %v55_v43, %v63_v44  ;;  %v80_v36 = vld [vmem:[%s2524_s1 + $0x1e0] sm:$0xff] }
  0x1c   :  { %v1641_v56 = vcombine.high %v39_v51, %v47_v52  ;;  %v1675_v41 = vcombine.high %v72_v35, %v80_v36  ;;  %v56_v43 = vld [vmem:[%s2524_s1 + $0x120] sm:$0xff] }
  0x1d   :  { %v64_v44 = vld [vmem:[%s2524_s1 + $0x160] sm:$0xff] }
  0x1e   :  { %807 = vmatpush1.bf16.msra.mxu0 %v1634_v59  ;;  %850 = vmatpush1.bf16.msra.mxu1 %v1636_v60  ;;  %v23_v59 = vld [vmem:[%s2524_s1 + $0x18] sm:$0xff] }
  0x1f   :  { %808 = vmatprep.subr.bf16.mxu0 %v1619_v61  ;;  %851 = vmatprep.subr.bf16.mxu1 %v1621_v62  ;;  %v31_v60 = vld [vmem:[%s2524_s1 + $0x58] sm:$0xff]  ;;  %v1638_v61 = vcombine.low %v38_v49, %v46_v50  ;;  %v1640_v62 = vcombine.low %v39_v51, %v47_v52  ;;  %v1659_v49 = vcombine.high %v56_v43, %v64_v44  ;;  %v40_v51 = vld [vmem:[%s2524_s1 + $0xa0] sm:$0xff] }
  0x20   :  { %v1625_v0 = vcombine.high %v23_v59, %v31_v60  ;;  %v48_v52 = vld [vmem:[%s2524_s1 + $0xe0] sm:$0xff] }
  0x22   :  { %809 = vmatpush1.bf16.msra.mxu0 %v1618_v4  ;;  %852 = vmatpush1.bf16.msra.mxu1 %v1620_v5  ;;  %v137_v4 = vld [vmem:[%s2524_s1 + $0x3a8] sm:$0xff] }
  0x23   :  { %880 = vmatprep.subr.bf16.mxu0 %v1735_v6  ;;  %923 = vmatprep.subr.bf16.mxu1 %v1737_v7  ;;  %v145_v5 = vld [vmem:[%s2524_s1 + $0x3e8] sm:$0xff]  ;;  %v1622_v6 = vcombine.low %v22_v57, %v30_v58  ;;  %v1624_v7 = vcombine.low %v23_v59, %v31_v60  ;;  %v1643_v57 = vcombine.high %v40_v51, %v48_v52  ;;  %v24_v59 = vld [vmem:[%s2524_s1 + $0x20] sm:$0xff] }
  0x24   :  { %v1741_v9 = vcombine.high %v137_v4, %v145_v5  ;;  %v32_v60 = vld [vmem:[%s2524_s1 + $0x60] sm:$0xff] }
  0x25   :  { %827 = vmatmul.mubr.bf16.vlgmr.msra.gmra.mxu0 %v1933_v10  ;;  %870 = vmatmul.mubr.bf16.vlgmr.msra.gmra.mxu1 %v1933_v10 }
  0x26   :  { %881 = vmatpush1.bf16.msra.mxu0 %v1734_v13  ;;  %924 = vmatpush1.bf16.msra.mxu1 %v1736_v14  ;;  %v121_v13 = vld [vmem:[%s2524_s1 + $0x328] sm:$0xff] }
  0x27   :  { %882 = vmatprep.subr.bf16.mxu0 %v1719_v15  ;;  %925 = vmatprep.subr.bf16.mxu1 %v1721_v16  ;;  %v129_v14 = vld [vmem:[%s2524_s1 + $0x368] sm:$0xff]  ;;  %v1738_v15 = vcombine.low %v136_v1, %v144_v2  ;;  %v1740_v16 = vcombine.low %v137_v4, %v145_v5  ;;  %v1627_v1 = vcombine.high %v24_v59, %v32_v60  ;;  %v138_v4 = vld [vmem:[%s2524_s1 + $0x3b0] sm:$0xff] }
  0x28   :  { %912 = vmatprep.mubr.bf16.mxu0 %v1786_v3  ;;  %955 = vmatprep.mubr.bf16.mxu1 %v1786_v3  ;;  %v1725_v18 = vcombine.high %v121_v13, %v129_v14  ;;  %v146_v5 = vld [vmem:[%s2524_s1 + $0x3f0] sm:$0xff] }
  0x2a   :  { %883 = vmatpush1.bf16.msra.mxu0 %v1718_v21  ;;  %926 = vmatpush1.bf16.msra.mxu1 %v1720_v22  ;;  %v105_v21 = vld [vmem:[%s2524_s1 + $0x2a8] sm:$0xff] }
  0x2b   :  { %884 = vmatprep.subr.bf16.mxu0 %v1703_v23  ;;  %927 = vmatprep.subr.bf16.mxu1 %v1705_v24  ;;  %v113_v22 = vld [vmem:[%s2524_s1 + $0x2e8] sm:$0xff]  ;;  %v1722_v23 = vcombine.low %v120_v11, %v128_v12  ;;  %v1724_v24 = vcombine.low %v121_v13, %v129_v14  ;;  %v1743_v11 = vcombine.high %v138_v4, %v146_v5  ;;  %v122_v13 = vld [vmem:[%s2524_s1 + $0x330] sm:$0xff] }
  0x2c   :  { %v1709_v26 = vcombine.high %v105_v21, %v113_v22  ;;  %v130_v14 = vld [vmem:[%s2524_s1 + $0x370] sm:$0xff] }
  0x2e   :  { %885 = vmatpush1.bf16.msra.mxu0 %v1702_v29  ;;  %928 = vmatpush1.bf16.msra.mxu1 %v1704_v30  ;;  %v89_v29 = vld [vmem:[%s2524_s1 + $0x228] sm:$0xff] }
  0x2f   :  { %886 = vmatprep.subr.bf16.mxu0 %v1687_v31  ;;  %929 = vmatprep.subr.bf16.mxu1 %v1689_v32  ;;  %v97_v30 = vld [vmem:[%s2524_s1 + $0x268] sm:$0xff]  ;;  %v1706_v31 = vcombine.low %v104_v19, %v112_v20  ;;  %v1708_v32 = vcombine.low %v105_v21, %v113_v22  ;;  %v1727_v19 = vcombine.high %v122_v13, %v130_v14  ;;  %v106_v21 = vld [vmem:[%s2524_s1 + $0x2b0] sm:$0xff] }
  0x30   :  { %v1693_v34 = vcombine.high %v89_v29, %v97_v30  ;;  %v114_v22 = vld [vmem:[%s2524_s1 + $0x2f0] sm:$0xff] }
  0x32   :  { %887 = vmatpush1.bf16.msra.mxu0 %v1686_v37  ;;  %930 = vmatpush1.bf16.msra.mxu1 %v1688_v38  ;;  %v73_v37 = vld [vmem:[%s2524_s1 + $0x1a8] sm:$0xff] }
  0x33   :  { %888 = vmatprep.subr.bf16.mxu0 %v1671_v39  ;;  %931 = vmatprep.subr.bf16.mxu1 %v1673_v40  ;;  %v81_v38 = vld [vmem:[%s2524_s1 + $0x1e8] sm:$0xff]  ;;  %v1690_v39 = vcombine.low %v88_v27, %v96_v28  ;;  %v1692_v40 = vcombine.low %v89_v29, %v97_v30  ;;  %v1711_v27 = vcombine.high %v106_v21, %v114_v22  ;;  %v90_v29 = vld [vmem:[%s2524_s1 + $0x230] sm:$0xff] }
  0x34   :  { %v1677_v42 = vcombine.high %v73_v37, %v81_v38  ;;  %v98_v30 = vld [vmem:[%s2524_s1 + $0x270] sm:$0xff] }
  0x36   :  { %889 = vmatpush1.bf16.msra.mxu0 %v1670_v45  ;;  %932 = vmatpush1.bf16.msra.mxu1 %v1672_v46  ;;  %v57_v45 = vld [vmem:[%s2524_s1 + $0x128] sm:$0xff] }
  0x37   :  { %890 = vmatprep.subr.bf16.mxu0 %v1655_v47  ;;  %933 = vmatprep.subr.bf16.mxu1 %v1657_v48  ;;  %v65_v46 = vld [vmem:[%s2524_s1 + $0x168] sm:$0xff]  ;;  %v1674_v47 = vcombine.low %v72_v35, %v80_v36  ;;  %v1676_v48 = vcombine.low %v73_v37, %v81_v38  ;;  %v1695_v35 = vcombine.high %v90_v29, %v98_v30  ;;  %v74_v37 = vld [vmem:[%s2524_s1 + $0x1b0] sm:$0xff] }
  0x38   :  { %v1661_v50 = vcombine.high %v57_v45, %v65_v46  ;;  %v82_v38 = vld [vmem:[%s2524_s1 + $0x1f0] sm:$0xff] }
  0x3a   :  { %891 = vmatpush1.bf16.msra.mxu0 %v1654_v53  ;;  %934 = vmatpush1.bf16.msra.mxu1 %v1656_v54  ;;  %v41_v53 = vld [vmem:[%s2524_s1 + $0xa8] sm:$0xff] }
  0x3b   :  { %892 = vmatprep.subr.bf16.mxu0 %v1639_v55  ;;  %935 = vmatprep.subr.bf16.mxu1 %v1641_v56  ;;  %v49_v54 = vld [vmem:[%s2524_s1 + $0xe8] sm:$0xff]  ;;  %v1658_v55 = vcombine.low %v56_v43, %v64_v44  ;;  %v1660_v56 = vcombine.low %v57_v45, %v65_v46  ;;  %v58_v44 = vld [vmem:[%s2524_s1 + $0x130] sm:$0xff]  ;;  %v59_v46 = vld [vmem:[%s2524_s1 + $0x138] sm:$0xff] }
  0x3c   :  { %v1645_v58 = vcombine.high %v41_v53, %v49_v54  ;;  %v66_v45 = vld [vmem:[%s2524_s1 + $0x170] sm:$0xff] }
  0x3e   :  { %893 = vmatpush1.bf16.msra.mxu0 %v1638_v61  ;;  %936 = vmatpush1.bf16.msra.mxu1 %v1640_v62  ;;  %v25_v61 = vld [vmem:[%s2524_s1 + $0x28] sm:$0xff] }
  0x3f   :  { %894 = vmatprep.subr.bf16.mxu0 %v1623_v63  ;;  %937 = vmatprep.subr.bf16.mxu1 %v1625_v0  ;;  %v33_v62 = vld [vmem:[%s2524_s1 + $0x68] sm:$0xff]  ;;  %v1642_v63 = vcombine.low %v40_v51, %v48_v52  ;;  %v1644_v0 = vcombine.low %v41_v53, %v49_v54  ;;  %v42_v52 = vld [vmem:[%s2524_s1 + $0xb0] sm:$0xff]  ;;  %v43_v54 = vld [vmem:[%s2524_s1 + $0xb8] sm:$0xff] }
  0x40   :  { %v1629_v2 = vcombine.high %v25_v61, %v33_v62  ;;  %v50_v53 = vld [vmem:[%s2524_s1 + $0xf0] sm:$0xff] }
  0x42   :  { %895 = vmatpush1.bf16.msra.mxu0 %v1622_v6  ;;  %938 = vmatpush1.bf16.msra.mxu1 %v1624_v7  ;;  %v139_v6 = vld [vmem:[%s2524_s1 + $0x3b8] sm:$0xff] }
  0x43   :  { %966 = vmatprep.subr.bf16.mxu0 %v1739_v8  ;;  %1009 = vmatprep.subr.bf16.mxu1 %v1741_v9  ;;  %v147_v7 = vld [vmem:[%s2524_s1 + $0x3f8] sm:$0xff]  ;;  %v1626_v8 = vcombine.low %v24_v59, %v32_v60  ;;  %v1628_v9 = vcombine.low %v25_v61, %v33_v62  ;;  %v26_v60 = vld [vmem:[%s2524_s1 + $0x30] sm:$0xff] }
  0x44   :  { %v1745_v12 = vcombine.high %v139_v6, %v147_v7  ;;  %v34_v61 = vld [vmem:[%s2524_s1 + $0x70] sm:$0xff]  ;;  %v27_v62 = vld [vmem:[%s2524_s1 + $0x38] sm:$0xff] }
  0x45   :  { %913 = vmatmul.mubr.bf16.vlgmr.msra.gmra.mxu0 %v1933_v10  ;;  %956 = vmatmul.mubr.bf16.vlgmr.msra.gmra.mxu1 %v1933_v10 }
  0x46   :  { %967 = vmatpush1.bf16.msra.mxu0 %v1738_v15  ;;  %1010 = vmatpush1.bf16.msra.mxu1 %v1740_v16  ;;  %v123_v15 = vld [vmem:[%s2524_s1 + $0x338] sm:$0xff] }
  0x47   :  { %968 = vmatprep.subr.bf16.mxu0 %v1723_v17  ;;  %1011 = vmatprep.subr.bf16.mxu1 %v1725_v18  ;;  %v131_v16 = vld [vmem:[%s2524_s1 + $0x378] sm:$0xff]  ;;  %v1742_v17 = vcombine.low %v138_v4, %v146_v5  ;;  %v1744_v18 = vcombine.low %v139_v6, %v147_v7  ;;  %v1630_v5 = vcombine.low %v26_v60, %v34_v61 }
  0x48   :  { %998 = vmatprep.mubr.bf16.mxu0 %v1786_v3  ;;  %1041 = vmatprep.mubr.bf16.mxu1 %v1786_v3  ;;  %v1729_v20 = vcombine.high %v123_v15, %v131_v16 }
  0x4a   :  { %969 = vmatpush1.bf16.msra.mxu0 %v1722_v23  ;;  %1012 = vmatpush1.bf16.msra.mxu1 %v1724_v24  ;;  %v107_v23 = vld [vmem:[%s2524_s1 + $0x2b8] sm:$0xff] }
  0x4b   :  { %970 = vmatprep.subr.bf16.mxu0 %v1707_v25  ;;  %1013 = vmatprep.subr.bf16.mxu1 %v1709_v26  ;;  %v115_v24 = vld [vmem:[%s2524_s1 + $0x2f8] sm:$0xff]  ;;  %v1726_v25 = vcombine.low %v122_v13, %v130_v14  ;;  %v1728_v26 = vcombine.low %v123_v15, %v131_v16 }
  0x4c   :  { %v1713_v28 = vcombine.high %v107_v23, %v115_v24 }
  0x4e   :  { %971 = vmatpush1.bf16.msra.mxu0 %v1706_v31  ;;  %1014 = vmatpush1.bf16.msra.mxu1 %v1708_v32  ;;  %v91_v31 = vld [vmem:[%s2524_s1 + $0x238] sm:$0xff] }
  0x4f   :  { %972 = vmatprep.subr.bf16.mxu0 %v1691_v33  ;;  %1015 = vmatprep.subr.bf16.mxu1 %v1693_v34  ;;  %v99_v32 = vld [vmem:[%s2524_s1 + $0x278] sm:$0xff]  ;;  %v1710_v33 = vcombine.low %v106_v21, %v114_v22  ;;  %v1712_v34 = vcombine.low %v107_v23, %v115_v24 }
  0x50   :  { %v1697_v36 = vcombine.high %v91_v31, %v99_v32 }
  0x52   :  { %973 = vmatpush1.bf16.msra.mxu0 %v1690_v39  ;;  %1016 = vmatpush1.bf16.msra.mxu1 %v1692_v40  ;;  %v83_v39 = vld [vmem:[%s2524_s1 + $0x1f8] sm:$0xff]  ;;  %v1694_v40 = vcombine.low %v90_v29, %v98_v30 }
  0x53   :  { %974 = vmatprep.subr.bf16.mxu0 %v1675_v41  ;;  %1017 = vmatprep.subr.bf16.mxu1 %v1677_v42  ;;  %v1696_v41 = vcombine.low %v91_v31, %v99_v32  ;;  %v1679_v42 = vcombine.high %v74_v37, %v82_v38 }
  0x56   :  { %975 = vmatpush1.bf16.msra.mxu0 %v1674_v47  ;;  %1018 = vmatpush1.bf16.msra.mxu1 %v1676_v48  ;;  %v67_v47 = vld [vmem:[%s2524_s1 + $0x178] sm:$0xff]  ;;  %v1678_v48 = vcombine.low %v74_v37, %v82_v38 }
  0x57   :  { %976 = vmatprep.subr.bf16.mxu0 %v1659_v49  ;;  %1019 = vmatprep.subr.bf16.mxu1 %v1661_v50  ;;  %v1663_v50 = vcombine.high %v58_v44, %v66_v45  ;;  %v1665_v51 = vcombine.high %v59_v46, %v67_v47 }
  0x5a   :  { %977 = vmatpush1.bf16.msra.mxu0 %v1658_v55  ;;  %1020 = vmatpush1.bf16.msra.mxu1 %v1660_v56  ;;  %v51_v55 = vld [vmem:[%s2524_s1 + $0xf8] sm:$0xff]  ;;  %v1662_v56 = vcombine.low %v58_v44, %v66_v45 }
  0x5b   :  { %978 = vmatprep.subr.bf16.mxu0 %v1643_v57  ;;  %1021 = vmatprep.subr.bf16.mxu1 %v1645_v58  ;;  %v1664_v57 = vcombine.low %v59_v46, %v67_v47  ;;  %v1647_v58 = vcombine.high %v42_v52, %v50_v53  ;;  %v1649_v59 = vcombine.high %v43_v54, %v51_v55 }
  0x5e   :  { %979 = vmatpush1.bf16.msra.mxu0 %v1642_v63  ;;  %1022 = vmatpush1.bf16.msra.mxu1 %v1644_v0  ;;  %v35_v63 = vld [vmem:[%s2524_s1 + $0x78] sm:$0xff]  ;;  %v1646_v0 = vcombine.low %v42_v52, %v50_v53 }
  0x5f   :  { %980 = vmatprep.subr.bf16.mxu0 %v1627_v1  ;;  %1023 = vmatprep.subr.bf16.mxu1 %v1629_v2  ;;  %v1648_v1 = vcombine.low %v43_v54, %v51_v55  ;;  %v1631_v2 = vcombine.high %v26_v60, %v34_v61  ;;  %v1633_v4 = vcombine.high %v27_v62, %v35_v63 }
  0x60   :  { %v1632_v6 = vcombine.low %v27_v62, %v35_v63 }
  0x62   :  { %981 = vmatpush1.bf16.msra.mxu0 %v1626_v8  ;;  %1024 = vmatpush1.bf16.msra.mxu1 %v1628_v9 }
  0x63   :  { %1052 = vmatprep.subr.bf16.mxu0 %v1743_v11  ;;  %1095 = vmatprep.subr.bf16.mxu1 %v1745_v12 }
  0x65   :  { %999 = vmatmul.mubr.bf16.vlgmr.msra.gmra.mxu0 %v1933_v10  ;;  %1042 = vmatmul.mubr.bf16.vlgmr.msra.gmra.mxu1 %v1933_v10 }
  0x66   :  { %1053 = vmatpush1.bf16.msra.mxu0 %v1742_v17  ;;  %1096 = vmatpush1.bf16.msra.mxu1 %v1744_v18 }
  0x67   :  { %1054 = vmatprep.subr.bf16.mxu0 %v1727_v19  ;;  %1097 = vmatprep.subr.bf16.mxu1 %v1729_v20 }
  0x68   :  { %1084 = vmatprep.mubr.bf16.mxu0 %v1786_v3  ;;  %1127 = vmatprep.mubr.bf16.mxu1 %v1786_v3  ;;  %v75_v3 = vld [vmem:[%s2524_s1 + $0x1b8] sm:$0xff] }
  0x69   :  { %v1681_v43 = vcombine.high %v75_v3, %v83_v39  ;;  %v1680_v49 = vcombine.low %v75_v3, %v83_v39 }
  0x6a   :  { %1055 = vmatpush1.bf16.msra.mxu0 %v1726_v25  ;;  %1098 = vmatpush1.bf16.msra.mxu1 %v1728_v26 }
  0x6b   :  { %1056 = vmatprep.subr.bf16.mxu0 %v1711_v27  ;;  %1099 = vmatprep.subr.bf16.mxu1 %v1713_v28 }
  0x6e   :  { %1057 = vmatpush1.bf16.msra.mxu0 %v1710_v33  ;;  %1100 = vmatpush1.bf16.msra.mxu1 %v1712_v34 }
  0x6f   :  { %1058 = vmatprep.subr.bf16.mxu0 %v1695_v35  ;;  %1101 = vmatprep.subr.bf16.mxu1 %v1697_v36 }
  0x72   :  { %1059 = vmatpush1.bf16.msra.mxu0 %v1694_v40  ;;  %1102 = vmatpush1.bf16.msra.mxu1 %v1696_v41 }
  0x73   :  { %1060 = vmatprep.subr.bf16.mxu0 %v1679_v42  ;;  %1103 = vmatprep.subr.bf16.mxu1 %v1681_v43 }
  0x76   :  { %1061 = vmatpush1.bf16.msra.mxu0 %v1678_v48  ;;  %1104 = vmatpush1.bf16.msra.mxu1 %v1680_v49 }
  0x77   :  { %1062 = vmatprep.subr.bf16.mxu0 %v1663_v50  ;;  %1105 = vmatprep.subr.bf16.mxu1 %v1665_v51 }
  0x7a   :  { %1063 = vmatpush1.bf16.msra.mxu0 %v1662_v56  ;;  %1106 = vmatpush1.bf16.msra.mxu1 %v1664_v57 }
  0x7b   :  { %1064 = vmatprep.subr.bf16.mxu0 %v1647_v58  ;;  %1107 = vmatprep.subr.bf16.mxu1 %v1649_v59 }
  0x7e   :  { %1065 = vmatpush1.bf16.msra.mxu0 %v1646_v0  ;;  %1108 = vmatpush1.bf16.msra.mxu1 %v1648_v1 }
  0x7f   :  { %1066 = vmatprep.subr.bf16.mxu0 %v1631_v2  ;;  %1109 = vmatprep.subr.bf16.mxu1 %v1633_v4 }
  0x82   :  { %1067 = vmatpush1.bf16.msra.mxu0 %v1630_v5  ;;  %1110 = vmatpush1.bf16.msra.mxu1 %v1632_v6 }
  0x85   :  { %1085 = vmatmul.mubr.bf16.vlgmr.msra.gmra.mxu0 %v1933_v10  ;;  %1128 = vmatmul.mubr.bf16.vlgmr.msra.gmra.mxu1 %v1933_v10 }
  0xe5   :  { %v2219_v7 = vpop.f32.mrf.mxu0  ;;  %v2223_v9 = vpop.f32.mrf.mxu1 }
  0xe6   :  { %v1175_v12 = vmul.f32 %v2219_v7, %v2219_v7  ;;  %v1177_v16 = vmul.f32 %v2223_v9, %v2223_v9 }
  0xe7   :  { %v2221_v8 = vpop.f32.mrf.mxu0  ;;  %v2233_v15 = vpop.f32.mrf.mxu1 }
  0xe8   :  { %v1176_v13 = vmul.f32 %v2221_v8, %v2221_v8  ;;  %v1138_v14 = vadd.f32 %v2221_v8, %v2219_v7  ;;  %v1178_v22 = vmul.f32 %v2233_v15, %v2233_v15 }
  0xe9   :  { %v2225_v11 = vpop.f32.mrf.mxu0  ;;  %v2242_v20 = vpop.f32.mrf.mxu1 }
  0xea   :  { %v1207_v17 = vadd.f32 %v1176_v13, %v1175_v12  ;;  %v1139_v19 = vadd.f32 %v1138_v14, %v2223_v9 }
  0xeb   :  { %v2235_v10 = vpop.f32.mrf.mxu0  ;;  %v2251_v26 = vpop.f32.mrf.mxu1 }
  0xec   :  { %v1155_v21 = vadd.f32 %v2235_v10, %v2225_v11  ;;  %v1208_v23 = vadd.f32 %v1207_v17, %v1177_v16  ;;  %v1140_v25 = vadd.f32 %v1139_v19, %v2233_v15 }
  0xee   :  { %v1156_v27 = vadd.f32 %v1155_v21, %v2242_v20  ;;  %v1209_v29 = vadd.f32 %v1208_v23, %v1178_v22 }
  0xf0   :  { %v1157_v33 = vadd.f32 %v1156_v27, %v2251_v26 }
 0x105   :  { %v2239_v18 = vpop.f32.mrf.mxu0  ;;  %v2257_v31 = vpop.f32.mrf.mxu1 }
 0x106   :  { %v1179_v28 = vmul.f32 %v2239_v18, %v2239_v18  ;;  %v1141_v30 = vadd.f32 %v1140_v25, %v2239_v18  ;;  %v1181_v39 = vmul.f32 %v2257_v31, %v2257_v31 }
 0x107   :  { %v2248_v24 = vpop.f32.mrf.mxu0  ;;  %v2265_v37 = vpop.f32.mrf.mxu1 }
 0x108   :  { %v1210_v34 = vadd.f32 %v1209_v29, %v1179_v28  ;;  %v1180_v35 = vmul.f32 %v2248_v24, %v2248_v24  ;;  %v1142_v36 = vadd.f32 %v1141_v30, %v2248_v24  ;;  %v1182_v45 = vmul.f32 %v2265_v37, %v2265_v37 }
 0x109   :  { %v2259_v32 = vpop.f32.mrf.mxu0  ;;  %v2275_v43 = vpop.f32.mrf.mxu1 }
 0x10a   :  { %v1158_v38 = vadd.f32 %v1157_v33, %v2259_v32  ;;  %v1211_v40 = vadd.f32 %v1210_v34, %v1180_v35  ;;  %v1143_v42 = vadd.f32 %v1142_v36, %v2257_v31 }
 0x10b   :  { %v2268_v3 = vpop.f32.mrf.mxu0  ;;  %v2283_v49 = vpop.f32.mrf.mxu1 }
 0x10c   :  { %v1159_v44 = vadd.f32 %v1158_v38, %v2268_v3  ;;  %v1212_v46 = vadd.f32 %v1211_v40, %v1181_v39  ;;  %v1144_v48 = vadd.f32 %v1143_v42, %v2265_v37 }
 0x10e   :  { %v1160_v50 = vadd.f32 %v1159_v44, %v2275_v43  ;;  %v1213_v52 = vadd.f32 %v1212_v46, %v1182_v45 }
 0x110   :  { %v1161_v56 = vadd.f32 %v1160_v50, %v2283_v49 }
 0x125   :  { %v2272_v41 = vpop.f32.mrf.mxu0  ;;  %v2289_v54 = vpop.f32.mrf.mxu1 }
 0x126   :  { %v1183_v51 = vmul.f32 %v2272_v41, %v2272_v41  ;;  %v1145_v53 = vadd.f32 %v1144_v48, %v2272_v41  ;;  %v1185_v63 = vmul.f32 %v2289_v54, %v2289_v54 }
 0x127   :  { %v2280_v47 = vpop.f32.mrf.mxu0  ;;  %v2297_v60 = vpop.f32.mrf.mxu1 }
 0x128   :  { %v1214_v57 = vadd.f32 %v1213_v52, %v1183_v51  ;;  %v1184_v58 = vmul.f32 %v2280_v47, %v2280_v47  ;;  %v1146_v59 = vadd.f32 %v1145_v53, %v2280_v47  ;;  %v1186_v5 = vmul.f32 %v2297_v60, %v2297_v60 }
 0x129   :  { %v2291_v55 = vpop.f32.mrf.mxu0  ;;  %v2305_v2 = vpop.f32.mrf.mxu1  ;;  %v1192_v53 = vmul.f32 %v2235_v10, %v2235_v10 }
 0x12a   :  { %v1162_v61 = vadd.f32 %v1161_v56, %v2291_v55  ;;  %v1215_v0 = vadd.f32 %v1214_v57, %v1184_v58  ;;  %v1147_v1 = vadd.f32 %v1146_v59, %v2289_v54  ;;  %v1191_v56 = vmul.f32 %v2225_v11, %v2225_v11 }
 0x12b   :  { %v2300_v62 = vpop.f32.mrf.mxu0  ;;  %v2311_v13 = vpop.f32.mrf.mxu1  ;;  %v1193_v58 = vmul.f32 %v2242_v20, %v2242_v20 }
 0x12c   :  { %v1163_v4 = vadd.f32 %v1162_v61, %v2300_v62  ;;  %v1216_v6 = vadd.f32 %v1215_v0, %v1185_v63  ;;  %v1148_v12 = vadd.f32 %v1147_v1, %v2297_v60  ;;  %v1224_v57 = vadd.f32 %v1192_v53, %v1191_v56  ;;  %v1318_v1 = vld [vmem:[%s2526_s2 + $0x8] sm:$0xff] }
 0x12d   :  { %v1194_v61 = vmul.f32 %v2251_v26, %v2251_v26  ;;  %v1195_v63 = vmul.f32 %v2259_v32, %v2259_v32 }
 0x12e   :  { %v1164_v14 = vadd.f32 %v1163_v4, %v2305_v2  ;;  %v1217_v17 = vadd.f32 %v1216_v6, %v1186_v5  ;;  %v1225_v59 = vadd.f32 %v1224_v57, %v1193_v58  ;;  %v1196_v5 = vmul.f32 %v2268_v3, %v2268_v3  ;;  %v1361_v6 = vld [vmem:[%s2527_s3] sm:$0xff]  ;;  %v1362_v57 = vld [vmem:[%s2527_s3 + $0x8] sm:$0xff] }
 0x130   :  { %v1165_v25 = vadd.f32 %v1164_v14, %v2311_v13  ;;  %v1226_v0 = vadd.f32 %v1225_v59, %v1194_v61  ;;  %v1317_v14 = vld [vmem:[%s2526_s2] sm:$0xff] }
 0x132   :  { %v1227_v4 = vadd.f32 %v1226_v0, %v1195_v63 }
 0x145   :  { %v2314_v16 = vpop.f32.mrf.mxu0  ;;  %v2319_v22 = vpop.f32.mrf.mxu1 }
 0x146   :  { %v1149_v19 = vadd.f32 %v1148_v12, %v2314_v16  ;;  %v1187_v21 = vmul.f32 %v2314_v16, %v2314_v16  ;;  %v1189_v33 = vmul.f32 %v2319_v22, %v2319_v22  ;;  %v1228_v12 = vadd.f32 %v1227_v4, %v1196_v5 }
 0x147   :  { %v2321_v23 = vpop.f32.mrf.mxu0  ;;  %v2327_v30 = vpop.f32.mrf.mxu1 }
 0x148   :  { %v1218_v27 = vadd.f32 %v1217_v17, %v1187_v21  ;;  %v1150_v28 = vadd.f32 %v1149_v19, %v2321_v23  ;;  %v1188_v29 = vmul.f32 %v2321_v23, %v2321_v23  ;;  %v1190_v45 = vmul.f32 %v2327_v30, %v2327_v30 }
 0x149   :  { %v2331_v34 = vpop.f32.mrf.mxu0  ;;  %v2335_v39 = vpop.f32.mrf.mxu1  ;;  %v1197_v17 = vmul.f32 %v2275_v43, %v2275_v43  ;;  %v1198_v21 = vmul.f32 %v2283_v49, %v2283_v49 }
 0x14a   :  { %v1166_v35 = vadd.f32 %v1165_v25, %v2331_v34  ;;  %v1151_v36 = vadd.f32 %v1150_v28, %v2319_v22  ;;  %v1219_v38 = vadd.f32 %v1218_v27, %v1188_v29  ;;  %v1199_v25 = vmul.f32 %v2291_v55, %v2291_v55 }
 0x14b   :  { %v2337_v40 = vpop.f32.mrf.mxu0  ;;  %v2344_v50 = vpop.f32.mrf.mxu1  ;;  %v1229_v19 = vadd.f32 %v1228_v12, %v1197_v17  ;;  %v1200_v29 = vmul.f32 %v2300_v62, %v2300_v62 }
 0x14c   :  { %v1167_v42 = vadd.f32 %v1166_v35, %v2337_v40  ;;  %v1152_v44 = vadd.f32 %v1151_v36, %v2327_v30  ;;  %v1220_v46 = vadd.f32 %v1219_v38, %v1189_v33  ;;  %v1201_v35 = vmul.f32 %v2305_v2, %v2305_v2 }
 0x14d   :  { %v1230_v27 = vadd.f32 %v1229_v19, %v1198_v21  ;;  %v1202_v38 = vmul.f32 %v2311_v13, %v2311_v13  ;;  %v1206_v53 = vmul.f32 %v2344_v50, %v2344_v50 }
 0x14e   :  { %1153 = vadd.xlane.f32.xlu0 %v1152_v44  ;;  %v1168_v48 = vadd.f32 %v1167_v42, %v2335_v39  ;;  %v1221_v51 = vadd.f32 %v1220_v46, %v1190_v45  ;;  %v1203_v42 = vmul.f32 %v2331_v34, %v2331_v34  ;;  %v1204_v46 = vmul.f32 %v2337_v40, %v2337_v40 }
 0x14f   :  { %v1231_v28 = vadd.f32 %v1230_v27, %v1199_v25 }
 0x150   :  { %v1169_v52 = vadd.f32 %v1168_v48, %v2344_v50  ;;  %1222 = vadd.xlane.f32.xlu1 %v1221_v51  ;;  %v1205_v51 = vmul.f32 %v2335_v39, %v2335_v39 }
 0x151   :  { %v1232_v33 = vadd.f32 %v1231_v28, %v1200_v29 }
 0x152   :  { %1170 = vadd.xlane.f32.xlu0 %v1169_v52 }
 0x153   :  { %v1233_v36 = vadd.f32 %v1232_v33, %v1201_v35 }
 0x155   :  { %v1234_v44 = vadd.f32 %v1233_v36, %v1202_v38 }
 0x157   :  { %v1235_v45 = vadd.f32 %v1234_v44, %v1203_v42 }
 0x159   :  { %v1236_v48 = vadd.f32 %v1235_v45, %v1204_v46 }
 0x15b   :  { %v1237_v52 = vadd.f32 %v1236_v48, %v1205_v51 }
 0x15d   :  { %v1238_v56 = vadd.f32 %v1237_v52, %v1206_v53 }
 0x161   :  { %1326 = vperm.xlu1 %1780, %v1318_v1  }
 0x165   :  { %1365 = vperm.xlu1 %1780, %v1361_v6  }
 0x168   :  { %1321 = vperm.xlu0 %1779, %v1317_v14  }
 0x189   :  { %1239 = vadd.xlane.f32.xlu1 %v1238_v56 }
 0x19a   :  { %1370 = vperm.xlu1 %1780, %v1362_v57  }
 0x1d7   :  { %v1154_v58 = vpop.xlane.xlu0 %1153 }
 0x1d8   :  { %v1173_v59 = vmul.f32 0.00048828125, %v1154_v58 }
 0x1d9   :  { %v1223_v61 = vpop.xlane.xlu1 %1222 }
 0x1da   :  { %v1243_v63 = vmul.f32 %v1173_v59, %v1173_v59  ;;  %v1241_v0 = vmul.f32 0.00048828125, %v1223_v61  ;;  %v1249_v6 = vsub.f32 %v2219_v7, %v1173_v59  ;;  %v1250_v12 = vsub.f32 %v2221_v8, %v1173_v59 }
 0x1db   :  { %v1251_v14 = vsub.f32 %v2223_v9, %v1173_v59  ;;  %v1252_v17 = vsub.f32 %v2233_v15, %v1173_v59  ;;  %v2395_v19 = vpop.xlane.xlu0 %1170  ;;  %v1253_v21 = vsub.f32 %v2239_v18, %v1173_v59  ;;  %v1254_v25 = vsub.f32 %v2248_v24, %v1173_v59 }
 0x1dc   :  { %v1245_v1 = vsub.f32 %v1241_v0, %v1243_v63  ;;  %v1255_v27 = vsub.f32 %v2257_v31, %v1173_v59  ;;  %v1256_v28 = vsub.f32 %v2265_v37, %v1173_v59  ;;  %v1257_v29 = vsub.f32 %v2272_v41, %v1173_v59 }
 0x1dd   :  { %v1258_v7 = vsub.f32 %v2280_v47, %v1173_v59  ;;  %v1259_v8 = vsub.f32 %v2289_v54, %v1173_v59  ;;  %v1260_v9 = vsub.f32 %v2297_v60, %v1173_v59  ;;  %v1261_v15 = vsub.f32 %v2314_v16, %v1173_v59  ;;  %v2409_v41 = vpop.permute.xlu1 %1326 }
 0x1de   :  { %v1247_v4 = vmax.f32 %v1245_v1, 0.0  ;;  %v1262_v35 = vsub.f32 %v2321_v23, %v1173_v59  ;;  %v1263_v18 = vsub.f32 %v2319_v22, %v1173_v59  ;;  %v1264_v24 = vsub.f32 %v2327_v30, %v1173_v59 }
 0x1e0   :  { %v1281_v5 = vadd.f32 1e-05, %v1247_v4 }
 0x1e2   :  { %1782 = vrsqrt.f32 %v1281_v5 }
 0x1e3   :  { %v1322_v60 = vpop.permute.xlu0 %1321 }
 0x1ef   :  { %v1783_v33 = vpop.eup %1782 }
 0x1f0   :  { %v1285_v31 = vmul.f32 %v1783_v33, %v1249_v6  ;;  %v1286_v36 = vmul.f32 %v1783_v33, %v1250_v12  ;;  %v1287_v37 = vmul.f32 %v1783_v33, %v1251_v14  ;;  %v1288_v38 = vmul.f32 %v1783_v33, %v1252_v17  ;;  %v1366_v6 = vpop.permute.xlu1 %1365 }
 0x1f1   :  { %v1289_v47 = vmul.f32 %v1783_v33, %v1253_v21  ;;  %v1290_v42 = vmul.f32 %v1783_v33, %v1254_v25  ;;  %v1291_v54 = vmul.f32 %v1783_v33, %v1255_v27  ;;  %v1292_v44 = vmul.f32 %v1783_v33, %v1256_v28 }
 0x1f2   :  { %v1293_v45 = vmul.f32 %v1783_v33, %v1257_v29  ;;  %v1294_v46 = vmul.f32 %v1783_v33, %v1258_v7  ;;  %v1295_v16 = vmul.f32 %v1783_v33, %v1259_v8  ;;  %v1296_v48 = vmul.f32 %v1783_v33, %v1260_v9 }
 0x1f3   :  { %v1297_v23 = vmul.f32 %v1783_v33, %v1261_v15  ;;  %v1298_v51 = vmul.f32 %v1783_v33, %v1262_v35  ;;  %v1299_v22 = vmul.f32 %v1783_v33, %v1263_v18  ;;  %v1300_v52 = vmul.f32 %v1783_v33, %v1264_v24 }
 0x1f4   :  { %v1329_v30 = vmul.f32 %v1322_v60, %v1285_v31  ;;  %v1330_v53 = vmul.f32 %v1322_v60, %v1286_v36  ;;  %v1331_v56 = vmul.f32 %v1322_v60, %v1287_v37  ;;  %v1332_v57 = vmul.f32 %v1322_v60, %v1288_v38 }
 0x1f5   :  { %v1333_v58 = vmul.f32 %v1322_v60, %v1289_v47  ;;  %v1334_v59 = vmul.f32 %v1322_v60, %v1290_v42  ;;  %v1335_v61 = vmul.f32 %v1322_v60, %v1291_v54  ;;  %v1336_v63 = vmul.f32 %v1322_v60, %v1292_v44 }
 0x1f6   :  { %v1337_v0 = vmul.f32 %v1322_v60, %v1293_v45  ;;  %v1338_v1 = vmul.f32 %v1322_v60, %v1294_v46  ;;  %v1339_v4 = vmul.f32 %v1322_v60, %v1295_v16  ;;  %v1340_v5 = vmul.f32 %v1322_v60, %v1296_v48 }
 0x1f7   :  { %v1341_v12 = vmul.f32 %v1322_v60, %v1297_v23  ;;  %v1342_v14 = vmul.f32 %v1322_v60, %v1298_v51  ;;  %v1343_v17 = vmul.f32 %v1322_v60, %v1299_v22  ;;  %v1344_v21 = vmul.f32 %v1322_v60, %v1300_v52 }
 0x1f8   :  { %v1373_v25 = vadd.f32 %v1366_v6, %v1329_v30  ;;  %v1374_v27 = vadd.f32 %v1366_v6, %v1330_v53  ;;  %v1375_v28 = vadd.f32 %v1366_v6, %v1331_v56  ;;  %v1376_v29 = vadd.f32 %v1366_v6, %v1332_v57 }
 0x1f9   :  { %v1377_v7 = vadd.f32 %v1366_v6, %v1333_v58  ;;  %v1378_v8 = vadd.f32 %v1366_v6, %v1334_v59  ;;  %v1379_v9 = vadd.f32 %v1366_v6, %v1335_v61  ;;  %v1380_v33 = vadd.f32 %v1366_v6, %v1336_v63 }
 0x1fa   :  { %v1381_v15 = vadd.f32 %v1366_v6, %v1337_v0  ;;  %v1382_v35 = vadd.f32 %v1366_v6, %v1338_v1  ;;  %v1383_v18 = vadd.f32 %v1366_v6, %v1339_v4  ;;  %v1384_v24 = vadd.f32 %v1366_v6, %v1340_v5 }
 0x1fb   :  { %v1385_v31 = vadd.f32 %v1366_v6, %v1341_v12  ;;  %v1386_v36 = vadd.f32 %v1366_v6, %v1342_v14  ;;  %v1387_v37 = vadd.f32 %v1366_v6, %v1343_v17  ;;  %v1388_v38 = vadd.f32 %v1366_v6, %v1344_v21 }
 0x1fc   :  { %vm1405_vm0 = vcmp.gt.f32.partialorder %v1373_v25, 0.0  ;;  %vm1406_vm1 = vcmp.gt.f32.partialorder %v1374_v27, 0.0  ;;  %vm1407_vm2 = vcmp.gt.f32.partialorder %v1375_v28, 0.0  ;;  %vm1408_vm3 = vcmp.gt.f32.partialorder %v1376_v29, 0.0 }
 0x1fd   :  { %vm1409_vm4 = vcmp.gt.f32.partialorder %v1377_v7, 0.0  ;;  %vm1410_vm5 = vcmp.gt.f32.partialorder %v1378_v8, 0.0  ;;  %vm1411_vm6 = vcmp.gt.f32.partialorder %v1379_v9, 0.0  ;;  %vm1412_vm7 = vcmp.gt.f32.partialorder %v1380_v33, 0.0 }
 0x1fe   :  { %vm1413_vm8 = vcmp.gt.f32.partialorder %v1381_v15, 0.0  ;;  %vm1414_vm9 = vcmp.gt.f32.partialorder %v1382_v35, 0.0  ;;  %vm1415_vm10 = vcmp.gt.f32.partialorder %v1383_v18, 0.0  ;;  %vm1416_vm11 = vcmp.gt.f32.partialorder %v1384_v24, 0.0 }
 0x1ff   :  { %vm1417_vm12 = vcmp.gt.f32.partialorder %v1385_v31, 0.0  ;;  %vm1418_vm13 = vcmp.gt.f32.partialorder %v1386_v36, 0.0  ;;  %vm1419_vm14 = vcmp.gt.f32.partialorder %v1387_v37, 0.0  ;;  %vm1420_vm15 = vcmp.gt.f32.partialorder %v1388_v38, 0.0 }
 0x200   :  { %v1437_v47 = vmul.f32 0.2, %v1373_v25  ;;  %v1438_v42 = vmul.f32 0.2, %v1374_v27  ;;  %v1439_v54 = vmul.f32 0.2, %v1375_v28 }
 0x201   :  { %v1440_v44 = vmul.f32 0.2, %v1376_v29  ;;  %v1441_v60 = vmul.f32 0.2, %v1377_v7  ;;  %v1442_v45 = vmul.f32 0.2, %v1378_v8 }
 0x202   :  { %v1443_v46 = vmul.f32 0.2, %v1379_v9  ;;  %v1444_v16 = vmul.f32 0.2, %v1380_v33  ;;  %v1445_v48 = vmul.f32 0.2, %v1381_v15  ;;  %v1469_v23 = vsel %vm1405_vm0, %v1373_v25, %v1437_v47 }
 0x203   :  { %v1446_v51 = vmul.f32 0.2, %v1382_v35  ;;  %v1447_v22 = vmul.f32 0.2, %v1383_v18  ;;  %v1448_v52 = vmul.f32 0.2, %v1384_v24  ;;  %v1470_v30 = vsel %vm1406_vm1, %v1374_v27, %v1438_v42 }
 0x204   :  { %v1449_v53 = vmul.f32 0.2, %v1385_v31  ;;  %v1450_v56 = vmul.f32 0.2, %v1386_v36  ;;  %v1451_v57 = vmul.f32 0.2, %v1387_v37  ;;  %v1471_v58 = vsel %vm1407_vm2, %v1375_v28, %v1439_v54 }
 0x205   :  { %v1452_v59 = vmul.f32 0.2, %v1388_v38  ;;  %v1472_v61 = vsel %vm1408_vm3, %v1376_v29, %v1440_v44  ;;  %v1473_v63 = vsel %vm1409_vm4, %v1377_v7, %v1441_v60  ;;  %v1474_v0 = vsel %vm1410_vm5, %v1378_v8, %v1442_v45 }
 0x206   :  { %v1475_v1 = vsel %vm1411_vm6, %v1379_v9, %v1443_v46  ;;  %v1476_v4 = vsel %vm1412_vm7, %v1380_v33, %v1444_v16  ;;  %v1477_v5 = vsel %vm1413_vm8, %v1381_v15, %v1445_v48  ;;  %v1478_v6 = vsel %vm1414_vm9, %v1382_v35, %v1446_v51 }
 0x207   :  { %v1479_v12 = vsel %vm1415_vm10, %v1383_v18, %v1447_v22  ;;  %v1480_v14 = vsel %vm1416_vm11, %v1384_v24, %v1448_v52  ;;  %v1481_v17 = vsel %vm1417_vm12, %v1385_v31, %v1449_v53  ;;  %v1482_v21 = vsel %vm1418_vm13, %v1386_v36, %v1450_v56 }
 0x208   :  { %v1483_v25 = vsel %vm1419_vm14, %v1387_v37, %v1451_v57  ;;  %v1484_v27 = vsel %vm1420_vm15, %v1388_v38, %v1452_v59  ;;  %v1762_v28 = vpack.c.bf16 %v1470_v30, %v1469_v23  ;;  %v1763_v29 = vpack.c.bf16 %v1472_v61, %v1471_v58 }
 0x209   :  { %v1764_v7 = vpack.c.bf16 %v1474_v0, %v1473_v63  ;;  %v1765_v8 = vpack.c.bf16 %v1476_v4, %v1475_v1  ;;  %v1766_v9 = vpack.c.bf16 %v1478_v6, %v1477_v5  ;;  %v1767_v33 = vpack.c.bf16 %v1480_v14, %v1479_v12 }
 0x20a   :  { %v1768_v15 = vpack.c.bf16 %v1482_v21, %v1481_v17  ;;  %v1769_v35 = vpack.c.bf16 %v1484_v27, %v1483_v25  ;;  %1597 = vst [vmem:[%s2528_s4] sm:$0xff] %v1762_v28  ;;  %1598 = vst [vmem:[%s2528_s4 + $0x8] sm:$0xff] %v1763_v29  ;;  %v1174_v18 = vmul.f32 0.00048828125, %v2395_v19 }
 0x20b   :  { %1599 = vst [vmem:[%s2528_s4 + $0x10] sm:$0xff] %v1764_v7  ;;  %1600 = vst [vmem:[%s2528_s4 + $0x18] sm:$0xff] %v1765_v8 }
 0x20c   :  { %1601 = vst [vmem:[%s2528_s4 + $0x20] sm:$0xff] %v1766_v9  ;;  %1602 = vst [vmem:[%s2528_s4 + $0x28] sm:$0xff] %v1767_v33  ;;  %v1244_v36 = vmul.f32 %v1174_v18, %v1174_v18  ;;  %v1265_v42 = vsub.f32 %v2225_v11, %v1174_v18  ;;  %v1266_v54 = vsub.f32 %v2235_v10, %v1174_v18 }
 0x20d   :  { %1603 = vst [vmem:[%s2528_s4 + $0x30] sm:$0xff] %v1768_v15  ;;  %1604 = vst [vmem:[%s2528_s4 + $0x38] sm:$0xff] %v1769_v35  ;;  %v1267_v44 = vsub.f32 %v2242_v20, %v1174_v18  ;;  %v1268_v60 = vsub.f32 %v2251_v26, %v1174_v18  ;;  %v1269_v45 = vsub.f32 %v2259_v32, %v1174_v18 }
 0x20e   :  { %v1270_v46 = vsub.f32 %v2268_v3, %v1174_v18  ;;  %v1271_v19 = vsub.f32 %v2275_v43, %v1174_v18  ;;  %v1272_v16 = vsub.f32 %v2283_v49, %v1174_v18  ;;  %v1273_v48 = vsub.f32 %v2291_v55, %v1174_v18 }
 0x20f   :  { %v1274_v23 = vsub.f32 %v2300_v62, %v1174_v18  ;;  %v1275_v11 = vsub.f32 %v2305_v2, %v1174_v18  ;;  %v1276_v10 = vsub.f32 %v2311_v13, %v1174_v18  ;;  %v1277_v20 = vsub.f32 %v2331_v34, %v1174_v18 }
 0x210   :  { %v1278_v26 = vsub.f32 %v2337_v40, %v1174_v18  ;;  %v1279_v32 = vsub.f32 %v2335_v39, %v1174_v18  ;;  %v1280_v3 = vsub.f32 %v2344_v50, %v1174_v18 }
 0x212   :  { %v1240_v24 = vpop.xlane.xlu1 %1239 }
 0x213   :  { %v1242_v31 = vmul.f32 0.00048828125, %v1240_v24 }
 0x215   :  { %v1246_v37 = vsub.f32 %v1242_v31, %v1244_v36 }
 0x216   :  { %v1371_v21 = vpop.permute.xlu1 %1370 }
 0x217   :  { %v1248_v38 = vmax.f32 %v1246_v37, 0.0 }
 0x219   :  { %v1282_v47 = vadd.f32 1e-05, %v1248_v38 }
 0x21b   :  { %1784 = vrsqrt.f32 %v1282_v47 }
 0x228   :  { %v1785_v51 = vpop.eup %1784 }
 0x229   :  { %v1301_v43 = vmul.f32 %v1785_v51, %v1265_v42  ;;  %v1302_v22 = vmul.f32 %v1785_v51, %v1266_v54  ;;  %v1303_v49 = vmul.f32 %v1785_v51, %v1267_v44  ;;  %v1304_v52 = vmul.f32 %v1785_v51, %v1268_v60 }
 0x22a   :  { %v1305_v55 = vmul.f32 %v1785_v51, %v1269_v45  ;;  %v1306_v30 = vmul.f32 %v1785_v51, %v1270_v46  ;;  %v1307_v62 = vmul.f32 %v1785_v51, %v1271_v19  ;;  %v1308_v53 = vmul.f32 %v1785_v51, %v1272_v16 }
 0x22b   :  { %v1309_v2 = vmul.f32 %v1785_v51, %v1273_v48  ;;  %v1310_v56 = vmul.f32 %v1785_v51, %v1274_v23  ;;  %v1311_v13 = vmul.f32 %v1785_v51, %v1275_v11  ;;  %v1312_v57 = vmul.f32 %v1785_v51, %v1276_v10 }
 0x22c   :  { %v1313_v58 = vmul.f32 %v1785_v51, %v1277_v20  ;;  %v1314_v34 = vmul.f32 %v1785_v51, %v1278_v26  ;;  %v1315_v59 = vmul.f32 %v1785_v51, %v1279_v32  ;;  %v1316_v40 = vmul.f32 %v1785_v51, %v1280_v3 }
 0x22d   :  { %v1345_v39 = vmul.f32 %v2409_v41, %v1301_v43  ;;  %v1346_v50 = vmul.f32 %v2409_v41, %v1302_v22  ;;  %v1347_v61 = vmul.f32 %v2409_v41, %v1303_v49  ;;  %v1348_v63 = vmul.f32 %v2409_v41, %v1304_v52 }
 0x22e   :  { %v1349_v0 = vmul.f32 %v2409_v41, %v1305_v55  ;;  %v1350_v1 = vmul.f32 %v2409_v41, %v1306_v30  ;;  %v1351_v4 = vmul.f32 %v2409_v41, %v1307_v62  ;;  %v1352_v5 = vmul.f32 %v2409_v41, %v1308_v53 }
 0x22f   :  { %v1353_v6 = vmul.f32 %v2409_v41, %v1309_v2  ;;  %v1354_v12 = vmul.f32 %v2409_v41, %v1310_v56  ;;  %v1355_v14 = vmul.f32 %v2409_v41, %v1311_v13  ;;  %v1356_v17 = vmul.f32 %v2409_v41, %v1312_v57 }
 0x230   :  { %v1357_v25 = vmul.f32 %v2409_v41, %v1313_v58  ;;  %v1358_v27 = vmul.f32 %v2409_v41, %v1314_v34  ;;  %v1359_v28 = vmul.f32 %v2409_v41, %v1315_v59  ;;  %v1360_v29 = vmul.f32 %v2409_v41, %v1316_v40 }
 0x231   :  { %v1389_v7 = vadd.f32 %v1371_v21, %v1345_v39  ;;  %v1390_v8 = vadd.f32 %v1371_v21, %v1346_v50  ;;  %v1391_v9 = vadd.f32 %v1371_v21, %v1347_v61  ;;  %v1392_v33 = vadd.f32 %v1371_v21, %v1348_v63 }
 0x232   :  { %v1393_v15 = vadd.f32 %v1371_v21, %v1349_v0  ;;  %v1394_v35 = vadd.f32 %v1371_v21, %v1350_v1  ;;  %v1395_v18 = vadd.f32 %v1371_v21, %v1351_v4  ;;  %v1396_v24 = vadd.f32 %v1371_v21, %v1352_v5 }
 0x233   :  { %v1397_v31 = vadd.f32 %v1371_v21, %v1353_v6  ;;  %v1398_v36 = vadd.f32 %v1371_v21, %v1354_v12  ;;  %v1399_v37 = vadd.f32 %v1371_v21, %v1355_v14  ;;  %v1400_v38 = vadd.f32 %v1371_v21, %v1356_v17 }
 0x234   :  { %v1401_v47 = vadd.f32 %v1371_v21, %v1357_v25  ;;  %v1402_v42 = vadd.f32 %v1371_v21, %v1358_v27  ;;  %v1403_v54 = vadd.f32 %v1371_v21, %v1359_v28  ;;  %v1404_v44 = vadd.f32 %v1371_v21, %v1360_v29 }
 0x235   :  { %vm1421_vm0 = vcmp.gt.f32.partialorder %v1389_v7, 0.0  ;;  %vm1422_vm1 = vcmp.gt.f32.partialorder %v1390_v8, 0.0  ;;  %vm1423_vm2 = vcmp.gt.f32.partialorder %v1391_v9, 0.0  ;;  %vm1424_vm3 = vcmp.gt.f32.partialorder %v1392_v33, 0.0 }
 0x236   :  { %vm1425_vm4 = vcmp.gt.f32.partialorder %v1393_v15, 0.0  ;;  %vm1426_vm5 = vcmp.gt.f32.partialorder %v1394_v35, 0.0  ;;  %vm1427_vm6 = vcmp.gt.f32.partialorder %v1395_v18, 0.0  ;;  %vm1428_vm7 = vcmp.gt.f32.partialorder %v1396_v24, 0.0 }
 0x237   :  { %vm1429_vm8 = vcmp.gt.f32.partialorder %v1397_v31, 0.0  ;;  %vm1430_vm9 = vcmp.gt.f32.partialorder %v1398_v36, 0.0  ;;  %vm1431_vm10 = vcmp.gt.f32.partialorder %v1399_v37, 0.0  ;;  %vm1432_vm11 = vcmp.gt.f32.partialorder %v1400_v38, 0.0 }
 0x238   :  { %vm1433_vm12 = vcmp.gt.f32.partialorder %v1401_v47, 0.0  ;;  %vm1434_vm13 = vcmp.gt.f32.partialorder %v1402_v42, 0.0  ;;  %vm1435_vm14 = vcmp.gt.f32.partialorder %v1403_v54, 0.0  ;;  %vm1436_vm15 = vcmp.gt.f32.partialorder %v1404_v44, 0.0 }
 0x239   :  { %v1453_v41 = vmul.f32 0.2, %v1389_v7  ;;  %v1454_v60 = vmul.f32 0.2, %v1390_v8  ;;  %v1455_v45 = vmul.f32 0.2, %v1391_v9 }
 0x23a   :  { %v1456_v46 = vmul.f32 0.2, %v1392_v33  ;;  %v1457_v19 = vmul.f32 0.2, %v1393_v15  ;;  %v1458_v16 = vmul.f32 0.2, %v1394_v35 }
 0x23b   :  { %v1459_v48 = vmul.f32 0.2, %v1395_v18  ;;  %v1460_v23 = vmul.f32 0.2, %v1396_v24  ;;  %v1461_v11 = vmul.f32 0.2, %v1397_v31  ;;  %v1485_v10 = vsel %vm1421_vm0, %v1389_v7, %v1453_v41 }
 0x23c   :  { %v1462_v51 = vmul.f32 0.2, %v1398_v36  ;;  %v1463_v20 = vmul.f32 0.2, %v1399_v37  ;;  %v1464_v26 = vmul.f32 0.2, %v1400_v38  ;;  %v1486_v32 = vsel %vm1422_vm1, %v1390_v8, %v1454_v60 }
 0x23d   :  { %v1465_v3 = vmul.f32 0.2, %v1401_v47  ;;  %v1466_v43 = vmul.f32 0.2, %v1402_v42  ;;  %v1467_v22 = vmul.f32 0.2, %v1403_v54  ;;  %v1487_v49 = vsel %vm1423_vm2, %v1391_v9, %v1455_v45 }
 0x23e   :  { %v1468_v52 = vmul.f32 0.2, %v1404_v44  ;;  %v1488_v55 = vsel %vm1424_vm3, %v1392_v33, %v1456_v46  ;;  %v1489_v30 = vsel %vm1425_vm4, %v1393_v15, %v1457_v19  ;;  %v1490_v62 = vsel %vm1426_vm5, %v1394_v35, %v1458_v16 }
 0x23f   :  { %v1491_v53 = vsel %vm1427_vm6, %v1395_v18, %v1459_v48  ;;  %v1492_v2 = vsel %vm1428_vm7, %v1396_v24, %v1460_v23  ;;  %v1493_v56 = vsel %vm1429_vm8, %v1397_v31, %v1461_v11  ;;  %v1494_v13 = vsel %vm1430_vm9, %v1398_v36, %v1462_v51 }
 0x240   :  { %v1495_v57 = vsel %vm1431_vm10, %v1399_v37, %v1463_v20  ;;  %v1496_v58 = vsel %vm1432_vm11, %v1400_v38, %v1464_v26  ;;  %v1497_v34 = vsel %vm1433_vm12, %v1401_v47, %v1465_v3  ;;  %v1498_v59 = vsel %vm1434_vm13, %v1402_v42, %v1466_v43 }
 0x241   :  { %v1499_v40 = vsel %vm1435_vm14, %v1403_v54, %v1467_v22  ;;  %v1500_v39 = vsel %vm1436_vm15, %v1404_v44, %v1468_v52  ;;  %v1770_v50 = vpack.c.bf16 %v1486_v32, %v1485_v10  ;;  %v1771_v61 = vpack.c.bf16 %v1488_v55, %v1487_v49 }
 0x242   :  { %v1772_v63 = vpack.c.bf16 %v1490_v62, %v1489_v30  ;;  %v1773_v0 = vpack.c.bf16 %v1492_v2, %v1491_v53  ;;  %v1774_v1 = vpack.c.bf16 %v1494_v13, %v1493_v56  ;;  %v1775_v4 = vpack.c.bf16 %v1496_v58, %v1495_v57 }
 0x243   :  { %v1776_v5 = vpack.c.bf16 %v1498_v59, %v1497_v34  ;;  %v1777_v6 = vpack.c.bf16 %v1500_v39, %v1499_v40  ;;  %1605 = vst [vmem:[%s2528_s4 + $0x40] sm:$0xff] %v1770_v50  ;;  %1606 = vst [vmem:[%s2528_s4 + $0x48] sm:$0xff] %v1771_v61 }
 0x244   :  { %1607 = vst [vmem:[%s2528_s4 + $0x50] sm:$0xff] %v1772_v63  ;;  %1608 = vst [vmem:[%s2528_s4 + $0x58] sm:$0xff] %v1773_v0 }
 0x245   :  { %1609 = vst [vmem:[%s2528_s4 + $0x60] sm:$0xff] %v1774_v1  ;;  %1610 = vst [vmem:[%s2528_s4 + $0x68] sm:$0xff] %v1775_v4 }
 0x246   :  { %1611 = vst [vmem:[%s2528_s4 + $0x70] sm:$0xff] %v1776_v5  ;;  %1612 = vst [vmem:[%s2528_s4 + $0x78] sm:$0xff] %v1777_v6 }

// kernel: discriminator_forward.8
= control target key start
LH: loop header
LB: loop body
LE: loop exit
PB: predicated region body
PF: predicated region fallthrough
CT: control target
= control target key end

     0   :  { %s1417_s1 = inlined_call_operand.vmem [shape: bf16[256,512], index: 1, kind: input, shape index: {}]   ;;  %s1418_s0 = inlined_call_operand.vmem [shape: bf16[32,256], index: 0, kind: input, shape index: {}]   ;;  %s1419_s2 = inlined_call_operand.vmem [shape: f32[32,1], index: 2, kind: input, shape index: {}]   ;;  %s1420_s3 = inlined_call_operand.vmem [shape: f32[32,1], index: 3, kind: input, shape index: {}]   ;;  %s1421_s4 = inlined_call_operand.vmem [shape: bf16[32,512], index: 4, kind: output, shape index: {}]  }
   0x1   :  { %v923_v0 = vld [vmem:[%s1417_s1 + $0xe4] ss:$16 sps:$4 sm:$0xff]   ;;  %v925_v1 = vld [vmem:[%s1417_s1 + $0xec] ss:$16 sps:$4 sm:$0xff]   ;;  %v927_v2 = vld [vmem:[%s1417_s1 + $0xe0] ss:$16 sps:$4 sm:$0xff]  }
   0x2   :  { %425 = vmatprep.subr.bf16.mxu0 %v923_v0  ;;  %v928_v3 = vld [vmem:[%s1417_s1 + $0xe8] ss:$16 sps:$4 sm:$0xff]   ;;  %478 = vmatprep.subr.bf16.mxu1 %v925_v1  ;;  %v929_v4 = vld [vmem:[%s1417_s1 + $0xc4] ss:$16 sps:$4 sm:$0xff]   ;;  %v931_v5 = vld [vmem:[%s1417_s1 + $0xcc] ss:$16 sps:$4 sm:$0xff]  }
   0x3   :  { %426 = vmatpush1.bf16.msra.mxu0 %v927_v2  ;;  %479 = vmatpush1.bf16.msra.mxu1 %v928_v3  ;;  %v933_v6 = vld [vmem:[%s1417_s1 + $0xc0] ss:$16 sps:$4 sm:$0xff]   ;;  %v934_v7 = vld [vmem:[%s1417_s1 + $0xc8] ss:$16 sps:$4 sm:$0xff]   ;;  %v935_v8 = vld [vmem:[%s1417_s1 + $0xa4] ss:$16 sps:$4 sm:$0xff]  }
   0x4   :  { %427 = vmatprep.subr.bf16.mxu0 %v929_v4  ;;  %480 = vmatprep.subr.bf16.mxu1 %v931_v5  ;;  %v937_v9 = vld [vmem:[%s1417_s1 + $0xac] ss:$16 sps:$4 sm:$0xff]   ;;  %v939_v10 = vld [vmem:[%s1417_s1 + $0xa0] ss:$16 sps:$4 sm:$0xff]   ;;  %v940_v11 = vld [vmem:[%s1417_s1 + $0xa8] ss:$16 sps:$4 sm:$0xff]  }
   0x5   :  { %v941_v12 = vld [vmem:[%s1417_s1 + $0x84] ss:$16 sps:$4 sm:$0xff]   ;;  %v943_v13 = vld [vmem:[%s1417_s1 + $0x8c] ss:$16 sps:$4 sm:$0xff]   ;;  %v945_v14 = vld [vmem:[%s1417_s1 + $0x80] ss:$16 sps:$4 sm:$0xff]  }
   0x6   :  { %v946_v15 = vld [vmem:[%s1417_s1 + $0x88] ss:$16 sps:$4 sm:$0xff]   ;;  %v947_v16 = vld [vmem:[%s1417_s1 + $0x64] ss:$16 sps:$4 sm:$0xff]   ;;  %v949_v17 = vld [vmem:[%s1417_s1 + $0x6c] ss:$16 sps:$4 sm:$0xff]  }
   0x7   :  { %428 = vmatpush1.bf16.msra.mxu0 %v933_v6  ;;  %481 = vmatpush1.bf16.msra.mxu1 %v934_v7  ;;  %v951_v18 = vld [vmem:[%s1417_s1 + $0x60] ss:$16 sps:$4 sm:$0xff]   ;;  %v952_v19 = vld [vmem:[%s1417_s1 + $0x68] ss:$16 sps:$4 sm:$0xff]   ;;  %v953_v20 = vld [vmem:[%s1417_s1 + $0x44] ss:$16 sps:$4 sm:$0xff]  }
   0x8   :  { %429 = vmatprep.subr.bf16.mxu0 %v935_v8  ;;  %482 = vmatprep.subr.bf16.mxu1 %v937_v9  ;;  %v955_v21 = vld [vmem:[%s1417_s1 + $0x4c] ss:$16 sps:$4 sm:$0xff]   ;;  %v957_v22 = vld [vmem:[%s1417_s1 + $0x40] ss:$16 sps:$4 sm:$0xff]   ;;  %v958_v23 = vld [vmem:[%s1417_s1 + $0x48] ss:$16 sps:$4 sm:$0xff]  }
   0x9   :  { %v959_v24 = vld [vmem:[%s1417_s1 + $0x24] ss:$16 sps:$4 sm:$0xff]   ;;  %v961_v25 = vld [vmem:[%s1417_s1 + $0x2c] ss:$16 sps:$4 sm:$0xff]   ;;  %v963_v26 = vld [vmem:[%s1417_s1 + $0x20] ss:$16 sps:$4 sm:$0xff]  }
   0xa   :  { %v964_v27 = vld [vmem:[%s1417_s1 + $0x28] ss:$16 sps:$4 sm:$0xff]   ;;  %v965_v28 = vld [vmem:[%s1417_s1 + $0x4] ss:$16 sps:$4 sm:$0xff]   ;;  %v967_v29 = vld [vmem:[%s1417_s1 + $0xc] ss:$16 sps:$4 sm:$0xff]  }
   0xb   :  { %430 = vmatpush1.bf16.msra.mxu0 %v939_v10  ;;  %483 = vmatpush1.bf16.msra.mxu1 %v940_v11  ;;  %v969_v30 = vld [vmem:[%s1417_s1] ss:$16 sps:$4 sm:$0xff]   ;;  %v970_v31 = vld [vmem:[%s1417_s1 + $0x8] ss:$16 sps:$4 sm:$0xff]   ;;  %v971_v32 = vld [vmem:[%s1417_s1 + $0x1e4] ss:$16 sps:$4 sm:$0xff]  }
   0xc   :  { %431 = vmatprep.subr.bf16.mxu0 %v941_v12  ;;  %484 = vmatprep.subr.bf16.mxu1 %v943_v13  ;;  %v973_v33 = vld [vmem:[%s1417_s1 + $0x1ec] ss:$16 sps:$4 sm:$0xff]   ;;  %v975_v34 = vld [vmem:[%s1417_s1 + $0x1e0] ss:$16 sps:$4 sm:$0xff]   ;;  %v976_v35 = vld [vmem:[%s1417_s1 + $0x1e8] ss:$16 sps:$4 sm:$0xff]  }
   0xd   :  { %v977_v36 = vld [vmem:[%s1417_s1 + $0x1c4] ss:$16 sps:$4 sm:$0xff]   ;;  %v979_v37 = vld [vmem:[%s1417_s1 + $0x1cc] ss:$16 sps:$4 sm:$0xff]   ;;  %v981_v38 = vld [vmem:[%s1417_s1 + $0x1c0] ss:$16 sps:$4 sm:$0xff]  }
   0xe   :  { %v982_v39 = vld [vmem:[%s1417_s1 + $0x1c8] ss:$16 sps:$4 sm:$0xff]   ;;  %v983_v40 = vld [vmem:[%s1417_s1 + $0x1a4] ss:$16 sps:$4 sm:$0xff]   ;;  %v985_v41 = vld [vmem:[%s1417_s1 + $0x1ac] ss:$16 sps:$4 sm:$0xff]  }
   0xf   :  { %432 = vmatpush1.bf16.msra.mxu0 %v945_v14  ;;  %485 = vmatpush1.bf16.msra.mxu1 %v946_v15  ;;  %v987_v42 = vld [vmem:[%s1417_s1 + $0x1a0] ss:$16 sps:$4 sm:$0xff]   ;;  %v988_v43 = vld [vmem:[%s1417_s1 + $0x1a8] ss:$16 sps:$4 sm:$0xff]   ;;  %v989_v44 = vld [vmem:[%s1417_s1 + $0x184] ss:$16 sps:$4 sm:$0xff]  }
  0x10   :  { %433 = vmatprep.subr.bf16.mxu0 %v947_v16  ;;  %486 = vmatprep.subr.bf16.mxu1 %v949_v17  ;;  %v991_v45 = vld [vmem:[%s1417_s1 + $0x18c] ss:$16 sps:$4 sm:$0xff]   ;;  %v993_v46 = vld [vmem:[%s1417_s1 + $0x180] ss:$16 sps:$4 sm:$0xff]   ;;  %v994_v48 = vld [vmem:[%s1417_s1 + $0x188] ss:$16 sps:$4 sm:$0xff]  }
  0x11   :  { %v1021_v47 = vld [vmem:[%s1418_s0 + $0x4] ss:$8 sps:$4 sm:$0xff]   ;;  %v999_v51 = vld [vmem:[%s1417_s1 + $0x160] ss:$16 sps:$4 sm:$0xff]   ;;  %v1000_v52 = vld [vmem:[%s1417_s1 + $0x168] ss:$16 sps:$4 sm:$0xff]  }
  0x12   :  { %v995_v49 = vld [vmem:[%s1417_s1 + $0x164] ss:$16 sps:$4 sm:$0xff]   ;;  %v997_v50 = vld [vmem:[%s1417_s1 + $0x16c] ss:$16 sps:$4 sm:$0xff]   ;;  %457 = vmatprep.mubr.bf16.mxu0 %v1021_v47  ;;  %510 = vmatprep.mubr.bf16.mxu1 %v1021_v47  ;;  %v1005_v55 = vld [vmem:[%s1417_s1 + $0x140] ss:$16 sps:$4 sm:$0xff]  }
  0x13   :  { %434 = vmatpush1.bf16.msra.mxu0 %v951_v18  ;;  %487 = vmatpush1.bf16.msra.mxu1 %v952_v19  ;;  %v1001_v53 = vld [vmem:[%s1417_s1 + $0x144] ss:$16 sps:$4 sm:$0xff]   ;;  %v1003_v54 = vld [vmem:[%s1417_s1 + $0x14c] ss:$16 sps:$4 sm:$0xff]   ;;  %v1006_v56 = vld [vmem:[%s1417_s1 + $0x148] ss:$16 sps:$4 sm:$0xff]  }
  0x14   :  { %435 = vmatprep.subr.bf16.mxu0 %v953_v20  ;;  %488 = vmatprep.subr.bf16.mxu1 %v955_v21  ;;  %v1007_v57 = vld [vmem:[%s1417_s1 + $0x124] ss:$16 sps:$4 sm:$0xff]   ;;  %v1009_v58 = vld [vmem:[%s1417_s1 + $0x12c] ss:$16 sps:$4 sm:$0xff]   ;;  %v1011_v59 = vld [vmem:[%s1417_s1 + $0x120] ss:$16 sps:$4 sm:$0xff]  }
  0x15   :  { %v1012_v60 = vld [vmem:[%s1417_s1 + $0x128] ss:$16 sps:$4 sm:$0xff]   ;;  %v1013_v61 = vld [vmem:[%s1417_s1 + $0x104] ss:$16 sps:$4 sm:$0xff]   ;;  %v1015_v62 = vld [vmem:[%s1417_s1 + $0x10c] ss:$16 sps:$4 sm:$0xff]  }
  0x16   :  { %v1017_v63 = vld [vmem:[%s1417_s1 + $0x100] ss:$16 sps:$4 sm:$0xff]   ;;  %v1018_v0 = vld [vmem:[%s1417_s1 + $0x108] ss:$16 sps:$4 sm:$0xff]   ;;  %v1022_v2 = vld [vmem:[%s1418_s0 + $0x14] ss:$8 sps:$4 sm:$0xff]  }
  0x17   :  { %436 = vmatpush1.bf16.msra.mxu0 %v957_v22  ;;  %489 = vmatpush1.bf16.msra.mxu1 %v958_v23  ;;  %v1019_v1 = vld [vmem:[%s1418_s0] ss:$8 sps:$4 sm:$0xff]   ;;  %v1024_v3 = vld [vmem:[%s1418_s0 + $0x10] ss:$8 sps:$4 sm:$0xff]   ;;  %v1033_v4 = vmov 0  }
  0x18   :  { %437 = vmatprep.subr.bf16.mxu0 %v959_v24  ;;  %490 = vmatprep.subr.bf16.mxu1 %v961_v25  ;;  %v649_v47 = vld [vmem:[%s1419_s2 + $0x8] sm:$0xff] }
  0x19   :  { %922 = vset.pattern.permute.xlu1 %v1033_v4  ;;  %921 = vset.pattern.permute.xlu0 %v1033_v4  ;;  %v691_v4 = vld [vmem:[%s1420_s3 + $0x18] sm:$0xff] }
  0x1b   :  { %438 = vmatpush1.bf16.msra.mxu0 %v963_v26  ;;  %491 = vmatpush1.bf16.msra.mxu1 %v964_v27 }
  0x1c   :  { %439 = vmatprep.subr.bf16.mxu0 %v965_v28  ;;  %492 = vmatprep.subr.bf16.mxu1 %v967_v29 }
  0x1f   :  { %440 = vmatpush1.bf16.msra.mxu0 %v969_v30  ;;  %493 = vmatpush1.bf16.msra.mxu1 %v970_v31 }
  0x20   :  { %441 = vmatprep.subr.bf16.mxu0 %v971_v32  ;;  %494 = vmatprep.subr.bf16.mxu1 %v973_v33 }
  0x23   :  { %442 = vmatpush2.bf16.msra.mxu0 %v975_v34  ;;  %495 = vmatpush2.bf16.msra.mxu1 %v976_v35 }
  0x24   :  { %443 = vmatprep.subr.bf16.mxu0 %v977_v36  ;;  %496 = vmatprep.subr.bf16.mxu1 %v979_v37 }
  0x27   :  { %444 = vmatpush2.bf16.msra.mxu0 %v981_v38  ;;  %497 = vmatpush2.bf16.msra.mxu1 %v982_v39 }
  0x28   :  { %445 = vmatprep.subr.bf16.mxu0 %v983_v40  ;;  %498 = vmatprep.subr.bf16.mxu1 %v985_v41 }
  0x2b   :  { %446 = vmatpush2.bf16.msra.mxu0 %v987_v42  ;;  %499 = vmatpush2.bf16.msra.mxu1 %v988_v43 }
  0x2c   :  { %447 = vmatprep.subr.bf16.mxu0 %v989_v44  ;;  %500 = vmatprep.subr.bf16.mxu1 %v991_v45 }
  0x2f   :  { %448 = vmatpush2.bf16.msra.mxu0 %v993_v46  ;;  %501 = vmatpush2.bf16.msra.mxu1 %v994_v48  ;;  %v650_v48 = vld [vmem:[%s1419_s2 + $0x10] sm:$0xff] }
  0x30   :  { %449 = vmatprep.subr.bf16.mxu0 %v995_v49  ;;  %502 = vmatprep.subr.bf16.mxu1 %v997_v50  ;;  %v648_v49 = vld [vmem:[%s1419_s2] sm:$0xff]  ;;  %v651_v50 = vld [vmem:[%s1419_s2 + $0x18] sm:$0xff] }
  0x33   :  { %450 = vmatpush2.bf16.msra.mxu0 %v999_v51  ;;  %503 = vmatpush2.bf16.msra.mxu1 %v1000_v52  ;;  %v688_v51 = vld [vmem:[%s1420_s3] sm:$0xff]  ;;  %v689_v52 = vld [vmem:[%s1420_s3 + $0x8] sm:$0xff] }
  0x34   :  { %451 = vmatprep.subr.bf16.mxu0 %v1001_v53  ;;  %504 = vmatprep.subr.bf16.mxu1 %v1003_v54  ;;  %v690_v53 = vld [vmem:[%s1420_s3 + $0x10] sm:$0xff] }
  0x37   :  { %452 = vmatpush2.bf16.msra.mxu0 %v1005_v55  ;;  %505 = vmatpush2.bf16.msra.mxu1 %v1006_v56 }
  0x38   :  { %453 = vmatprep.subr.bf16.mxu0 %v1007_v57  ;;  %506 = vmatprep.subr.bf16.mxu1 %v1009_v58 }
  0x3b   :  { %454 = vmatpush2.bf16.msra.mxu0 %v1011_v59  ;;  %507 = vmatpush2.bf16.msra.mxu1 %v1012_v60 }
  0x3c   :  { %455 = vmatprep.subr.bf16.mxu0 %v1013_v61  ;;  %508 = vmatprep.subr.bf16.mxu1 %v1015_v62 }
  0x3f   :  { %456 = vmatpush2.bf16.msra.mxu0 %v1017_v63  ;;  %509 = vmatpush2.bf16.msra.mxu1 %v1018_v0 }
  0x42   :  { %458 = vmatmul.mubr.bf16.vlgmr.msra.gmra.mxu0 %v1019_v1  ;;  %511 = vmatmul.mubr.bf16.vlgmr.msra.gmra.mxu1 %v1019_v1 }
  0x43   :  { %467 = vmatprep.mubr.bf16.mxu0 %v1022_v2  ;;  %520 = vmatprep.mubr.bf16.mxu1 %v1022_v2 }
  0x4a   :  { %468 = vmatmul.mubr.bf16.gmra.mxu0 %v1024_v3  ;;  %521 = vmatmul.mubr.bf16.gmra.mxu1 %v1024_v3 }
 0x102   :  { %v1263_v5 = vpop.f32.mrf.mxu0  ;;  %v1265_v6 = vpop.f32.mrf.mxu1 }
 0x103   :  { %v556_v9 = vmul.f32 %v1263_v5, %v1263_v5  ;;  %v558_v10 = vmul.f32 %v1265_v6, %v1265_v6 }
 0x104   :  { %v1267_v7 = vpop.f32.mrf.mxu0  ;;  %v1269_v8 = vpop.f32.mrf.mxu1 }
 0x105   :  { %v531_v11 = vadd.f32 %v1267_v7, %v1263_v5  ;;  %v557_v12 = vmul.f32 %v1267_v7, %v1267_v7  ;;  %v559_v25 = vmul.f32 %v1269_v8, %v1269_v8 }
 0x106   :  { %v1279_v13 = vpop.f32.mrf.mxu0  ;;  %v1281_v14 = vpop.f32.mrf.mxu1 }
 0x107   :  { %v532_v15 = vadd.f32 %v531_v11, %v1265_v6  ;;  %v572_v16 = vadd.f32 %v557_v12, %v556_v9  ;;  %v560_v17 = vmul.f32 %v1279_v13, %v1279_v13  ;;  %v562_v26 = vmul.f32 %v1281_v14, %v1281_v14 }
 0x108   :  { %v1286_v18 = vpop.f32.mrf.mxu0  ;;  %v1288_v19 = vpop.f32.mrf.mxu1 }
 0x109   :  { %v536_v20 = vadd.f32 %v1286_v18, %v1279_v13  ;;  %v561_v21 = vmul.f32 %v1286_v18, %v1286_v18  ;;  %v533_v22 = vadd.f32 %v532_v15, %v1269_v8  ;;  %v573_v23 = vadd.f32 %v572_v16, %v558_v10 }
 0x10a   :  { %v1295_v24 = vpop.f32.mrf.mxu0  ;;  %v1303_v29 = vpop.f32.mrf.mxu1  ;;  %v563_v32 = vmul.f32 %v1288_v19, %v1288_v19 }
 0x10b   :  { %534 = vadd.xlane.f32.xlu0 %v533_v22  ;;  %v577_v27 = vadd.f32 %v561_v21, %v560_v17  ;;  %v564_v28 = vmul.f32 %v1295_v24, %v1295_v24  ;;  %v574_v31 = vadd.f32 %v573_v23, %v559_v25  ;;  %v537_v36 = vadd.f32 %v536_v20, %v1281_v14 }
 0x10c   :  { %v1305_v30 = vpop.f32.mrf.mxu0  ;;  %v566_v37 = vmul.f32 %v1303_v29, %v1303_v29  ;;  %v1317_v40 = vpop.f32.mrf.mxu1 }
 0x10d   :  { %v541_v33 = vadd.f32 %v1305_v30, %v1295_v24  ;;  %v565_v34 = vmul.f32 %v1305_v30, %v1305_v30  ;;  %v578_v35 = vadd.f32 %v577_v27, %v562_v26  ;;  %v538_v42 = vadd.f32 %v537_v36, %v1288_v19 }
 0x10e   :  { %v567_v43 = vmul.f32 %v1317_v40, %v1317_v40  ;;  %v1344_v54 = vpop.f32.mrf.mxu0  ;;  %v1354_v59 = vpop.f32.mrf.mxu1 }
 0x10f   :  { %575 = vadd.xlane.f32.xlu0 %v574_v31  ;;  %v579_v38 = vadd.f32 %v578_v35, %v563_v32  ;;  %v542_v39 = vadd.f32 %v541_v33, %v1303_v29  ;;  %v582_v41 = vadd.f32 %v565_v34, %v564_v28  ;;  %v568_v58 = vmul.f32 %v1344_v54, %v1344_v54 }
 0x110   :  { %v1346_v55 = vpop.f32.mrf.mxu0  ;;  %v570_v62 = vmul.f32 %v1354_v59, %v1354_v59  ;;  %v1359_v63 = vpop.f32.mrf.mxu1 }
 0x111   :  { %580 = vadd.xlane.f32.xlu1 %v579_v38  ;;  %v583_v44 = vadd.f32 %v582_v41, %v566_v37  ;;  %v543_v45 = vadd.f32 %v542_v39, %v1317_v40  ;;  %v546_v56 = vadd.f32 %v1346_v55, %v1344_v54  ;;  %v569_v57 = vmul.f32 %v1346_v55, %v1346_v55 }
 0x112   :  { %v571_v2 = vmul.f32 %v1359_v63, %v1359_v63 }
 0x113   :  { %539 = vadd.xlane.f32.xlu0 %v538_v42  ;;  %v584_v46 = vadd.f32 %v583_v44, %v567_v43  ;;  %v587_v60 = vadd.f32 %v569_v57, %v568_v58  ;;  %v547_v61 = vadd.f32 %v546_v56, %v1354_v59 }
 0x115   :  { %544 = vadd.xlane.f32.xlu1 %v543_v45  ;;  %v548_v0 = vadd.f32 %v547_v61, %v1359_v63  ;;  %v588_v1 = vadd.f32 %v587_v60, %v570_v62 }
 0x117   :  { %585 = vadd.xlane.f32.xlu0 %v584_v46  ;;  %v589_v3 = vadd.f32 %v588_v1, %v571_v2 }
 0x126   :  { %659 = vperm.xlu1 %922, %v649_v47  }
 0x12a   :  { %664 = vperm.xlu1 %922, %v650_v48  }
 0x12d   :  { %654 = vperm.xlu0 %921, %v648_v49  }
 0x12e   :  { %669 = vperm.xlu1 %922, %v651_v50  }
 0x132   :  { %694 = vperm.xlu1 %922, %v688_v51  }
 0x136   :  { %699 = vperm.xlu1 %922, %v689_v52  }
 0x13a   :  { %704 = vperm.xlu1 %922, %v690_v53  }
 0x15e   :  { %549 = vadd.xlane.f32.xlu1 %v548_v0 }
 0x162   :  { %590 = vadd.xlane.f32.xlu1 %v589_v3 }
 0x173   :  { %709 = vperm.xlu1 %922, %v691_v4  }
 0x194   :  { %v535_v9 = vpop.xlane.xlu0 %534 }
 0x195   :  { %v552_v10 = vmul.f32 0.001953125, %v535_v9 }
 0x197   :  { %v596_v12 = vmul.f32 %v552_v10, %v552_v10  ;;  %v608_v44 = vsub.f32 %v1263_v5, %v552_v10  ;;  %v609_v45 = vsub.f32 %v1267_v7, %v552_v10  ;;  %v610_v46 = vsub.f32 %v1265_v6, %v552_v10 }
 0x198   :  { %v576_v11 = vpop.xlane.xlu0 %575  ;;  %v611_v47 = vsub.f32 %v1269_v8, %v552_v10 }
 0x199   :  { %v592_v15 = vmul.f32 0.001953125, %v576_v11 }
 0x19a   :  { %v581_v16 = vpop.xlane.xlu1 %580 }
 0x19b   :  { %v600_v17 = vsub.f32 %v592_v15, %v596_v12  ;;  %v593_v26 = vmul.f32 0.001953125, %v581_v16 }
 0x19c   :  { %v540_v20 = vpop.xlane.xlu0 %539 }
 0x19d   :  { %v604_v21 = vmax.f32 %v600_v17, 0.0  ;;  %v553_v22 = vmul.f32 0.001953125, %v540_v20 }
 0x19e   :  { %v545_v23 = vpop.xlane.xlu1 %544 }
 0x19f   :  { %v624_v25 = vadd.f32 1e-05, %v604_v21  ;;  %v597_v27 = vmul.f32 %v553_v22, %v553_v22  ;;  %v554_v28 = vmul.f32 0.001953125, %v545_v23  ;;  %v612_v62 = vsub.f32 %v1279_v13, %v553_v22 }
 0x1a0   :  { %v586_v31 = vpop.xlane.xlu0 %585  ;;  %v613_v5 = vsub.f32 %v1286_v18, %v553_v22  ;;  %v614_v7 = vsub.f32 %v1281_v14, %v553_v22  ;;  %v615_v6 = vsub.f32 %v1288_v19, %v553_v22 }
 0x1a1   :  { %1025 = vrsqrt.f32 %v624_v25  ;;  %v601_v32 = vsub.f32 %v593_v26, %v597_v27  ;;  %v594_v33 = vmul.f32 0.001953125, %v586_v31  ;;  %v598_v34 = vmul.f32 %v554_v28, %v554_v28 }
 0x1a2   :  { %v660_v35 = vpop.permute.xlu1 %659  ;;  %v616_v4 = vsub.f32 %v1295_v24, %v554_v28  ;;  %v617_v9 = vsub.f32 %v1305_v30, %v554_v28  ;;  %v618_v10 = vsub.f32 %v1303_v29, %v554_v28  ;;  %v619_v11 = vsub.f32 %v1317_v40, %v554_v28 }
 0x1a3   :  { %v605_v36 = vmax.f32 %v601_v32, 0.0  ;;  %v602_v37 = vsub.f32 %v594_v33, %v598_v34 }
 0x1a5   :  { %v625_v38 = vadd.f32 1e-05, %v605_v36  ;;  %v606_v39 = vmax.f32 %v602_v37, 0.0 }
 0x1a6   :  { %v665_v41 = vpop.permute.xlu1 %664 }
 0x1a7   :  { %1027 = vrsqrt.f32 %v625_v38  ;;  %v626_v42 = vadd.f32 1e-05, %v606_v39 }
 0x1a8   :  { %v655_v49 = vpop.permute.xlu0 %654 }
 0x1a9   :  { %1029 = vrsqrt.f32 %v626_v42 }
 0x1aa   :  { %v1367_v43 = vpop.permute.xlu1 %669 }
 0x1ae   :  { %v1026_v48 = vpop.eup %1025  ;;  %v695_v56 = vpop.permute.xlu1 %694 }
 0x1af   :  { %v632_v50 = vmul.f32 %v1026_v48, %v608_v44  ;;  %v633_v51 = vmul.f32 %v1026_v48, %v609_v45  ;;  %v634_v52 = vmul.f32 %v1026_v48, %v610_v46  ;;  %v635_v53 = vmul.f32 %v1026_v48, %v611_v47 }
 0x1b1   :  { %v672_v57 = vmul.f32 %v655_v49, %v632_v50  ;;  %v673_v58 = vmul.f32 %v655_v49, %v633_v51  ;;  %v674_v60 = vmul.f32 %v655_v49, %v634_v52  ;;  %v675_v61 = vmul.f32 %v655_v49, %v635_v53 }
 0x1b2   :  { %v700_v19 = vpop.permute.xlu1 %699 }
 0x1b3   :  { %v712_v8 = vadd.f32 %v695_v56, %v672_v57  ;;  %v713_v0 = vadd.f32 %v695_v56, %v673_v58  ;;  %v714_v1 = vadd.f32 %v695_v56, %v674_v60  ;;  %v715_v2 = vadd.f32 %v695_v56, %v675_v61 }
 0x1b4   :  { %v1028_v3 = vpop.eup %1027 }
 0x1b5   :  { %v636_v13 = vmul.f32 %v1028_v3, %v612_v62  ;;  %v637_v12 = vmul.f32 %v1028_v3, %v613_v5  ;;  %v638_v18 = vmul.f32 %v1028_v3, %v614_v7  ;;  %v639_v15 = vmul.f32 %v1028_v3, %v615_v6 }
 0x1b6   :  { %v1030_v14 = vpop.eup %1029  ;;  %vm728_vm0 = vcmp.gt.f32.partialorder %v712_v8, 0.0  ;;  %vm729_vm1 = vcmp.gt.f32.partialorder %v713_v0, 0.0  ;;  %vm730_vm2 = vcmp.gt.f32.partialorder %v714_v1, 0.0  ;;  %vm731_vm3 = vcmp.gt.f32.partialorder %v715_v2, 0.0  ;;  %v705_v44 = vpop.permute.xlu1 %704 }
 0x1b7   :  { %v676_v16 = vmul.f32 %v660_v35, %v636_v13  ;;  %v677_v17 = vmul.f32 %v660_v35, %v637_v12  ;;  %v678_v20 = vmul.f32 %v660_v35, %v638_v18  ;;  %v679_v24 = vmul.f32 %v660_v35, %v639_v15 }
 0x1b8   :  { %v640_v21 = vmul.f32 %v1030_v14, %v616_v4  ;;  %v641_v30 = vmul.f32 %v1030_v14, %v617_v9  ;;  %v642_v22 = vmul.f32 %v1030_v14, %v618_v10  ;;  %v643_v29 = vmul.f32 %v1030_v14, %v619_v11 }
 0x1b9   :  { %v744_v23 = vmul.f32 0.2, %v712_v8  ;;  %v745_v40 = vmul.f32 0.2, %v713_v0  ;;  %v746_v25 = vmul.f32 0.2, %v714_v1  ;;  %v716_v26 = vadd.f32 %v700_v19, %v676_v16 }
 0x1ba   :  { %v680_v27 = vmul.f32 %v665_v41, %v640_v21  ;;  %v681_v28 = vmul.f32 %v665_v41, %v641_v30  ;;  %v682_v31 = vmul.f32 %v665_v41, %v642_v22  ;;  %v683_v32 = vmul.f32 %v665_v41, %v643_v29 }
 0x1bb   :  { %v747_v33 = vmul.f32 0.2, %v715_v2  ;;  %v760_v34 = vsel %vm728_vm0, %v712_v8, %v744_v23  ;;  %v761_v36 = vsel %vm729_vm1, %v713_v0, %v745_v40  ;;  %v762_v37 = vsel %vm730_vm2, %v714_v1, %v746_v25 }
 0x1bc   :  { %v912_v35 = vpack.c.bf16 %v761_v36, %v760_v34  ;;  %v717_v38 = vadd.f32 %v700_v19, %v677_v17  ;;  %v718_v39 = vadd.f32 %v700_v19, %v678_v20  ;;  %v719_v42 = vadd.f32 %v700_v19, %v679_v24 }
 0x1bd   :  { %v763_v45 = vsel %vm731_vm3, %v715_v2, %v747_v33  ;;  %vm732_vm4 = vcmp.gt.f32.partialorder %v716_v26, 0.0  ;;  %v748_v46 = vmul.f32 0.2, %v716_v26  ;;  %v720_v47 = vadd.f32 %v705_v44, %v680_v27 }
 0x1be   :  { %v913_v48 = vpack.c.bf16 %v763_v45, %v762_v37  ;;  %824 = vst [vmem:[%s1421_s4] sm:$0xff] %v912_v35  ;;  %vm733_vm5 = vcmp.gt.f32.partialorder %v717_v38, 0.0  ;;  %vm734_vm6 = vcmp.gt.f32.partialorder %v718_v39, 0.0  ;;  %vm735_vm7 = vcmp.gt.f32.partialorder %v719_v42, 0.0 }
 0x1bf   :  { %v749_v41 = vmul.f32 0.2, %v717_v38  ;;  %v750_v49 = vmul.f32 0.2, %v718_v39  ;;  %v751_v50 = vmul.f32 0.2, %v719_v42  ;;  %v764_v51 = vsel %vm732_vm4, %v716_v26, %v748_v46 }
 0x1c0   :  { %825 = vst [vmem:[%s1421_s4 + $0x8] sm:$0xff] %v913_v48  ;;  %v721_v52 = vadd.f32 %v705_v44, %v681_v28  ;;  %v722_v53 = vadd.f32 %v705_v44, %v682_v31  ;;  %v723_v56 = vadd.f32 %v705_v44, %v683_v32  ;;  %vm736_vm8 = vcmp.gt.f32.partialorder %v720_v47, 0.0 }
 0x1c1   :  { %v765_v57 = vsel %vm733_vm5, %v717_v38, %v749_v41  ;;  %v766_v58 = vsel %vm734_vm6, %v718_v39, %v750_v49  ;;  %v767_v60 = vsel %vm735_vm7, %v719_v42, %v751_v50  ;;  %v752_v61 = vmul.f32 0.2, %v720_v47 }
 0x1c2   :  { %v914_v62 = vpack.c.bf16 %v765_v57, %v764_v51  ;;  %v915_v5 = vpack.c.bf16 %v767_v60, %v766_v58  ;;  %vm737_vm9 = vcmp.gt.f32.partialorder %v721_v52, 0.0  ;;  %vm738_vm10 = vcmp.gt.f32.partialorder %v722_v53, 0.0 }
 0x1c3   :  { %vm739_vm11 = vcmp.gt.f32.partialorder %v723_v56, 0.0  ;;  %v753_v7 = vmul.f32 0.2, %v721_v52  ;;  %v754_v6 = vmul.f32 0.2, %v722_v53  ;;  %v768_v8 = vsel %vm736_vm8, %v720_v47, %v752_v61 }
 0x1c4   :  { %826 = vst [vmem:[%s1421_s4 + $0x10] sm:$0xff] %v914_v62  ;;  %827 = vst [vmem:[%s1421_s4 + $0x18] sm:$0xff] %v915_v5  ;;  %v755_v0 = vmul.f32 0.2, %v723_v56 }
 0x1c5   :  { %v769_v1 = vsel %vm737_vm9, %v721_v52, %v753_v7  ;;  %v770_v2 = vsel %vm738_vm10, %v722_v53, %v754_v6 }
 0x1c6   :  { %v771_v3 = vsel %vm739_vm11, %v723_v56, %v755_v0  ;;  %v916_v4 = vpack.c.bf16 %v769_v1, %v768_v8 }
 0x1c7   :  { %v917_v9 = vpack.c.bf16 %v771_v3, %v770_v2 }
 0x1c8   :  { %828 = vst [vmem:[%s1421_s4 + $0x20] sm:$0xff] %v916_v4 }
 0x1c9   :  { %829 = vst [vmem:[%s1421_s4 + $0x28] sm:$0xff] %v917_v9 }
 0x1e7   :  { %v550_v10 = vpop.xlane.xlu1 %549 }
 0x1e8   :  { %v555_v11 = vmul.f32 0.001953125, %v550_v10 }
 0x1ea   :  { %v599_v12 = vmul.f32 %v555_v11, %v555_v11  ;;  %v620_v16 = vsub.f32 %v1344_v54, %v555_v11  ;;  %v621_v17 = vsub.f32 %v1346_v55, %v555_v11  ;;  %v622_v20 = vsub.f32 %v1354_v59, %v555_v11 }
 0x1eb   :  { %v591_v13 = vpop.xlane.xlu1 %590  ;;  %v623_v24 = vsub.f32 %v1359_v63, %v555_v11 }
 0x1ec   :  { %v595_v18 = vmul.f32 0.001953125, %v591_v13 }
 0x1ee   :  { %v603_v15 = vsub.f32 %v595_v18, %v599_v12 }
 0x1ef   :  { %v710_v54 = vpop.permute.xlu1 %709 }
 0x1f0   :  { %v607_v14 = vmax.f32 %v603_v15, 0.0 }
 0x1f2   :  { %v627_v19 = vadd.f32 1e-05, %v607_v14 }
 0x1f4   :  { %1031 = vrsqrt.f32 %v627_v19 }
 0x201   :  { %v1032_v21 = vpop.eup %1031 }
 0x202   :  { %v644_v30 = vmul.f32 %v1032_v21, %v620_v16  ;;  %v645_v22 = vmul.f32 %v1032_v21, %v621_v17  ;;  %v646_v29 = vmul.f32 %v1032_v21, %v622_v20  ;;  %v647_v23 = vmul.f32 %v1032_v21, %v623_v24 }
 0x204   :  { %v684_v40 = vmul.f32 %v1367_v43, %v644_v30  ;;  %v685_v25 = vmul.f32 %v1367_v43, %v645_v22  ;;  %v686_v26 = vmul.f32 %v1367_v43, %v646_v29  ;;  %v687_v27 = vmul.f32 %v1367_v43, %v647_v23 }
 0x206   :  { %v724_v28 = vadd.f32 %v710_v54, %v684_v40  ;;  %v725_v55 = vadd.f32 %v710_v54, %v685_v25  ;;  %v726_v31 = vadd.f32 %v710_v54, %v686_v26  ;;  %v727_v59 = vadd.f32 %v710_v54, %v687_v27 }
 0x208   :  { %vm740_vm12 = vcmp.gt.f32.partialorder %v724_v28, 0.0  ;;  %vm741_vm13 = vcmp.gt.f32.partialorder %v725_v55, 0.0  ;;  %vm742_vm14 = vcmp.gt.f32.partialorder %v726_v31, 0.0  ;;  %vm743_vm15 = vcmp.gt.f32.partialorder %v727_v59, 0.0 }
 0x209   :  { %v756_v63 = vmul.f32 0.2, %v724_v28  ;;  %v757_v32 = vmul.f32 0.2, %v725_v55  ;;  %v758_v33 = vmul.f32 0.2, %v726_v31 }
 0x20a   :  { %v759_v34 = vmul.f32 0.2, %v727_v59 }
 0x20b   :  { %v772_v36 = vsel %vm740_vm12, %v724_v28, %v756_v63  ;;  %v773_v37 = vsel %vm741_vm13, %v725_v55, %v757_v32  ;;  %v774_v35 = vsel %vm742_vm14, %v726_v31, %v758_v33 }
 0x20c   :  { %v775_v38 = vsel %vm743_vm15, %v727_v59, %v759_v34  ;;  %v918_v39 = vpack.c.bf16 %v773_v37, %v772_v36 }
 0x20d   :  { %v919_v42 = vpack.c.bf16 %v775_v38, %v774_v35 }
 0x20e   :  { %830 = vst [vmem:[%s1421_s4 + $0x30] sm:$0xff] %v918_v39 }
 0x20f   :  { %831 = vst [vmem:[%s1421_s4 + $0x38] sm:$0xff] %v919_v42 }

// kernel: discriminator_forward.9
= control target key start
LH: loop header
LB: loop body
LE: loop exit
PB: predicated region body
PF: predicated region fallthrough
CT: control target
= control target key end

     0   :  { %v1035_v1 = vmov 0   ;;  %s1379_s1 = inlined_call_operand.vmem [shape: bf16[512,128], index: 1, kind: input, shape index: {}]   ;;  %s1380_s0 = inlined_call_operand.vmem [shape: bf16[64,512], index: 0, kind: input, shape index: {}]   ;;  %s1381_s2 = inlined_call_operand.vmem [shape: f32[64,1], index: 2, kind: input, shape index: {}]   ;;  %s1382_s3 = inlined_call_operand.vmem [shape: f32[64,1], index: 3, kind: input, shape index: {}]   ;;  %s1383_s4 = inlined_call_operand.vmem [shape: bf16[64,128], index: 4, kind: output, shape index: {}]  }
   0x1   :  { %v963_v0 = vld [vmem:[%s1379_s1 + $0x78] sm:$0xff]   ;;  %962 = vset.pattern.permute.xlu1 %v1035_v1  ;;  %961 = vset.pattern.permute.xlu0 %v1035_v1  ;;  %v967_v5 = vld [vmem:[%s1379_s1 + $0x70] sm:$0xff]   ;;  %v971_v9 = vld [vmem:[%s1379_s1 + $0x68] sm:$0xff]  }
   0x2   :  { %v964_v2 = vld [vmem:[%s1379_s1 + $0xf8] sm:$0xff]   ;;  %880 = vmatprep.subr.bf16.mxu0 %v963_v0  ;;  %v968_v6 = vld [vmem:[%s1379_s1 + $0xf0] sm:$0xff]   ;;  %v972_v10 = vld [vmem:[%s1379_s1 + $0xe8] sm:$0xff]  }
   0x3   :  { %v965_v3 = vld [vmem:[%s1379_s1 + $0x38] sm:$0xff]   ;;  %920 = vmatprep.subr.bf16.mxu1 %v964_v2  ;;  %v969_v7 = vld [vmem:[%s1379_s1 + $0x30] sm:$0xff]   ;;  %v973_v11 = vld [vmem:[%s1379_s1 + $0x28] sm:$0xff]  }
   0x4   :  { %v966_v4 = vld [vmem:[%s1379_s1 + $0xb8] sm:$0xff]   ;;  %881 = vmatpush3.bf16.msra.mxu0 %v965_v3  ;;  %v970_v8 = vld [vmem:[%s1379_s1 + $0xb0] sm:$0xff]   ;;  %v974_v12 = vld [vmem:[%s1379_s1 + $0xa8] sm:$0xff]  }
   0x5   :  { %921 = vmatpush3.bf16.msra.mxu1 %v966_v4  ;;  %882 = vmatprep.subr.bf16.mxu0 %v967_v5  ;;  %v975_v13 = vld [vmem:[%s1379_s1 + $0x60] sm:$0xff]   ;;  %v979_v17 = vld [vmem:[%s1379_s1 + $0x58] sm:$0xff]   ;;  %v983_v21 = vld [vmem:[%s1379_s1 + $0x50] sm:$0xff]  }
   0x6   :  { %922 = vmatprep.subr.bf16.mxu1 %v968_v6  ;;  %v976_v14 = vld [vmem:[%s1379_s1 + $0xe0] sm:$0xff]   ;;  %v980_v18 = vld [vmem:[%s1379_s1 + $0xd8] sm:$0xff]   ;;  %v984_v22 = vld [vmem:[%s1379_s1 + $0xd0] sm:$0xff]  }
   0x7   :  { %v977_v15 = vld [vmem:[%s1379_s1 + $0x20] sm:$0xff]   ;;  %v981_v19 = vld [vmem:[%s1379_s1 + $0x18] sm:$0xff]   ;;  %v985_v23 = vld [vmem:[%s1379_s1 + $0x10] sm:$0xff]  }
   0x8   :  { %883 = vmatpush3.bf16.msra.mxu0 %v969_v7  ;;  %v978_v16 = vld [vmem:[%s1379_s1 + $0xa0] sm:$0xff]   ;;  %v982_v20 = vld [vmem:[%s1379_s1 + $0x98] sm:$0xff]   ;;  %v986_v24 = vld [vmem:[%s1379_s1 + $0x90] sm:$0xff]  }
   0x9   :  { %923 = vmatpush3.bf16.msra.mxu1 %v970_v8  ;;  %884 = vmatprep.subr.bf16.mxu0 %v971_v9  ;;  %v987_v25 = vld [vmem:[%s1379_s1 + $0x48] sm:$0xff]   ;;  %v991_v29 = vld [vmem:[%s1379_s1 + $0x40] sm:$0xff]   ;;  %v615_v44 = vld [vmem:[%s1381_s2 + $0x10] sm:$0xff] }
   0xa   :  { %924 = vmatprep.subr.bf16.mxu1 %v972_v10  ;;  %v988_v26 = vld [vmem:[%s1379_s1 + $0xc8] sm:$0xff]   ;;  %v992_v30 = vld [vmem:[%s1379_s1 + $0xc0] sm:$0xff]   ;;  %v616_v47 = vld [vmem:[%s1381_s2 + $0x18] sm:$0xff] }
   0xb   :  { %v989_v27 = vld [vmem:[%s1379_s1 + $0x8] sm:$0xff]   ;;  %v993_v31 = vld [vmem:[%s1379_s1] sm:$0xff]   ;;  %v672_v53 = vld [vmem:[%s1382_s3 + $0x18] sm:$0xff] }
   0xc   :  { %885 = vmatpush3.bf16.msra.mxu0 %v973_v11  ;;  %v990_v28 = vld [vmem:[%s1379_s1 + $0x88] sm:$0xff]   ;;  %v994_v32 = vld [vmem:[%s1379_s1 + $0x80] sm:$0xff]   ;;  %v619_v57 = vld [vmem:[%s1381_s2 + $0x30] sm:$0xff] }
   0xd   :  { %925 = vmatpush3.bf16.msra.mxu1 %v974_v12  ;;  %886 = vmatprep.subr.bf16.mxu0 %v975_v13  ;;  %v995_v33 = vld [vmem:[%s1380_s0] ss:$16 sps:$4 sm:$0xff]   ;;  %v997_v34 = vld [vmem:[%s1380_s0 + $0x4] ss:$16 sps:$4 sm:$0xff]   ;;  %v998_v35 = vld [vmem:[%s1380_s0 + $0x8] ss:$16 sps:$4 sm:$0xff]  }
   0xe   :  { %926 = vmatprep.subr.bf16.mxu1 %v976_v14  ;;  %v1000_v36 = vld [vmem:[%s1380_s0 + $0xc] ss:$16 sps:$4 sm:$0xff]   ;;  %402 = vmatprep.mubr.bf16.mxu0 %v997_v34  ;;  %v1001_v37 = vld [vmem:[%s1380_s0 + $0x24] ss:$16 sps:$4 sm:$0xff]   ;;  %v1005_v39 = vld [vmem:[%s1380_s0 + $0x20] ss:$16 sps:$4 sm:$0xff]  }
   0xf   :  { %467 = vmatprep.mubr.bf16.mxu1 %v1000_v36  ;;  %v1003_v38 = vld [vmem:[%s1380_s0 + $0x2c] ss:$16 sps:$4 sm:$0xff]   ;;  %v1006_v40 = vld [vmem:[%s1380_s0 + $0x28] ss:$16 sps:$4 sm:$0xff]   ;;  %v1007_v41 = vld [vmem:[%s1380_s0 + $0x44] ss:$16 sps:$4 sm:$0xff]  }
  0x10   :  { %887 = vmatpush3.bf16.msra.mxu0 %v977_v15  ;;  %v1009_v42 = vld [vmem:[%s1380_s0 + $0x4c] ss:$16 sps:$4 sm:$0xff]   ;;  %v613_v45 = vld [vmem:[%s1381_s2] sm:$0xff]  ;;  %v1012_v49 = vld [vmem:[%s1380_s0 + $0x48] ss:$16 sps:$4 sm:$0xff]  }
  0x11   :  { %927 = vmatpush3.bf16.msra.mxu1 %v978_v16  ;;  %888 = vmatprep.subr.bf16.mxu0 %v979_v17  ;;  %v614_v43 = vld [vmem:[%s1381_s2 + $0x8] sm:$0xff]  ;;  %v1011_v46 = vld [vmem:[%s1380_s0 + $0x40] ss:$16 sps:$4 sm:$0xff]   ;;  %v1013_v50 = vld [vmem:[%s1380_s0 + $0x64] ss:$16 sps:$4 sm:$0xff]  }
  0x12   :  { %928 = vmatprep.subr.bf16.mxu1 %v980_v18  ;;  %628 = vperm.xlu1 %962, %v614_v43   ;;  %v670_v48 = vld [vmem:[%s1382_s3 + $0x8] sm:$0xff]  ;;  %v617_v52 = vld [vmem:[%s1381_s2 + $0x20] sm:$0xff]  ;;  %v620_v58 = vld [vmem:[%s1381_s2 + $0x38] sm:$0xff] }
  0x13   :  { %623 = vperm.xlu0 %961, %v613_v45   ;;  %v1015_v51 = vld [vmem:[%s1380_s0 + $0x6c] ss:$16 sps:$4 sm:$0xff]   ;;  %v1017_v54 = vld [vmem:[%s1380_s0 + $0x60] ss:$16 sps:$4 sm:$0xff]   ;;  %v1018_v56 = vld [vmem:[%s1380_s0 + $0x68] ss:$16 sps:$4 sm:$0xff]  }
  0x14   :  { %889 = vmatpush3.bf16.msra.mxu0 %v981_v19  ;;  %v618_v55 = vld [vmem:[%s1381_s2 + $0x28] sm:$0xff]  ;;  %v669_v59 = vld [vmem:[%s1382_s3] sm:$0xff]  ;;  %v671_v60 = vld [vmem:[%s1382_s3 + $0x10] sm:$0xff] }
  0x15   :  { %929 = vmatpush3.bf16.msra.mxu1 %v982_v20  ;;  %890 = vmatprep.subr.bf16.mxu0 %v983_v21  ;;  %v673_v61 = vld [vmem:[%s1382_s3 + $0x20] sm:$0xff] }
  0x16   :  { %930 = vmatprep.subr.bf16.mxu1 %v984_v22  ;;  %633 = vperm.xlu1 %962, %v615_v44  }
  0x17   :  { %684 = vperm.xlu0 %961, %v670_v48  }
  0x18   :  { %891 = vmatpush3.bf16.msra.mxu0 %v985_v23 }
  0x19   :  { %931 = vmatpush3.bf16.msra.mxu1 %v986_v24  ;;  %892 = vmatprep.subr.bf16.mxu0 %v987_v25 }
  0x1a   :  { %932 = vmatprep.subr.bf16.mxu1 %v988_v26  ;;  %638 = vperm.xlu1 %962, %v616_v47  }
  0x1b   :  { %694 = vperm.xlu0 %961, %v672_v53  }
  0x1c   :  { %893 = vmatpush3.bf16.msra.mxu0 %v989_v27 }
  0x1d   :  { %933 = vmatpush3.bf16.msra.mxu1 %v990_v28  ;;  %894 = vmatprep.subr.bf16.mxu0 %v991_v29 }
  0x1e   :  { %934 = vmatprep.subr.bf16.mxu1 %v992_v30  ;;  %643 = vperm.xlu1 %962, %v617_v52  }
  0x20   :  { %895 = vmatpush3.bf16.msra.mxu0 %v993_v31 }
  0x21   :  { %935 = vmatpush3.bf16.msra.mxu1 %v994_v32 }
  0x22   :  { %648 = vperm.xlu1 %962, %v618_v55  }
  0x23   :  { %403 = vmatmul.mubr.bf16.vlgmr.msra.gmra.mxu0 %v995_v33 }
  0x24   :  { %468 = vmatmul.mubr.bf16.vlgmr.msra.gmra.mxu1 %v998_v35  ;;  %410 = vmatprep.mubr.bf16.mxu0 %v1001_v37 }
  0x25   :  { %475 = vmatprep.mubr.bf16.mxu1 %v1003_v38 }
  0x26   :  { %653 = vperm.xlu1 %962, %v619_v57  }
  0x2a   :  { %658 = vperm.xlu1 %962, %v620_v58  }
  0x2b   :  { %411 = vmatmul.mubr.bf16.gmra.mxu0 %v1005_v39 }
  0x2c   :  { %476 = vmatmul.mubr.bf16.gmra.mxu1 %v1006_v40  ;;  %418 = vmatprep.mubr.bf16.mxu0 %v1007_v41 }
  0x2d   :  { %483 = vmatprep.mubr.bf16.mxu1 %v1009_v42 }
  0x2e   :  { %679 = vperm.xlu1 %962, %v669_v59  }
  0x32   :  { %689 = vperm.xlu1 %962, %v671_v60  }
  0x33   :  { %419 = vmatmul.mubr.bf16.gmra.mxu0 %v1011_v46 }
  0x34   :  { %484 = vmatmul.mubr.bf16.gmra.mxu1 %v1012_v49  ;;  %426 = vmatprep.mubr.bf16.mxu0 %v1013_v50 }
  0x35   :  { %491 = vmatprep.mubr.bf16.mxu1 %v1015_v51 }
  0x36   :  { %699 = vperm.xlu1 %962, %v673_v61  }
  0x3b   :  { %427 = vmatmul.mubr.bf16.gmra.mxu0 %v1017_v54 }
  0x3c   :  { %492 = vmatmul.mubr.bf16.gmra.mxu1 %v1018_v56 }
  0xe3   :  { %v896_v62 = vpop.f32.mrf.mxu0 }
  0xe4   :  { %v936_v63 = vpop.f32.mrf.mxu1 }
  0xe5   :  { %v897_v0 = vpop.f32.mrf.mxu0 }
  0xe6   :  { %v898_v1 = vadd.f32 %v897_v0, %v896_v62  ;;  %v937_v2 = vpop.f32.mrf.mxu1  ;;  %v674_v62 = vld [vmem:[%s1382_s3 + $0x28] sm:$0xff]  ;;  %v676_v0 = vld [vmem:[%s1382_s3 + $0x38] sm:$0xff] }
  0xe7   :  { %v938_v3 = vadd.f32 %v937_v2, %v936_v63  ;;  %v899_v4 = vpop.f32.mrf.mxu0  ;;  %v675_v63 = vld [vmem:[%s1382_s3 + $0x30] sm:$0xff] }
  0xe8   :  { %v939_v5 = vpop.f32.mrf.mxu1 }
  0xe9   :  { %v1244_v6 = vadd.f32 %v938_v3, %v898_v1  ;;  %v900_v7 = vpop.f32.mrf.mxu0  ;;  %v1293_v1 = vpop.permute.xlu1 %628 }
  0xea   :  { %v901_v8 = vadd.f32 %v900_v7, %v899_v4  ;;  %v940_v9 = vpop.f32.mrf.mxu1 }
  0xeb   :  { %v941_v10 = vadd.f32 %v940_v9, %v939_v5  ;;  %500 = vadd.xlane.f32.xlu0 %v1244_v6  ;;  %v902_v11 = vpop.f32.mrf.mxu0  ;;  %v525_v15 = vmul.f32 %v1244_v6, %v1244_v6  ;;  %v624_v9 = vpop.permute.xlu0 %623 }
  0xec   :  { %v942_v12 = vpop.f32.mrf.mxu1 }
  0xed   :  { %v1247_v13 = vadd.f32 %v941_v10, %v901_v8  ;;  %v903_v14 = vpop.f32.mrf.mxu0  ;;  %v1295_v2 = vpop.permute.xlu1 %633 }
  0xee   :  { %v904_v16 = vadd.f32 %v903_v14, %v902_v11  ;;  %v943_v17 = vpop.f32.mrf.mxu1 }
  0xef   :  { %v944_v18 = vadd.f32 %v943_v17, %v942_v12  ;;  %533 = vadd.xlane.f32.xlu0 %v525_v15  ;;  %v905_v19 = vpop.f32.mrf.mxu0  ;;  %v526_v20 = vmul.f32 %v1247_v13, %v1247_v13  ;;  %v1309_v11 = vpop.permute.xlu0 %684 }
  0xf0   :  { %v945_v21 = vpop.f32.mrf.mxu1 }
  0xf1   :  { %v1253_v22 = vadd.f32 %v944_v18, %v904_v16  ;;  %535 = vadd.xlane.f32.xlu1 %v526_v20  ;;  %v906_v23 = vpop.f32.mrf.mxu0  ;;  %v1297_v3 = vpop.permute.xlu1 %638 }
  0xf2   :  { %v946_v24 = vpop.f32.mrf.mxu1  ;;  %v907_v25 = vadd.f32 %v906_v23, %v905_v19 }
  0xf3   :  { %v947_v26 = vadd.f32 %v946_v24, %v945_v21  ;;  %502 = vadd.xlane.f32.xlu0 %v1247_v13  ;;  %v908_v27 = vpop.f32.mrf.mxu0  ;;  %v527_v30 = vmul.f32 %v1253_v22, %v1253_v22  ;;  %v1313_v14 = vpop.permute.xlu0 %694 }
  0xf4   :  { %v948_v28 = vpop.f32.mrf.mxu1 }
  0xf5   :  { %504 = vadd.xlane.f32.xlu1 %v1253_v22  ;;  %v909_v29 = vpop.f32.mrf.mxu0  ;;  %v1259_v33 = vadd.f32 %v947_v26, %v907_v25  ;;  %v1299_v4 = vpop.permute.xlu1 %643 }
  0xf6   :  { %v910_v31 = vadd.f32 %v909_v29, %v908_v27  ;;  %v949_v32 = vpop.f32.mrf.mxu1 }
  0xf7   :  { %v950_v34 = vadd.f32 %v949_v32, %v948_v28  ;;  %537 = vadd.xlane.f32.xlu0 %v527_v30  ;;  %v911_v35 = vpop.f32.mrf.mxu0  ;;  %v528_v43 = vmul.f32 %v1259_v33, %v1259_v33 }
  0xf8   :  { %v951_v36 = vpop.f32.mrf.mxu1 }
  0xf9   :  { %v1261_v37 = vadd.f32 %v950_v34, %v910_v31  ;;  %506 = vadd.xlane.f32.xlu1 %v1259_v33  ;;  %v912_v38 = vpop.f32.mrf.mxu0  ;;  %v1301_v5 = vpop.permute.xlu1 %648 }
  0xfa   :  { %v952_v39 = vpop.f32.mrf.mxu1  ;;  %v913_v40 = vadd.f32 %v912_v38, %v911_v35 }
  0xfb   :  { %v953_v41 = vadd.f32 %v952_v39, %v951_v36  ;;  %508 = vadd.xlane.f32.xlu0 %v1261_v37  ;;  %v914_v42 = vpop.f32.mrf.mxu0  ;;  %v529_v46 = vmul.f32 %v1261_v37, %v1261_v37 }
  0xfc   :  { %v954_v44 = vpop.f32.mrf.mxu1 }
  0xfd   :  { %539 = vadd.xlane.f32.xlu1 %v528_v43  ;;  %v915_v45 = vpop.f32.mrf.mxu0  ;;  %v1269_v49 = vadd.f32 %v953_v41, %v913_v40  ;;  %v1303_v7 = vpop.permute.xlu1 %653 }
  0xfe   :  { %v916_v47 = vadd.f32 %v915_v45, %v914_v42  ;;  %v955_v48 = vpop.f32.mrf.mxu1 }
  0xff   :  { %v956_v50 = vadd.f32 %v955_v48, %v954_v44  ;;  %541 = vadd.xlane.f32.xlu0 %v529_v46  ;;  %v917_v51 = vpop.f32.mrf.mxu0  ;;  %v530_v58 = vmul.f32 %v1269_v49, %v1269_v49 }
 0x100   :  { %v957_v52 = vpop.f32.mrf.mxu1 }
 0x101   :  { %v1271_v53 = vadd.f32 %v956_v50, %v916_v47  ;;  %510 = vadd.xlane.f32.xlu1 %v1269_v49  ;;  %v918_v54 = vpop.f32.mrf.mxu0  ;;  %v1305_v8 = vpop.permute.xlu1 %658 }
 0x102   :  { %v958_v55 = vpop.f32.mrf.mxu1  ;;  %v919_v56 = vadd.f32 %v918_v54, %v917_v51 }
 0x103   :  { %v959_v57 = vadd.f32 %v958_v55, %v957_v52  ;;  %512 = vadd.xlane.f32.xlu0 %v1271_v53  ;;  %v531_v59 = vmul.f32 %v1271_v53, %v1271_v53 }
 0x105   :  { %543 = vadd.xlane.f32.xlu1 %v530_v58  ;;  %v1279_v60 = vadd.f32 %v959_v57, %v919_v56  ;;  %v1307_v10 = vpop.permute.xlu1 %679 }
 0x107   :  { %545 = vadd.xlane.f32.xlu0 %v531_v59  ;;  %v532_v61 = vmul.f32 %v1279_v60, %v1279_v60 }
 0x109   :  { %514 = vadd.xlane.f32.xlu1 %v1279_v60  ;;  %v1311_v12 = vpop.permute.xlu1 %689 }
 0x10d   :  { %547 = vadd.xlane.f32.xlu1 %v532_v61  ;;  %v1315_v17 = vpop.permute.xlu1 %699 }
 0x11d   :  { %704 = vperm.xlu0 %961, %v674_v62  }
 0x11e   :  { %709 = vperm.xlu1 %962, %v675_v63  }
 0x121   :  { %714 = vperm.xlu0 %961, %v676_v0  }
 0x174   :  { %v501_v15 = vpop.xlane.xlu0 %500 }
 0x175   :  { %v517_v16 = vmul.f32 0.0078125, %v501_v15 }
 0x177   :  { %v557_v19 = vmul.f32 %v517_v16, %v517_v16  ;;  %v581_v62 = vsub.f32 %v1244_v6, %v517_v16 }
 0x178   :  { %v534_v18 = vpop.xlane.xlu0 %533 }
 0x179   :  { %v549_v20 = vmul.f32 0.0078125, %v534_v18 }
 0x17a   :  { %v536_v21 = vpop.xlane.xlu1 %535 }
 0x17b   :  { %v565_v23 = vsub.f32 %v549_v20, %v557_v19  ;;  %v550_v29 = vmul.f32 0.0078125, %v536_v21 }
 0x17c   :  { %v503_v24 = vpop.xlane.xlu0 %502 }
 0x17d   :  { %v573_v25 = vmax.f32 %v565_v23, 0.0  ;;  %v518_v26 = vmul.f32 0.0078125, %v503_v24 }
 0x17e   :  { %v505_v27 = vpop.xlane.xlu1 %504 }
 0x17f   :  { %v589_v28 = vadd.f32 1e-05, %v573_v25  ;;  %v558_v30 = vmul.f32 %v518_v26, %v518_v26  ;;  %v1317_v31 = vmul.f32 0.0078125, %v505_v27 }
 0x180   :  { %v538_v32 = vpop.xlane.xlu0 %537 }
 0x181   :  { %1019 = vrsqrt.f32 %v589_v28  ;;  %v566_v34 = vsub.f32 %v550_v29, %v558_v30  ;;  %v559_v35 = vmul.f32 %v1317_v31, %v1317_v31  ;;  %v551_v36 = vmul.f32 0.0078125, %v538_v32 }
 0x182   :  { %v507_v38 = vpop.xlane.xlu1 %506  ;;  %v582_v30 = vsub.f32 %v1247_v13, %v518_v26 }
 0x183   :  { %v574_v39 = vmax.f32 %v566_v34, 0.0  ;;  %v1321_v40 = vmul.f32 0.0078125, %v507_v38  ;;  %v567_v41 = vsub.f32 %v551_v36, %v559_v35 }
 0x184   :  { %v509_v42 = vpop.xlane.xlu0 %508 }
 0x185   :  { %v590_v43 = vadd.f32 1e-05, %v574_v39  ;;  %v1323_v44 = vmul.f32 0.0078125, %v509_v42  ;;  %v575_v45 = vmax.f32 %v567_v41, 0.0  ;;  %v560_v47 = vmul.f32 %v1321_v40, %v1321_v40 }
 0x186   :  { %v540_v46 = vpop.xlane.xlu1 %539  ;;  %v583_v42 = vsub.f32 %v1253_v22, %v1317_v31 }
 0x187   :  { %1021 = vrsqrt.f32 %v590_v43  ;;  %v552_v48 = vmul.f32 0.0078125, %v540_v46  ;;  %v591_v50 = vadd.f32 1e-05, %v575_v45  ;;  %v561_v52 = vmul.f32 %v1323_v44, %v1323_v44 }
 0x188   :  { %v542_v51 = vpop.xlane.xlu0 %541 }
 0x189   :  { %v568_v54 = vsub.f32 %v552_v48, %v560_v47  ;;  %v553_v55 = vmul.f32 0.0078125, %v542_v51  ;;  %1023 = vrsqrt.f32 %v591_v50 }
 0x18a   :  { %v511_v56 = vpop.xlane.xlu1 %510 }
 0x18b   :  { %v576_v57 = vmax.f32 %v568_v54, 0.0  ;;  %v569_v58 = vsub.f32 %v553_v55, %v561_v52  ;;  %v1329_v59 = vmul.f32 0.0078125, %v511_v56  ;;  %v585_v56 = vsub.f32 %v1261_v37, %v1323_v44 }
 0x18c   :  { %v513_v61 = vpop.xlane.xlu0 %512 }
 0x18d   :  { %v592_v63 = vadd.f32 1e-05, %v576_v57  ;;  %v577_v0 = vmax.f32 %v569_v58, 0.0  ;;  %v562_v18 = vmul.f32 %v1329_v59, %v1329_v59  ;;  %v1334_v19 = vmul.f32 0.0078125, %v513_v61 }
 0x18e   :  { %v1020_v15 = vpop.eup %1019  ;;  %v544_v20 = vpop.xlane.xlu1 %543 }
 0x18f   :  { %v605_v21 = vmul.f32 %v1020_v15, %v581_v62  ;;  %1025 = vrsqrt.f32 %v592_v63  ;;  %v593_v23 = vadd.f32 1e-05, %v577_v0  ;;  %v554_v24 = vmul.f32 0.0078125, %v544_v20 }
 0x190   :  { %v563_v25 = vmul.f32 %v1334_v19, %v1334_v19  ;;  %v546_v27 = vpop.xlane.xlu0 %545 }
 0x191   :  { %v661_v28 = vmul.f32 %v624_v9, %v605_v21  ;;  %1027 = vrsqrt.f32 %v593_v23  ;;  %v570_v6 = vsub.f32 %v554_v24, %v562_v18  ;;  %v555_v16 = vmul.f32 0.0078125, %v546_v27 }
 0x192   :  { %v515_v29 = vpop.xlane.xlu1 %514  ;;  %v587_v23 = vsub.f32 %v1271_v53, %v1334_v19 }
 0x193   :  { %v578_v32 = vmax.f32 %v570_v6, 0.0  ;;  %v571_v34 = vsub.f32 %v555_v16, %v563_v25  ;;  %v1339_v35 = vmul.f32 0.0078125, %v515_v29  ;;  %v717_v38 = vadd.f32 %v1307_v10, %v661_v28 }
 0x194   :  { %v1022_v36 = vpop.eup %1021 }
 0x195   :  { %v606_v39 = vmul.f32 %v1022_v36, %v582_v30  ;;  %v594_v41 = vadd.f32 1e-05, %v578_v32  ;;  %v579_v43 = vmax.f32 %v571_v34, 0.0  ;;  %v564_v13 = vmul.f32 %v1339_v35, %v1339_v35 }
 0x196   :  { %v548_v9 = vpop.xlane.xlu1 %547  ;;  %v1024_v45 = vpop.eup %1023  ;;  %v733_v47 = vmul.f32 0.2, %v717_v38  ;;  %vm725_vm0 = vcmp.gt.f32.partialorder %v717_v38, 0.0  ;;  %v588_v28 = vsub.f32 %v1279_v60, %v1339_v35 }
 0x197   :  { %v662_v46 = vmul.f32 %v1293_v1, %v606_v39  ;;  %1029 = vrsqrt.f32 %v594_v41  ;;  %v556_v26 = vmul.f32 0.0078125, %v548_v9  ;;  %v607_v48 = vmul.f32 %v1024_v45, %v583_v42 }
 0x198   :  { %v595_v50 = vadd.f32 1e-05, %v579_v43  ;;  %v584_v1 = vsub.f32 %v1259_v33, %v1321_v40  ;;  %v741_v55 = vsel %vm725_vm0, %v717_v38, %v733_v47 }
 0x199   :  { %v718_v10 = vadd.f32 %v1309_v11, %v662_v46  ;;  %v572_v51 = vsub.f32 %v556_v26, %v564_v13  ;;  %v663_v52 = vmul.f32 %v1295_v2, %v607_v48 }
 0x19a   :  { %1031 = vrsqrt.f32 %v595_v50  ;;  %v710_v6 = vpop.permute.xlu1 %709 }
 0x19b   :  { %vm726_vm1 = vcmp.gt.f32.partialorder %v718_v10, 0.0  ;;  %v734_v22 = vmul.f32 0.2, %v718_v10  ;;  %v580_v31 = vmax.f32 %v572_v51, 0.0  ;;  %v719_v58 = vadd.f32 %v1311_v12, %v663_v52 }
 0x19c   :  { %v1026_v54 = vpop.eup %1025  ;;  %v586_v12 = vsub.f32 %v1269_v49, %v1329_v59  ;;  %v705_v49 = vpop.permute.xlu0 %704 }
 0x19d   :  { %v742_v57 = vsel %vm726_vm1, %v718_v10, %v734_v22  ;;  %v608_v61 = vmul.f32 %v1026_v54, %v584_v1  ;;  %v596_v11 = vadd.f32 1e-05, %v580_v31  ;;  %v735_v37 = vmul.f32 0.2, %v719_v58 }
 0x19e   :  { %v1028_v62 = vpop.eup %1027  ;;  %v860_v63 = vpack.c.bf16 %v742_v57, %v741_v55  ;;  %vm727_vm2 = vcmp.gt.f32.partialorder %v719_v58, 0.0 }
 0x19f   :  { %v664_v2 = vmul.f32 %v1297_v3, %v608_v61  ;;  %1033 = vrsqrt.f32 %v596_v11  ;;  %v609_v0 = vmul.f32 %v1028_v62, %v585_v56  ;;  %v743_v20 = vsel %vm727_vm2, %v719_v58, %v735_v37 }
 0x1a0   :  { %861 = vst [vmem:[%s1383_s4] sm:$0xff] %v860_v63   ;;  %v715_v36 = vpop.permute.xlu0 %714 }
 0x1a1   :  { %v720_v33 = vadd.f32 %v1313_v14, %v664_v2  ;;  %v665_v40 = vmul.f32 %v1299_v4, %v609_v0 }
 0x1a3   :  { %vm728_vm3 = vcmp.gt.f32.partialorder %v720_v33, 0.0  ;;  %v736_v44 = vmul.f32 0.2, %v720_v33  ;;  %v721_v3 = vadd.f32 %v1315_v17, %v665_v40 }
 0x1a4   :  { %v1030_v15 = vpop.eup %1029 }
 0x1a5   :  { %v610_v18 = vmul.f32 %v1030_v15, %v586_v12  ;;  %v744_v21 = vsel %vm728_vm3, %v720_v33, %v736_v44  ;;  %v737_v25 = vmul.f32 0.2, %v721_v3  ;;  %vm729_vm4 = vcmp.gt.f32.partialorder %v721_v3, 0.0 }
 0x1a6   :  { %v865_v24 = vpack.c.bf16 %v744_v21, %v743_v20 }
 0x1a7   :  { %v1032_v14 = vpop.eup %1031  ;;  %v666_v4 = vmul.f32 %v1301_v5, %v610_v18  ;;  %v745_v16 = vsel %vm729_vm4, %v721_v3, %v737_v25 }
 0x1a8   :  { %877 = vst [vmem:[%s1383_s4 + $0x8] sm:$0xff] %v865_v24   ;;  %v611_v59 = vmul.f32 %v1032_v14, %v587_v23 }
 0x1a9   :  { %v722_v27 = vadd.f32 %v705_v49, %v666_v4 }
 0x1aa   :  { %v667_v17 = vmul.f32 %v1303_v7, %v611_v59 }
 0x1ab   :  { %vm730_vm5 = vcmp.gt.f32.partialorder %v722_v27, 0.0  ;;  %v738_v53 = vmul.f32 0.2, %v722_v27 }
 0x1ac   :  { %v1034_v19 = vpop.eup %1033  ;;  %v723_v29 = vadd.f32 %v710_v6, %v667_v17 }
 0x1ad   :  { %v746_v5 = vsel %vm730_vm5, %v722_v27, %v738_v53  ;;  %v612_v30 = vmul.f32 %v1034_v19, %v588_v28 }
 0x1ae   :  { %v870_v32 = vpack.c.bf16 %v746_v5, %v745_v16  ;;  %v739_v7 = vmul.f32 0.2, %v723_v29  ;;  %vm731_vm6 = vcmp.gt.f32.partialorder %v723_v29, 0.0 }
 0x1af   :  { %v668_v34 = vmul.f32 %v1305_v8, %v612_v30 }
 0x1b0   :  { %878 = vst [vmem:[%s1383_s4 + $0x10] sm:$0xff] %v870_v32   ;;  %v747_v35 = vsel %vm731_vm6, %v723_v29, %v739_v7 }
 0x1b1   :  { %v724_v38 = vadd.f32 %v715_v36, %v668_v34 }
 0x1b3   :  { %vm732_vm7 = vcmp.gt.f32.partialorder %v724_v38, 0.0  ;;  %v740_v60 = vmul.f32 0.2, %v724_v38 }
 0x1b5   :  { %v748_v39 = vsel %vm732_vm7, %v724_v38, %v740_v60 }
 0x1b6   :  { %v875_v41 = vpack.c.bf16 %v748_v39, %v747_v35 }
 0x1b8   :  { %879 = vst [vmem:[%s1383_s4 + $0x18] sm:$0xff] %v875_v41  }

// kernel: discriminator_forward.10
= control target key start
LH: loop header
LB: loop body
LE: loop exit
PB: predicated region body
PF: predicated region fallthrough
CT: control target
= control target key end

     0   :  { %v2432_v7 = vmov 0   ;;  %vm1302_vm0 = vcmask 261120   ;;  %vm1896_vm1 = vcmask 257024   ;;  %s3412_s1 = inlined_call_operand.vmem [shape: bf16[1024,32], index: 1, kind: input, shape index: {}]   ;;  %s3413_s0 = inlined_call_operand.vmem [shape: bf16[128,1024], index: 0, kind: input, shape index: {}]   ;;  %s3414_s2 = inlined_call_operand.vmem [shape: f32[128,1], index: 2, kind: input, shape index: {}]   ;;  %s3415_s3 = inlined_call_operand.vmem [shape: f32[128,1], index: 3, kind: input, shape index: {}]   ;;  %s3416_s4 = inlined_call_operand.vmem [shape: bf16[128,32], index: 4, kind: output, shape index: {}]  }
   0x1   :  { %v2336_v0 = vld [vmem:[%s3412_s1 + $0x78] sm:$0xff]   ;;  %v2340_v4 = vld [vmem:[%s3412_s1 + $0x70] sm:$0xff]   ;;  %2335 = vset.pattern.permute.xlu1 %v2432_v7  ;;  %2334 = vset.pattern.permute.xlu0 %v2432_v7  ;;  %v2344_v9 = vld [vmem:[%s3412_s1 + $0x68] sm:$0xff]  }
   0x2   :  { %v2337_v1 = vld [vmem:[%s3412_s1 + $0xf8] sm:$0xff]   ;;  %2077 = vmatprep.subr.bf16.mxu0 %v2336_v0  ;;  %v2341_v5 = vld [vmem:[%s3412_s1 + $0xf0] sm:$0xff]   ;;  %v2345_v10 = vld [vmem:[%s3412_s1 + $0xe8] sm:$0xff]  }
   0x3   :  { %v2338_v2 = vld [vmem:[%s3412_s1 + $0x38] sm:$0xff]   ;;  %2141 = vmatprep.subr.bf16.mxu1 %v2337_v1  ;;  %v2342_v6 = vld [vmem:[%s3412_s1 + $0x30] sm:$0xff]   ;;  %v2346_v11 = vld [vmem:[%s3412_s1 + $0x28] sm:$0xff]  }
   0x4   :  { %v2339_v3 = vld [vmem:[%s3412_s1 + $0xb8] sm:$0xff]   ;;  %2078 = vmatpush3.bf16.msra.mxu0 %v2338_v2  ;;  %v2343_v8 = vld [vmem:[%s3412_s1 + $0xb0] sm:$0xff]   ;;  %v2347_v12 = vld [vmem:[%s3412_s1 + $0xa8] sm:$0xff]  }
   0x5   :  { %2142 = vmatpush3.bf16.msra.mxu1 %v2339_v3  ;;  %2079 = vmatprep.subr.bf16.mxu0 %v2340_v4  ;;  %v2348_v13 = vld [vmem:[%s3412_s1 + $0x60] sm:$0xff]   ;;  %v2352_v17 = vld [vmem:[%s3412_s1 + $0x58] sm:$0xff]   ;;  %v2356_v21 = vld [vmem:[%s3412_s1 + $0x50] sm:$0xff]  }
   0x6   :  { %2143 = vmatprep.subr.bf16.mxu1 %v2341_v5  ;;  %v2349_v14 = vld [vmem:[%s3412_s1 + $0xe0] sm:$0xff]   ;;  %v2353_v18 = vld [vmem:[%s3412_s1 + $0xd8] sm:$0xff]   ;;  %v2357_v22 = vld [vmem:[%s3412_s1 + $0xd0] sm:$0xff]  }
   0x7   :  { %v2350_v15 = vld [vmem:[%s3412_s1 + $0x20] sm:$0xff]   ;;  %v2354_v19 = vld [vmem:[%s3412_s1 + $0x18] sm:$0xff]   ;;  %v2358_v23 = vld [vmem:[%s3412_s1 + $0x10] sm:$0xff]  }
   0x8   :  { %2080 = vmatpush3.bf16.msra.mxu0 %v2342_v6  ;;  %v2351_v16 = vld [vmem:[%s3412_s1 + $0xa0] sm:$0xff]   ;;  %v2355_v20 = vld [vmem:[%s3412_s1 + $0x98] sm:$0xff]   ;;  %v2359_v24 = vld [vmem:[%s3412_s1 + $0x90] sm:$0xff]  }
   0x9   :  { %2144 = vmatpush3.bf16.msra.mxu1 %v2343_v8  ;;  %2081 = vmatprep.subr.bf16.mxu0 %v2344_v9  ;;  %v2360_v25 = vld [vmem:[%s3412_s1 + $0x48] sm:$0xff]   ;;  %v2364_v29 = vld [vmem:[%s3412_s1 + $0x40] sm:$0xff]   ;;  %v2368_v41 = vld [vmem:[%s3412_s1 + $0x178] sm:$0xff]  }
   0xa   :  { %2145 = vmatprep.subr.bf16.mxu1 %v2345_v10  ;;  %v2361_v26 = vld [vmem:[%s3412_s1 + $0xc8] sm:$0xff]   ;;  %v2365_v30 = vld [vmem:[%s3412_s1 + $0xc0] sm:$0xff]   ;;  %v2369_v42 = vld [vmem:[%s3412_s1 + $0x138] sm:$0xff]  }
   0xb   :  { %v2362_v27 = vld [vmem:[%s3412_s1 + $0x8] sm:$0xff]   ;;  %v2366_v31 = vld [vmem:[%s3412_s1] sm:$0xff]   ;;  %v2370_v43 = vld [vmem:[%s3412_s1 + $0x1f8] sm:$0xff]  }
   0xc   :  { %2082 = vmatpush3.bf16.msra.mxu0 %v2346_v11  ;;  %v2363_v28 = vld [vmem:[%s3412_s1 + $0x88] sm:$0xff]   ;;  %v2367_v32 = vld [vmem:[%s3412_s1 + $0x80] sm:$0xff]   ;;  %v2371_v44 = vld [vmem:[%s3412_s1 + $0x1b8] sm:$0xff]  }
   0xd   :  { %2146 = vmatpush3.bf16.msra.mxu1 %v2347_v12  ;;  %2083 = vmatprep.subr.bf16.mxu0 %v2348_v13  ;;  %v18_v33 = vld [vmem:[%s3413_s0] sm:$0xff]  ;;  %v19_v35 = vld [vmem:[%s3413_s0 + $0x8] sm:$0xff]  ;;  %v2372_v51 = vld [vmem:[%s3412_s1 + $0x170] sm:$0xff]  }
   0xe   :  { %2147 = vmatprep.subr.bf16.mxu1 %v2349_v14  ;;  %v22_v34 = vld [vmem:[%s3413_s0 + $0x20] sm:$0xff]  ;;  %v23_v38 = vld [vmem:[%s3413_s0 + $0x28] sm:$0xff]  ;;  %v2373_v53 = vld [vmem:[%s3412_s1 + $0x130] sm:$0xff]  }
   0xf   :  { %v1917_v36 = vcombine.low %v18_v33, %v22_v34  ;;  %v1918_v37 = vcombine.high %v18_v33, %v22_v34  ;;  %v1919_v39 = vcombine.low %v19_v35, %v23_v38  ;;  %v1920_v40 = vcombine.high %v19_v35, %v23_v38  ;;  %v26_v45 = vld [vmem:[%s3413_s0 + $0x40] sm:$0xff]  ;;  %v27_v48 = vld [vmem:[%s3413_s0 + $0x48] sm:$0xff]  ;;  %v2374_v55 = vld [vmem:[%s3412_s1 + $0x1f0] sm:$0xff]  }
  0x10   :  { %2084 = vmatpush3.bf16.msra.mxu0 %v2350_v15  ;;  %v30_v46 = vld [vmem:[%s3413_s0 + $0x60] sm:$0xff]  ;;  %v31_v49 = vld [vmem:[%s3413_s0 + $0x68] sm:$0xff]  ;;  %v2375_v56 = vld [vmem:[%s3412_s1 + $0x1b0] sm:$0xff]  }
  0x11   :  { %2148 = vmatpush3.bf16.msra.mxu1 %v2351_v16  ;;  %2085 = vmatprep.subr.bf16.mxu0 %v2352_v17  ;;  %v1926_v47 = vcombine.high %v26_v45, %v30_v46  ;;  %v1928_v50 = vcombine.high %v27_v48, %v31_v49  ;;  %v1925_v52 = vcombine.low %v26_v45, %v30_v46  ;;  %v34_v57 = vld [vmem:[%s3413_s0 + $0x80] sm:$0xff]  ;;  %v35_v59 = vld [vmem:[%s3413_s0 + $0x88] sm:$0xff]  ;;  %v2390_v33 = vld [vmem:[%s3412_s1 + $0x1d0] sm:$0xff]  }
  0x12   :  { %2149 = vmatprep.subr.bf16.mxu1 %v2353_v18  ;;  %946 = vmatprep.mubr.bf16.mxu0 %v1918_v37  ;;  %v1927_v54 = vcombine.low %v27_v48, %v31_v49  ;;  %v38_v58 = vld [vmem:[%s3413_s0 + $0xa0] sm:$0xff]  ;;  %v39_v60 = vld [vmem:[%s3413_s0 + $0xa8] sm:$0xff]  ;;  %v2391_v34 = vld [vmem:[%s3412_s1 + $0x190] sm:$0xff]  }
  0x13   :  { %1043 = vmatprep.mubr.bf16.mxu1 %v1920_v40  ;;  %v1934_v61 = vcombine.high %v34_v57, %v38_v58  ;;  %v1936_v62 = vcombine.high %v35_v59, %v39_v60  ;;  %v2376_v63 = vld [vmem:[%s3412_s1 + $0x168] sm:$0xff]   ;;  %v1933_v3 = vcombine.low %v34_v57, %v38_v58  ;;  %v42_v4 = vld [vmem:[%s3413_s0 + $0xc0] sm:$0xff]  ;;  %v1935_v7 = vcombine.low %v35_v59, %v39_v60 }
  0x14   :  { %2086 = vmatpush3.bf16.msra.mxu0 %v2354_v19  ;;  %v2377_v0 = vld [vmem:[%s3412_s1 + $0x128] sm:$0xff]   ;;  %v46_v5 = vld [vmem:[%s3413_s0 + $0xe0] sm:$0xff]  ;;  %v2384_v19 = vld [vmem:[%s3412_s1 + $0x158] sm:$0xff]  }
  0x15   :  { %2150 = vmatpush3.bf16.msra.mxu1 %v2355_v20  ;;  %2087 = vmatprep.subr.bf16.mxu0 %v2356_v21  ;;  %v2378_v1 = vld [vmem:[%s3412_s1 + $0x1e8] sm:$0xff]   ;;  %v1942_v8 = vcombine.high %v42_v4, %v46_v5  ;;  %v2380_v11 = vld [vmem:[%s3412_s1 + $0x160] sm:$0xff]   ;;  %v1941_v20 = vcombine.low %v42_v4, %v46_v5  ;;  %v2385_v21 = vld [vmem:[%s3412_s1 + $0x118] sm:$0xff]  }
  0x16   :  { %2151 = vmatprep.subr.bf16.mxu1 %v2357_v22  ;;  %v2379_v2 = vld [vmem:[%s3412_s1 + $0x1a8] sm:$0xff]   ;;  %v2381_v12 = vld [vmem:[%s3412_s1 + $0x120] sm:$0xff]   ;;  %v25_v4 = vld [vmem:[%s3413_s0 + $0x38] sm:$0xff] }
  0x17   :  { %v43_v6 = vld [vmem:[%s3413_s0 + $0xc8] sm:$0xff]  ;;  %v2382_v13 = vld [vmem:[%s3412_s1 + $0x1e0] sm:$0xff]   ;;  %v1563_v5 = vld [vmem:[%s3414_s2 + $0x18] sm:$0xff] }
  0x18   :  { %2088 = vmatpush3.bf16.msra.mxu0 %v2358_v23  ;;  %v47_v9 = vld [vmem:[%s3413_s0 + $0xe8] sm:$0xff]  ;;  %v2383_v14 = vld [vmem:[%s3412_s1 + $0x1a0] sm:$0xff]  }
  0x19   :  { %2152 = vmatpush3.bf16.msra.mxu1 %v2359_v24  ;;  %2089 = vmatprep.subr.bf16.mxu0 %v2360_v25  ;;  %v1944_v10 = vcombine.high %v43_v6, %v47_v9  ;;  %v50_v15 = vld [vmem:[%s3413_s0 + $0x100] sm:$0xff]  ;;  %v51_v17 = vld [vmem:[%s3413_s0 + $0x108] sm:$0xff]  ;;  %v1943_v22 = vcombine.low %v43_v6, %v47_v9  ;;  %v2386_v24 = vld [vmem:[%s3412_s1 + $0x1d8] sm:$0xff]  }
  0x1a   :  { %2153 = vmatprep.subr.bf16.mxu1 %v2361_v26  ;;  %v54_v16 = vld [vmem:[%s3413_s0 + $0x120] sm:$0xff]  ;;  %v55_v18 = vld [vmem:[%s3413_s0 + $0x128] sm:$0xff]  ;;  %v2387_v26 = vld [vmem:[%s3412_s1 + $0x198] sm:$0xff]  }
  0x1b   :  { %v1950_v23 = vcombine.high %v50_v15, %v54_v16  ;;  %v1952_v25 = vcombine.high %v51_v17, %v55_v18  ;;  %v1949_v35 = vcombine.low %v50_v15, %v54_v16  ;;  %v2393_v40 = vld [vmem:[%s3412_s1 + $0x108] sm:$0xff]   ;;  %v2397_v49 = vld [vmem:[%s3412_s1 + $0x100] sm:$0xff]   ;;  %v29_v15 = vld [vmem:[%s3413_s0 + $0x58] sm:$0xff] }
  0x1c   :  { %2090 = vmatpush3.bf16.msra.mxu0 %v2362_v27  ;;  %v58_v27 = vld [vmem:[%s3413_s0 + $0x140] sm:$0xff]  ;;  %v67_v45 = vld [vmem:[%s3413_s0 + $0x188] sm:$0xff]  ;;  %v33_v16 = vld [vmem:[%s3413_s0 + $0x78] sm:$0xff] }
  0x1d   :  { %2154 = vmatpush3.bf16.msra.mxu1 %v2363_v28  ;;  %2091 = vmatprep.subr.bf16.mxu0 %v2364_v29  ;;  %v62_v28 = vld [vmem:[%s3413_s0 + $0x160] sm:$0xff]  ;;  %v2388_v29 = vld [vmem:[%s3412_s1 + $0x150] sm:$0xff]   ;;  %v71_v46 = vld [vmem:[%s3413_s0 + $0x1a8] sm:$0xff] }
  0x1e   :  { %2155 = vmatprep.subr.bf16.mxu1 %v2365_v30  ;;  %v59_v30 = vld [vmem:[%s3413_s0 + $0x148] sm:$0xff]  ;;  %v1958_v37 = vcombine.high %v58_v27, %v62_v28  ;;  %v1957_v48 = vcombine.low %v58_v27, %v62_v28  ;;  %v1967_v60 = vcombine.low %v67_v45, %v71_v46  ;;  %v37_v27 = vld [vmem:[%s3413_s0 + $0x98] sm:$0xff] }
  0x1f   :  { %v75_v57 = vld [vmem:[%s3413_s0 + $0x1c8] sm:$0xff]  ;;  %v41_v28 = vld [vmem:[%s3413_s0 + $0xb8] sm:$0xff] }
  0x20   :  { %2092 = vmatpush3.bf16.msra.mxu0 %v2366_v31  ;;  %v63_v31 = vld [vmem:[%s3413_s0 + $0x168] sm:$0xff] }
  0x21   :  { %2156 = vmatpush3.bf16.msra.mxu1 %v2367_v32  ;;  %2205 = vmatprep.subr.bf16.mxu0 %v2368_v41  ;;  %v2389_v32 = vld [vmem:[%s3412_s1 + $0x110] sm:$0xff]   ;;  %v1960_v38 = vcombine.high %v59_v30, %v63_v31  ;;  %v2394_v41 = vld [vmem:[%s3412_s1 + $0x1c8] sm:$0xff]  }
  0x22   :  { %2269 = vmatprep.subr.bf16.mxu1 %v2370_v43  ;;  %v70_v43 = vld [vmem:[%s3413_s0 + $0x1a0] sm:$0xff]  ;;  %v79_v58 = vld [vmem:[%s3413_s0 + $0x1e8] sm:$0xff] }
  0x23   :  { %947 = vmatmul.mubr.bf16.vlgmr.msra.gmra.mxu0 %v1917_v36  ;;  %v1951_v36 = vcombine.low %v51_v17, %v55_v18  ;;  %v1565_v17 = vld [vmem:[%s3414_s2 + $0x28] sm:$0xff] }
  0x24   :  { %1044 = vmatmul.mubr.bf16.vlgmr.msra.gmra.mxu1 %v1919_v39  ;;  %2206 = vmatpush3.bf16.msra.mxu0 %v2369_v42  ;;  %v2392_v39 = vld [vmem:[%s3412_s1 + $0x148] sm:$0xff]   ;;  %v66_v42 = vld [vmem:[%s3413_s0 + $0x180] sm:$0xff] }
  0x25   :  { %2270 = vmatpush3.bf16.msra.mxu1 %v2371_v44  ;;  %954 = vmatprep.mubr.bf16.mxu0 %v1926_v47  ;;  %v2395_v44 = vld [vmem:[%s3412_s1 + $0x188] sm:$0xff]   ;;  %v2396_v47 = vld [vmem:[%s3412_s1 + $0x140] sm:$0xff]   ;;  %v1965_v59 = vcombine.low %v66_v42, %v70_v43 }
  0x26   :  { %1051 = vmatprep.mubr.bf16.mxu1 %v1928_v50  ;;  %2207 = vmatprep.subr.bf16.mxu0 %v2372_v51  ;;  %v1959_v50 = vcombine.low %v59_v30, %v63_v31  ;;  %v1966_v51 = vcombine.high %v66_v42, %v70_v43  ;;  %v1575_v31 = vld [vmem:[%s3414_s2 + $0x78] sm:$0xff] }
  0x27   :  { %2271 = vmatprep.subr.bf16.mxu1 %v2374_v55  ;;  %v74_v55 = vld [vmem:[%s3413_s0 + $0x1c0] sm:$0xff]  ;;  %v1675_v43 = vld [vmem:[%s3415_s3 + $0x18] sm:$0xff] }
  0x28   :  { %2208 = vmatpush3.bf16.msra.mxu0 %v2373_v53  ;;  %v1968_v53 = vcombine.high %v67_v45, %v71_v46 }
  0x29   :  { %2272 = vmatpush3.bf16.msra.mxu1 %v2375_v56  ;;  %2209 = vmatprep.subr.bf16.mxu0 %v2376_v63  ;;  %v78_v56 = vld [vmem:[%s3413_s0 + $0x1e0] sm:$0xff]  ;;  %v1976_v63 = vcombine.high %v75_v57, %v79_v58 }
  0x2a   :  { %2273 = vmatprep.subr.bf16.mxu1 %v2378_v1  ;;  %v20_v1 = vld [vmem:[%s3413_s0 + $0x10] sm:$0xff]  ;;  %v1973_v6 = vcombine.low %v74_v55, %v78_v56 }
  0x2b   :  { %955 = vmatmul.mubr.bf16.gmra.mxu0 %v1925_v52  ;;  %v2398_v52 = vld [vmem:[%s3412_s1 + $0x1c0] sm:$0xff]  }
  0x2c   :  { %1052 = vmatmul.mubr.bf16.gmra.mxu1 %v1927_v54  ;;  %962 = vmatprep.mubr.bf16.mxu0 %v1934_v61  ;;  %v2399_v54 = vld [vmem:[%s3412_s1 + $0x180] sm:$0xff]   ;;  %v1974_v61 = vcombine.high %v74_v55, %v78_v56  ;;  %v1679_v55 = vld [vmem:[%s3415_s3 + $0x38] sm:$0xff] }
  0x2d   :  { %1059 = vmatprep.mubr.bf16.mxu1 %v1936_v62  ;;  %2210 = vmatpush3.bf16.msra.mxu0 %v2377_v0  ;;  %v1561_v62 = vld [vmem:[%s3414_s2 + $0x8] sm:$0xff]  ;;  %v1562_v0 = vld [vmem:[%s3414_s2 + $0x10] sm:$0xff] }
  0x2e   :  { %2274 = vmatpush3.bf16.msra.mxu1 %v2379_v2  ;;  %2211 = vmatprep.subr.bf16.mxu0 %v2380_v11  ;;  %v24_v2 = vld [vmem:[%s3413_s0 + $0x30] sm:$0xff]  ;;  %v1564_v11 = vld [vmem:[%s3414_s2 + $0x20] sm:$0xff] }
  0x2f   :  { %2275 = vmatprep.subr.bf16.mxu1 %v2382_v13  ;;  %1583 = vperm.xlu1 %2335, %v1561_v62   ;;  %v28_v13 = vld [vmem:[%s3413_s0 + $0x50] sm:$0xff]  ;;  %v1921_v18 = vcombine.low %v20_v1, %v24_v2 }
  0x30   :  { %v64_v62 = vld [vmem:[%s3413_s0 + $0x170] sm:$0xff] }
  0x31   :  { %2212 = vmatpush3.bf16.msra.mxu0 %v2381_v12  ;;  %v1569_v12 = vld [vmem:[%s3414_s2 + $0x48] sm:$0xff] }
  0x32   :  { %2276 = vmatpush3.bf16.msra.mxu1 %v2383_v14  ;;  %2213 = vmatprep.subr.bf16.mxu0 %v2384_v19  ;;  %v32_v14 = vld [vmem:[%s3413_s0 + $0x70] sm:$0xff]  ;;  %v1571_v19 = vld [vmem:[%s3414_s2 + $0x58] sm:$0xff] }
  0x33   :  { %963 = vmatmul.mubr.bf16.gmra.mxu0 %v1933_v3  ;;  %2277 = vmatprep.subr.bf16.mxu1 %v2386_v24  ;;  %v21_v3 = vld [vmem:[%s3413_s0 + $0x18] sm:$0xff]  ;;  %v1573_v24 = vld [vmem:[%s3414_s2 + $0x68] sm:$0xff]  ;;  %v1929_v30 = vcombine.low %v28_v13, %v32_v14 }
  0x34   :  { %1060 = vmatmul.mubr.bf16.gmra.mxu1 %v1935_v7  ;;  %970 = vmatprep.mubr.bf16.mxu0 %v1942_v8  ;;  %v1975_v7 = vcombine.low %v75_v57, %v79_v58  ;;  %v1922_v8 = vcombine.high %v20_v1, %v24_v2  ;;  %v1924_v9 = vcombine.high %v21_v3, %v25_v4  ;;  %v1674_v1 = vld [vmem:[%s3415_s3 + $0x10] sm:$0xff] }
  0x35   :  { %1067 = vmatprep.mubr.bf16.mxu1 %v1944_v10  ;;  %2214 = vmatpush3.bf16.msra.mxu0 %v2385_v21  ;;  %v1560_v10 = vld [vmem:[%s3414_s2] sm:$0xff]  ;;  %v1930_v21 = vcombine.high %v28_v13, %v32_v14 }
  0x36   :  { %2278 = vmatpush3.bf16.msra.mxu1 %v2387_v26  ;;  %2215 = vmatprep.subr.bf16.mxu0 %v2388_v29  ;;  %v40_v26 = vld [vmem:[%s3413_s0 + $0xb0] sm:$0xff]  ;;  %v1567_v29 = vld [vmem:[%s3414_s2 + $0x38] sm:$0xff] }
  0x37   :  { %2279 = vmatprep.subr.bf16.mxu1 %v2390_v33  ;;  %1588 = vperm.xlu1 %2335, %v1562_v0   ;;  %v65_v0 = vld [vmem:[%s3413_s0 + $0x178] sm:$0xff] }
  0x38   :  { %1578 = vperm.xlu0 %2334, %v1560_v10   ;;  %v69_v10 = vld [vmem:[%s3413_s0 + $0x198] sm:$0xff] }
  0x39   :  { %2216 = vmatpush3.bf16.msra.mxu0 %v2389_v32  ;;  %v1931_v32 = vcombine.low %v29_v15, %v33_v16 }
  0x3a   :  { %2280 = vmatpush3.bf16.msra.mxu1 %v2391_v34  ;;  %2217 = vmatprep.subr.bf16.mxu0 %v2392_v39  ;;  %v1940_v34 = vcombine.high %v37_v27, %v41_v28  ;;  %v45_v39 = vld [vmem:[%s3413_s0 + $0xd8] sm:$0xff] }
  0x3b   :  { %971 = vmatmul.mubr.bf16.gmra.mxu0 %v1941_v20  ;;  %2281 = vmatprep.subr.bf16.mxu1 %v2394_v41  ;;  %v1923_v20 = vcombine.low %v21_v3, %v25_v4  ;;  %v1570_v41 = vld [vmem:[%s3414_s2 + $0x50] sm:$0xff]  ;;  %v1683_v3 = vld [vmem:[%s3415_s3 + $0x58] sm:$0xff] }
  0x3c   :  { %1068 = vmatmul.mubr.bf16.gmra.mxu1 %v1943_v22  ;;  %978 = vmatprep.mubr.bf16.mxu0 %v1950_v23  ;;  %v1932_v22 = vcombine.high %v29_v15, %v33_v16  ;;  %v1566_v23 = vld [vmem:[%s3414_s2 + $0x30] sm:$0xff] }
  0x3d   :  { %1075 = vmatprep.mubr.bf16.mxu1 %v1952_v25  ;;  %2218 = vmatpush3.bf16.msra.mxu0 %v2393_v40  ;;  %v36_v25 = vld [vmem:[%s3413_s0 + $0x90] sm:$0xff]  ;;  %v49_v40 = vld [vmem:[%s3413_s0 + $0xf8] sm:$0xff] }
  0x3e   :  { %2282 = vmatpush3.bf16.msra.mxu1 %v2395_v44  ;;  %2219 = vmatprep.subr.bf16.mxu0 %v2396_v47  ;;  %v1938_v33 = vcombine.high %v36_v25, %v40_v26  ;;  %v1937_v42 = vcombine.low %v36_v25, %v40_v26  ;;  %v1939_v44 = vcombine.low %v37_v27, %v41_v28  ;;  %v1572_v47 = vld [vmem:[%s3414_s2 + $0x60] sm:$0xff] }
  0x3f   :  { %2283 = vmatprep.subr.bf16.mxu1 %v2398_v52  ;;  %1593 = vperm.xlu1 %2335, %v1563_v5   ;;  %v1948_v46 = vcombine.high %v45_v39, %v49_v40  ;;  %v57_v52 = vld [vmem:[%s3413_s0 + $0x138] sm:$0xff]  ;;  %v1947_v56 = vcombine.low %v45_v39, %v49_v40  ;;  %v1684_v27 = vld [vmem:[%s3415_s3 + $0x60] sm:$0xff] }
  0x40   :  { %1623 = vperm.xlu0 %2334, %v1569_v12   ;;  %v1678_v12 = vld [vmem:[%s3415_s3 + $0x30] sm:$0xff] }
  0x41   :  { %2220 = vmatpush3.bf16.msra.mxu0 %v2397_v49  ;;  %v52_v49 = vld [vmem:[%s3413_s0 + $0x110] sm:$0xff] }
  0x42   :  { %2284 = vmatpush3.bf16.msra.mxu1 %v2399_v54 }
  0x43   :  { %979 = vmatmul.mubr.bf16.gmra.mxu0 %v1949_v35  ;;  %1598 = vperm.xlu1 %2335, %v1564_v11   ;;  %v1568_v35 = vld [vmem:[%s3414_s2 + $0x40] sm:$0xff]  ;;  %v73_v11 = vld [vmem:[%s3413_s0 + $0x1b8] sm:$0xff] }
  0x44   :  { %1076 = vmatmul.mubr.bf16.gmra.mxu1 %v1951_v36  ;;  %986 = vmatprep.mubr.bf16.mxu0 %v1958_v37  ;;  %v1673_v36 = vld [vmem:[%s3415_s3 + $0x8] sm:$0xff]  ;;  %v44_v37 = vld [vmem:[%s3413_s0 + $0xd0] sm:$0xff]  ;;  %v1972_v16 = vcombine.high %v69_v10, %v73_v11 }
  0x45   :  { %1083 = vmatprep.mubr.bf16.mxu1 %v1960_v38  ;;  %1633 = vperm.xlu0 %2334, %v1571_v19   ;;  %v48_v38 = vld [vmem:[%s3413_s0 + $0xf0] sm:$0xff] }
  0x46   :  { %v1946_v45 = vcombine.high %v44_v37, %v48_v38  ;;  %v1945_v54 = vcombine.low %v44_v37, %v48_v38  ;;  %v80_v19 = vld [vmem:[%s3413_s0 + $0x1f0] sm:$0xff] }
  0x47   :  { %1603 = vperm.xlu1 %2335, %v1565_v17   ;;  %v1680_v17 = vld [vmem:[%s3415_s3 + $0x40] sm:$0xff] }
  0x49   :  { %1643 = vperm.xlu0 %2334, %v1573_v24   ;;  %v1971_v24 = vcombine.low %v69_v10, %v73_v11 }
  0x4b   :  { %987 = vmatmul.mubr.bf16.gmra.mxu0 %v1957_v48  ;;  %1608 = vperm.xlu1 %2335, %v1566_v23   ;;  %v1677_v48 = vld [vmem:[%s3415_s3 + $0x28] sm:$0xff] }
  0x4c   :  { %1084 = vmatmul.mubr.bf16.gmra.mxu1 %v1959_v50  ;;  %994 = vmatprep.mubr.bf16.mxu0 %v1966_v51  ;;  %v56_v50 = vld [vmem:[%s3413_s0 + $0x130] sm:$0xff]  ;;  %v53_v51 = vld [vmem:[%s3413_s0 + $0x118] sm:$0xff] }
  0x4d   :  { %1091 = vmatprep.mubr.bf16.mxu1 %v1968_v53  ;;  %1653 = vperm.xlu0 %2334, %v1575_v31   ;;  %v1574_v53 = vld [vmem:[%s3414_s2 + $0x70] sm:$0xff]  ;;  %v1954_v57 = vcombine.high %v52_v49, %v56_v50  ;;  %v1956_v58 = vcombine.high %v53_v51, %v57_v52  ;;  %v1953_v2 = vcombine.low %v52_v49, %v56_v50 }
  0x4e   :  { %v1955_v4 = vcombine.low %v53_v51, %v57_v52 }
  0x4f   :  { %1613 = vperm.xlu1 %2335, %v1567_v29  }
  0x51   :  { %1695 = vperm.xlu0 %2334, %v1673_v36  }
  0x53   :  { %995 = vmatmul.mubr.bf16.gmra.mxu0 %v1965_v59  ;;  %1618 = vperm.xlu1 %2335, %v1568_v35   ;;  %v1672_v59 = vld [vmem:[%s3415_s3] sm:$0xff] }
  0x54   :  { %1092 = vmatmul.mubr.bf16.gmra.mxu1 %v1967_v60  ;;  %1002 = vmatprep.mubr.bf16.mxu0 %v1974_v61  ;;  %v1681_v60 = vld [vmem:[%s3415_s3 + $0x48] sm:$0xff]  ;;  %v60_v61 = vld [vmem:[%s3413_s0 + $0x150] sm:$0xff] }
  0x55   :  { %1099 = vmatprep.mubr.bf16.mxu1 %v1976_v63  ;;  %1705 = vperm.xlu0 %2334, %v1675_v43   ;;  %v61_v63 = vld [vmem:[%s3413_s0 + $0x158] sm:$0xff]  ;;  %v1962_v5 = vcombine.high %v60_v61, %v64_v62  ;;  %v1961_v13 = vcombine.low %v60_v61, %v64_v62 }
  0x56   :  { %v1963_v14 = vcombine.low %v61_v63, %v65_v0 }
  0x57   :  { %1628 = vperm.xlu1 %2335, %v1570_v41  }
  0x59   :  { %1715 = vperm.xlu0 %2334, %v1677_v48  }
  0x5b   :  { %1003 = vmatmul.mubr.bf16.gmra.mxu0 %v1973_v6  ;;  %1638 = vperm.xlu1 %2335, %v1572_v47   ;;  %v1964_v6 = vcombine.high %v61_v63, %v65_v0 }
  0x5c   :  { %1100 = vmatmul.mubr.bf16.gmra.mxu1 %v1975_v7  ;;  %1140 = vmatprep.mubr.bf16.mxu0 %v1922_v8  ;;  %v1676_v7 = vld [vmem:[%s3415_s3 + $0x20] sm:$0xff]  ;;  %v68_v8 = vld [vmem:[%s3413_s0 + $0x190] sm:$0xff] }
  0x5d   :  { %1237 = vmatprep.mubr.bf16.mxu1 %v1924_v9  ;;  %1725 = vperm.xlu0 %2334, %v1679_v55   ;;  %v72_v9 = vld [vmem:[%s3413_s0 + $0x1b0] sm:$0xff] }
  0x5e   :  { %v1970_v15 = vcombine.high %v68_v8, %v72_v9  ;;  %v1969_v23 = vcombine.low %v68_v8, %v72_v9 }
  0x5f   :  { %1648 = vperm.xlu1 %2335, %v1574_v53  }
  0x61   :  { %1735 = vperm.xlu0 %2334, %v1681_v60  }
  0x63   :  { %1141 = vmatmul.mubr.bf16.vlgmr.msra.gmra.mxu0 %v1921_v18  ;;  %1690 = vperm.xlu1 %2335, %v1672_v59   ;;  %v76_v18 = vld [vmem:[%s3413_s0 + $0x1d0] sm:$0xff] }
  0x64   :  { %1238 = vmatmul.mubr.bf16.vlgmr.msra.gmra.mxu1 %v1923_v20  ;;  %1148 = vmatprep.mubr.bf16.mxu0 %v1930_v21  ;;  %v77_v20 = vld [vmem:[%s3413_s0 + $0x1d8] sm:$0xff]  ;;  %v1978_v25 = vcombine.high %v76_v18, %v80_v19  ;;  %v1977_v28 = vcombine.low %v76_v18, %v80_v19 }
  0x65   :  { %1245 = vmatprep.mubr.bf16.mxu1 %v1932_v22  ;;  %1745 = vperm.xlu0 %2334, %v1683_v3   ;;  %v81_v21 = vld [vmem:[%s3413_s0 + $0x1f8] sm:$0xff]  ;;  %v1682_v22 = vld [vmem:[%s3415_s3 + $0x50] sm:$0xff] }
  0x66   :  { %v1980_v26 = vcombine.high %v77_v20, %v81_v21  ;;  %v1979_v29 = vcombine.low %v77_v20, %v81_v21 }
  0x67   :  { %1700 = vperm.xlu1 %2335, %v1674_v1  }
  0x6b   :  { %1149 = vmatmul.mubr.bf16.gmra.mxu0 %v1929_v30  ;;  %1710 = vperm.xlu1 %2335, %v1676_v7  }
  0x6c   :  { %1246 = vmatmul.mubr.bf16.gmra.mxu1 %v1931_v32  ;;  %1156 = vmatprep.mubr.bf16.mxu0 %v1938_v33 }
  0x6d   :  { %1253 = vmatprep.mubr.bf16.mxu1 %v1940_v34 }
  0x6f   :  { %1720 = vperm.xlu1 %2335, %v1678_v12  }
  0x73   :  { %1157 = vmatmul.mubr.bf16.gmra.mxu0 %v1937_v42  ;;  %1730 = vperm.xlu1 %2335, %v1680_v17  }
  0x74   :  { %1254 = vmatmul.mubr.bf16.gmra.mxu1 %v1939_v44  ;;  %1164 = vmatprep.mubr.bf16.mxu0 %v1946_v45 }
  0x75   :  { %1261 = vmatprep.mubr.bf16.mxu1 %v1948_v46 }
  0x77   :  { %1740 = vperm.xlu1 %2335, %v1682_v22  }
  0x7b   :  { %1165 = vmatmul.mubr.bf16.gmra.mxu0 %v1945_v54  ;;  %1750 = vperm.xlu1 %2335, %v1684_v27  }
  0x7c   :  { %1262 = vmatmul.mubr.bf16.gmra.mxu1 %v1947_v56  ;;  %1172 = vmatprep.mubr.bf16.mxu0 %v1954_v57 }
  0x7d   :  { %1269 = vmatprep.mubr.bf16.mxu1 %v1956_v58 }
  0x83   :  { %1173 = vmatmul.mubr.bf16.gmra.mxu0 %v1953_v2 }
  0x84   :  { %1270 = vmatmul.mubr.bf16.gmra.mxu1 %v1955_v4  ;;  %1180 = vmatprep.mubr.bf16.mxu0 %v1962_v5 }
  0x85   :  { %1277 = vmatprep.mubr.bf16.mxu1 %v1964_v6 }
  0x8b   :  { %1181 = vmatmul.mubr.bf16.gmra.mxu0 %v1961_v13 }
  0x8c   :  { %1278 = vmatmul.mubr.bf16.gmra.mxu1 %v1963_v14  ;;  %1188 = vmatprep.mubr.bf16.mxu0 %v1970_v15 }
  0x8d   :  { %1285 = vmatprep.mubr.bf16.mxu1 %v1972_v16 }
  0x93   :  { %1189 = vmatmul.mubr.bf16.gmra.mxu0 %v1969_v23 }
  0x94   :  { %1286 = vmatmul.mubr.bf16.gmra.mxu1 %v1971_v24  ;;  %1196 = vmatprep.mubr.bf16.mxu0 %v1978_v25 }
  0x95   :  { %1293 = vmatprep.mubr.bf16.mxu1 %v1980_v26 }
  0x9b   :  { %1197 = vmatmul.mubr.bf16.gmra.mxu0 %v1977_v28 }
  0x9c   :  { %1294 = vmatmul.mubr.bf16.gmra.mxu1 %v1979_v29 }
  0xe3   :  { %v2929_v30 = vpop.f32.mrf.mxu0 }
  0xe4   :  { %v2931_v31 = vpop.f32.mrf.mxu1 }
  0xe5   :  { %v2933_v32 = vpop.f32.mrf.mxu0 }
  0xe6   :  { %v2935_v33 = vpop.f32.mrf.mxu1 }
  0xe7   :  { %v2937_v34 = vpop.f32.mrf.mxu0 }
  0xe8   :  { %v2939_v35 = vpop.f32.mrf.mxu1 }
  0xe9   :  { %v2941_v36 = vpop.f32.mrf.mxu0 }
  0xea   :  { %v2943_v37 = vpop.f32.mrf.mxu1 }
  0xeb   :  { %v2099_v38 = vpop.f32.mrf.mxu0 }
  0xec   :  { %v2163_v39 = vpop.f32.mrf.mxu1 }
  0xed   :  { %v2100_v40 = vpop.f32.mrf.mxu0 }
  0xee   :  { %v2101_v41 = vadd.f32 %v2100_v40, %v2099_v38  ;;  %v2164_v42 = vpop.f32.mrf.mxu1 }
  0xef   :  { %v2165_v43 = vadd.f32 %v2164_v42, %v2163_v39  ;;  %v2102_v44 = vpop.f32.mrf.mxu0 }
  0xf0   :  { %v2166_v45 = vpop.f32.mrf.mxu1 }
  0xf1   :  { %v2945_v46 = vadd.f32 %v2165_v43, %v2101_v41  ;;  %v2103_v47 = vpop.f32.mrf.mxu0 }
  0xf2   :  { %v2104_v48 = vadd.f32 %v2103_v47, %v2102_v44  ;;  %v2167_v49 = vpop.f32.mrf.mxu1 }
  0xf3   :  { %v2168_v50 = vadd.f32 %v2167_v49, %v2166_v45  ;;  %v2947_v51 = vpop.f32.mrf.mxu0 }
  0xf4   :  { %v2949_v52 = vpop.f32.mrf.mxu1 }
  0xf5   :  { %v2951_v53 = vadd.f32 %v2168_v50, %v2104_v48  ;;  %v2953_v54 = vpop.f32.mrf.mxu0 }
  0xf6   :  { %v2955_v55 = vpop.f32.mrf.mxu1 }
  0xf7   :  { %v2108_v56 = vpop.f32.mrf.mxu0 }
  0xf8   :  { %v2172_v57 = vpop.f32.mrf.mxu1 }
  0xf9   :  { %v2109_v58 = vpop.f32.mrf.mxu0 }
  0xfa   :  { %v2110_v59 = vadd.f32 %v2109_v58, %v2108_v56  ;;  %v2173_v60 = vpop.f32.mrf.mxu1 }
  0xfb   :  { %v2174_v61 = vadd.f32 %v2173_v60, %v2172_v57  ;;  %v2957_v62 = vpop.f32.mrf.mxu0 }
  0xfc   :  { %v2959_v63 = vpop.f32.mrf.mxu1 }
  0xfd   :  { %v2961_v0 = vadd.f32 %v2174_v61, %v2110_v59  ;;  %v2963_v1 = vpop.f32.mrf.mxu0 }
  0xfe   :  { %v2965_v2 = vpop.f32.mrf.mxu1 }
  0xff   :  { %v2114_v3 = vpop.f32.mrf.mxu0 }
 0x100   :  { %v2178_v4 = vpop.f32.mrf.mxu1 }
 0x101   :  { %v2115_v5 = vpop.f32.mrf.mxu0 }
 0x102   :  { %v2116_v6 = vadd.f32 %v2115_v5, %v2114_v3  ;;  %v2179_v7 = vpop.f32.mrf.mxu1  ;;  %v2095_v5 = vadd.f32 %v2933_v32, %v2929_v30 }
 0x103   :  { %v2180_v8 = vadd.f32 %v2179_v7, %v2178_v4  ;;  %v2967_v9 = vpop.f32.mrf.mxu0 }
 0x104   :  { %v2969_v10 = vpop.f32.mrf.mxu1 }
 0x105   :  { %v2971_v11 = vadd.f32 %v2180_v8, %v2116_v6  ;;  %v2973_v12 = vpop.f32.mrf.mxu0  ;;  %v2159_v6 = vadd.f32 %v2935_v33, %v2931_v31 }
 0x106   :  { %v2975_v13 = vpop.f32.mrf.mxu1 }
 0x107   :  { %v2120_v14 = vpop.f32.mrf.mxu0 }
 0x108   :  { %v2184_v15 = vpop.f32.mrf.mxu1 }
 0x109   :  { %v2121_v16 = vpop.f32.mrf.mxu0 }
 0x10a   :  { %v2122_v17 = vadd.f32 %v2121_v16, %v2120_v14  ;;  %v2185_v18 = vpop.f32.mrf.mxu1 }
 0x10b   :  { %v2186_v19 = vadd.f32 %v2185_v18, %v2184_v15  ;;  %v2977_v20 = vpop.f32.mrf.mxu0 }
 0x10c   :  { %v2979_v21 = vpop.f32.mrf.mxu1 }
 0x10d   :  { %v2981_v22 = vadd.f32 %v2186_v19, %v2122_v17  ;;  %v2983_v23 = vpop.f32.mrf.mxu0  ;;  %v1046_v19 = vadd.f32 %v2159_v6, %v2095_v5 }
 0x10e   :  { %v2985_v24 = vpop.f32.mrf.mxu1 }
 0x10f   :  { %v2126_v25 = vpop.f32.mrf.mxu0 }
 0x110   :  { %v2190_v26 = vpop.f32.mrf.mxu1 }
 0x111   :  { %v2127_v27 = vpop.f32.mrf.mxu0 }
 0x112   :  { %v2128_v28 = vadd.f32 %v2127_v27, %v2126_v25  ;;  %v2191_v29 = vpop.f32.mrf.mxu1  ;;  %v2098_v25 = vadd.f32 %v2941_v36, %v2937_v34 }
 0x113   :  { %v2192_v38 = vadd.f32 %v2191_v29, %v2190_v26  ;;  %v2987_v39 = vpop.f32.mrf.mxu0  ;;  %v2162_v26 = vadd.f32 %v2943_v37, %v2939_v35 }
 0x114   :  { %v2989_v40 = vpop.f32.mrf.mxu1 }
 0x115   :  { %v2991_v41 = vadd.f32 %v2192_v38, %v2128_v28  ;;  %v2993_v42 = vpop.f32.mrf.mxu0  ;;  %v1049_v38 = vadd.f32 %v2162_v26, %v2098_v25 }
 0x116   :  { %v2995_v43 = vpop.f32.mrf.mxu1 }
 0x117   :  { %v2132_v44 = vpop.f32.mrf.mxu0 }
 0x118   :  { %v2196_v45 = vpop.f32.mrf.mxu1 }
 0x119   :  { %v2133_v47 = vpop.f32.mrf.mxu0 }
 0x11a   :  { %v2134_v48 = vadd.f32 %v2133_v47, %v2132_v44  ;;  %v2197_v49 = vpop.f32.mrf.mxu1 }
 0x11b   :  { %v2198_v50 = vadd.f32 %v2197_v49, %v2196_v45  ;;  %v2997_v56 = vpop.f32.mrf.mxu0 }
 0x11c   :  { %v2999_v57 = vpop.f32.mrf.mxu1 }
 0x11d   :  { %v3001_v58 = vadd.f32 %v2198_v50, %v2134_v48  ;;  %v3003_v59 = vpop.f32.mrf.mxu0 }
 0x11e   :  { %v3005_v60 = vpop.f32.mrf.mxu1 }
 0x11f   :  { %v2138_v61 = vpop.f32.mrf.mxu0 }
 0x120   :  { %v2202_v3 = vpop.f32.mrf.mxu1 }
 0x121   :  { %v2139_v4 = vpop.f32.mrf.mxu0 }
 0x122   :  { %v2140_v7 = vadd.f32 %v2139_v4, %v2138_v61  ;;  %v2203_v8 = vpop.f32.mrf.mxu1 }
 0x123   :  { %v2204_v14 = vadd.f32 %v2203_v8, %v2202_v3  ;;  %v2221_v15 = vpop.f32.mrf.mxu0 }
 0x124   :  { %v2285_v16 = vpop.f32.mrf.mxu1 }
 0x125   :  { %v3011_v17 = vadd.f32 %v2204_v14, %v2140_v7  ;;  %v2222_v18 = vpop.f32.mrf.mxu0 }
 0x126   :  { %v2223_v27 = vadd.f32 %v2222_v18, %v2221_v15  ;;  %v2286_v30 = vpop.f32.mrf.mxu1 }
 0x127   :  { %v2224_v32 = vpop.f32.mrf.mxu0  ;;  %v2287_v31 = vadd.f32 %v2286_v30, %v2285_v16  ;;  %v2107_v16 = vadd.f32 %v2953_v54, %v2947_v51 }
 0x128   :  { %v1143_v28 = vadd.f32 %v2223_v27, %v1046_v19  ;;  %v2288_v33 = vpop.f32.mrf.mxu1  ;;  %v2171_v19 = vadd.f32 %v2955_v55, %v2949_v52 }
 0x129   :  { %v2225_v29 = vpop.f32.mrf.mxu0 }
 0x12a   :  { %v3017_v44 = vadd.f32 %v2287_v31, %v1143_v28  ;;  %v2226_v45 = vadd.f32 %v2225_v29, %v2224_v32  ;;  %v2289_v47 = vpop.f32.mrf.mxu1  ;;  %v1062_v52 = vadd.f32 %v2171_v19, %v2107_v16 }
 0x12b   :  { %v2227_v48 = vpop.f32.mrf.mxu0  ;;  %v2290_v50 = vadd.f32 %v2289_v47, %v2288_v33 }
 0x12c   :  { %v1146_v49 = vadd.f32 %v2226_v45, %v1049_v38  ;;  %v2291_v34 = vpop.f32.mrf.mxu1  ;;  %v1303_v35 = vsel %vm1302_vm0, %v3017_v44, 0.0  ;;  %v1368_v36 = vmul.f32 %v3017_v44, %v3017_v44 }
 0x12d   :  { %v2228_v37 = vpop.f32.mrf.mxu0  ;;  %1304 = vadd.xlane.f32.xlu0 %v1303_v35  ;;  %v2177_v35 = vadd.f32 %v2965_v2, %v2959_v63 }
 0x12e   :  { %v3023_v61 = vadd.f32 %v2290_v50, %v1146_v49  ;;  %v2229_v3 = vadd.f32 %v2228_v37, %v2227_v48  ;;  %v2292_v4 = vpop.f32.mrf.mxu1  ;;  %v1384_v14 = vsel %vm1302_vm0, %v1368_v36, 0.0 }
 0x12f   :  { %v2293_v5 = vadd.f32 %v2292_v4, %v2291_v34  ;;  %v2230_v6 = vpop.f32.mrf.mxu0  ;;  %v2113_v34 = vadd.f32 %v2963_v1, %v2957_v62 }
 0x130   :  { %v1151_v7 = vadd.f32 %v2229_v3, %v2945_v46  ;;  %v2294_v8 = vpop.f32.mrf.mxu1  ;;  %v1369_v15 = vmul.f32 %v3023_v61, %v3023_v61  ;;  %v1306_v51 = vsel %vm1302_vm0, %v3023_v61, 0.0 }
 0x131   :  { %v2231_v18 = vpop.f32.mrf.mxu0  ;;  %1385 = vadd.xlane.f32.xlu0 %v1384_v14 }
 0x132   :  { %v3033_v25 = vadd.f32 %v2293_v5, %v1151_v7  ;;  %v2232_v26 = vadd.f32 %v2231_v18, %v2230_v6  ;;  %v2295_v27 = vpop.f32.mrf.mxu1  ;;  %v1387_v46 = vsel %vm1302_vm0, %v1369_v15, 0.0  ;;  %v1070_v15 = vadd.f32 %v2177_v35, %v2113_v34 }
 0x133   :  { %v2233_v30 = vpop.f32.mrf.mxu0  ;;  %1388 = vadd.xlane.f32.xlu1 %v1387_v46  ;;  %v2296_v28 = vadd.f32 %v2295_v27, %v2294_v8 }
 0x134   :  { %v1154_v32 = vadd.f32 %v2232_v26, %v2951_v53  ;;  %v2297_v31 = vpop.f32.mrf.mxu1  ;;  %v1370_v54 = vmul.f32 %v3033_v25, %v3033_v25  ;;  %v1309_v45 = vsel %vm1302_vm0, %v3033_v25, 0.0 }
 0x135   :  { %v2234_v33 = vpop.f32.mrf.mxu0  ;;  %1307 = vadd.xlane.f32.xlu0 %v1306_v51 }
 0x136   :  { %v3041_v55 = vadd.f32 %v2296_v28, %v1154_v32  ;;  %v2235_v29 = vadd.f32 %v2234_v33, %v2233_v30  ;;  %v2298_v38 = vpop.f32.mrf.mxu1  ;;  %v1390_v50 = vsel %vm1302_vm0, %v1370_v54, 0.0  ;;  %v2119_v28 = vadd.f32 %v2973_v12, %v2967_v9 }
 0x137   :  { %v2299_v47 = vadd.f32 %v2298_v38, %v2297_v31  ;;  %v2236_v53 = vpop.f32.mrf.mxu0  ;;  %1310 = vadd.xlane.f32.xlu1 %v1309_v45  ;;  %v2183_v31 = vadd.f32 %v2975_v13, %v2969_v10 }
 0x138   :  { %v1159_v48 = vadd.f32 %v2235_v29, %v1062_v52  ;;  %v2300_v49 = vpop.f32.mrf.mxu1  ;;  %v1312_v5 = vsel %vm1302_vm0, %v3041_v55, 0.0  ;;  %v1371_v6 = vmul.f32 %v3041_v55, %v3041_v55 }
 0x139   :  { %v2237_v36 = vpop.f32.mrf.mxu0  ;;  %1391 = vadd.xlane.f32.xlu0 %v1390_v50 }
 0x13a   :  { %v3050_v37 = vadd.f32 %v2299_v47, %v1159_v48  ;;  %v2238_v3 = vadd.f32 %v2237_v36, %v2236_v53  ;;  %v2301_v4 = vpop.f32.mrf.mxu1  ;;  %v1393_v26 = vsel %vm1302_vm0, %v1371_v6, 0.0  ;;  %v1078_v48 = vadd.f32 %v2183_v31, %v2119_v28 }
 0x13b   :  { %v2239_v7 = vpop.f32.mrf.mxu0  ;;  %1313 = vadd.xlane.f32.xlu1 %v1312_v5  ;;  %v2302_v62 = vadd.f32 %v2301_v4, %v2300_v49  ;;  %v2125_v6 = vadd.f32 %v2983_v23, %v2977_v20 }
 0x13c   :  { %v1162_v8 = vadd.f32 %v2238_v3, %v2961_v0  ;;  %v2303_v1 = vpop.f32.mrf.mxu1  ;;  %v1315_v63 = vsel %vm1302_vm0, %v3050_v37, 0.0  ;;  %v1372_v2 = vmul.f32 %v3050_v37, %v3050_v37 }
 0x13d   :  { %v2240_v14 = vpop.f32.mrf.mxu0  ;;  %1316 = vadd.xlane.f32.xlu0 %v1315_v63 }
 0x13e   :  { %v3061_v16 = vadd.f32 %v2302_v62, %v1162_v8  ;;  %v2241_v18 = vadd.f32 %v2240_v14, %v2239_v7  ;;  %v2304_v19 = vpop.f32.mrf.mxu1  ;;  %v1396_v32 = vsel %vm1302_vm0, %v1372_v2, 0.0  ;;  %v2189_v7 = vadd.f32 %v2985_v24, %v2979_v21 }
 0x13f   :  { %v2305_v27 = vadd.f32 %v2304_v19, %v2303_v1  ;;  %v2242_v46 = vpop.f32.mrf.mxu0  ;;  %1394 = vadd.xlane.f32.xlu1 %v1393_v26 }
 0x140   :  { %v1167_v0 = vadd.f32 %v2241_v18, %v1070_v15  ;;  %v2306_v30 = vpop.f32.mrf.mxu1  ;;  %v1318_v29 = vsel %vm1302_vm0, %v3061_v16, 0.0  ;;  %v1373_v38 = vmul.f32 %v3061_v16, %v3061_v16  ;;  %v1086_v26 = vadd.f32 %v2189_v7, %v2125_v6 }
 0x141   :  { %v2243_v51 = vpop.f32.mrf.mxu0  ;;  %1397 = vadd.xlane.f32.xlu0 %v1396_v32 }
 0x142   :  { %v3069_v54 = vadd.f32 %v2305_v27, %v1167_v0  ;;  %v2244_v33 = vadd.f32 %v2243_v51, %v2242_v46  ;;  %v2307_v52 = vpop.f32.mrf.mxu1  ;;  %v1399_v35 = vsel %vm1302_vm0, %v1373_v38, 0.0  ;;  %v3107_v38 = vpop.permute.xlu1 %1583 }
 0x143   :  { %v2245_v45 = vpop.f32.mrf.mxu0  ;;  %1319 = vadd.xlane.f32.xlu1 %v1318_v29  ;;  %v2308_v9 = vadd.f32 %v2307_v52, %v2306_v30  ;;  %v2195_v52 = vadd.f32 %v2995_v43, %v2989_v40 }
 0x144   :  { %v1170_v47 = vadd.f32 %v2244_v33, %v2971_v11  ;;  %v2309_v12 = vpop.f32.mrf.mxu1  ;;  %v1321_v10 = vsel %vm1302_vm0, %v3069_v54, 0.0  ;;  %v1374_v13 = vmul.f32 %v3069_v54, %v3069_v54  ;;  %v2131_v33 = vadd.f32 %v2993_v42, %v2987_v39 }
 0x145   :  { %v2246_v53 = vpop.f32.mrf.mxu0  ;;  %1322 = vadd.xlane.f32.xlu0 %v1321_v10 }
 0x146   :  { %v3080_v49 = vadd.f32 %v2308_v9, %v1170_v47  ;;  %v2247_v50 = vadd.f32 %v2246_v53, %v2245_v45  ;;  %v2310_v34 = vpop.f32.mrf.mxu1  ;;  %v1402_v5 = vsel %vm1302_vm0, %v1374_v13, 0.0 }
 0x147   :  { %v2311_v36 = vadd.f32 %v2310_v34, %v2309_v12  ;;  %v2248_v3 = vpop.f32.mrf.mxu0  ;;  %1400 = vadd.xlane.f32.xlu1 %v1399_v35 }
 0x148   :  { %v1175_v11 = vadd.f32 %v2247_v50, %v1078_v48  ;;  %v2312_v4 = vpop.f32.mrf.mxu1  ;;  %v1324_v2 = vsel %vm1302_vm0, %v3080_v49, 0.0  ;;  %v1375_v14 = vmul.f32 %v3080_v49, %v3080_v49  ;;  %v1094_v50 = vadd.f32 %v2195_v52, %v2131_v33 }
 0x149   :  { %v2249_v8 = vpop.f32.mrf.mxu0  ;;  %1403 = vadd.xlane.f32.xlu0 %v1402_v5 }
 0x14a   :  { %v3088_v62 = vadd.f32 %v2311_v36, %v1175_v11  ;;  %v2250_v1 = vadd.f32 %v2249_v8, %v2248_v3  ;;  %v2313_v63 = vpop.f32.mrf.mxu1  ;;  %v1405_v30 = vsel %vm1302_vm0, %v1375_v14, 0.0  ;;  %v2137_v8 = vadd.f32 %v3003_v59, %v2997_v56 }
 0x14b   :  { %v2251_v15 = vpop.f32.mrf.mxu0  ;;  %1325 = vadd.xlane.f32.xlu1 %v1324_v2  ;;  %v2314_v20 = vadd.f32 %v2313_v63, %v2312_v4 }
 0x14c   :  { %v1178_v18 = vadd.f32 %v2250_v1, %v2981_v22  ;;  %v2315_v23 = vpop.f32.mrf.mxu1  ;;  %v1327_v21 = vsel %vm1302_vm0, %v3088_v62, 0.0  ;;  %v1376_v24 = vmul.f32 %v3088_v62, %v3088_v62  ;;  %v2201_v1 = vadd.f32 %v3005_v60, %v2999_v57 }
 0x14d   :  { %v2252_v19 = vpop.f32.mrf.mxu0  ;;  %1328 = vadd.xlane.f32.xlu0 %v1327_v21 }
 0x14e   :  { %v3099_v27 = vadd.f32 %v2314_v20, %v1178_v18  ;;  %v2253_v46 = vadd.f32 %v2252_v19, %v2251_v15  ;;  %v2316_v0 = vpop.f32.mrf.mxu1  ;;  %v1408_v51 = vsel %vm1302_vm0, %v1376_v24, 0.0 }
 0x14f   :  { %v2317_v32 = vadd.f32 %v2316_v0, %v2315_v23  ;;  %v2254_v28 = vpop.f32.mrf.mxu0  ;;  %1406 = vadd.xlane.f32.xlu1 %v1405_v30 }
 0x150   :  { %v1183_v22 = vadd.f32 %v2253_v46, %v1086_v26  ;;  %v2318_v31 = vpop.f32.mrf.mxu1  ;;  %v1330_v12 = vsel %vm1302_vm0, %v3099_v27, 0.0  ;;  %v1377_v10 = vmul.f32 %v3099_v27, %v3099_v27  ;;  %v1102_v26 = vadd.f32 %v2201_v1, %v2137_v8  ;;  %v1686_v8 = vld [vmem:[%s3415_s3 + $0x70] sm:$0xff]  ;;  %v1687_v1 = vld [vmem:[%s3415_s3 + $0x78] sm:$0xff] }
 0x151   :  { %v2255_v29 = vpop.f32.mrf.mxu0  ;;  %1409 = vadd.xlane.f32.xlu0 %v1408_v51 }
 0x152   :  { %v3109_v45 = vadd.f32 %v2317_v32, %v1183_v22  ;;  %v2256_v47 = vadd.f32 %v2255_v29, %v2254_v28  ;;  %v2319_v9 = vpop.f32.mrf.mxu1  ;;  %v1411_v3 = vsel %vm1302_vm0, %v1377_v10, 0.0 }
 0x153   :  { %v2257_v13 = vpop.f32.mrf.mxu0  ;;  %1331 = vadd.xlane.f32.xlu1 %v1330_v12  ;;  %v2320_v42 = vadd.f32 %v2319_v9, %v2318_v31 }
 0x154   :  { %v1186_v39 = vadd.f32 %v2256_v47, %v2991_v41  ;;  %v2321_v40 = vpop.f32.mrf.mxu1  ;;  %v1333_v43 = vsel %vm1302_vm0, %v3109_v45, 0.0  ;;  %v1378_v53 = vmul.f32 %v3109_v45, %v3109_v45  ;;  %v3123_v41 = vpop.permute.xlu1 %1588 }
 0x155   :  { %v2258_v48 = vpop.f32.mrf.mxu0  ;;  %1334 = vadd.xlane.f32.xlu0 %v1333_v43 }
 0x156   :  { %v3120_v34 = vadd.f32 %v2320_v42, %v1186_v39  ;;  %v2259_v35 = vadd.f32 %v2258_v48, %v2257_v13  ;;  %v2322_v36 = vpop.f32.mrf.mxu1  ;;  %v1414_v7 = vsel %vm1302_vm0, %v1378_v53, 0.0 }
 0x157   :  { %v2323_v11 = vadd.f32 %v2322_v36, %v2321_v40  ;;  %v2260_v4 = vpop.f32.mrf.mxu0  ;;  %1412 = vadd.xlane.f32.xlu1 %v1411_v3 }
 0x158   :  { %v1191_v5 = vadd.f32 %v2259_v35, %v1094_v50  ;;  %v2324_v6 = vpop.f32.mrf.mxu1  ;;  %v1336_v18 = vsel %vm1302_vm0, %v3120_v34, 0.0  ;;  %v1379_v20 = vmul.f32 %v3120_v34, %v3120_v34  ;;  %v3141_v19 = vpop.permute.xlu1 %1593 }
 0x159   :  { %v2261_v63 = vpop.f32.mrf.mxu0  ;;  %1415 = vadd.xlane.f32.xlu0 %v1414_v7  ;;  %v1685_v7 = vld [vmem:[%s3415_s3 + $0x68] sm:$0xff] }
 0x15a   :  { %v3130_v2 = vadd.f32 %v2323_v11, %v1191_v5  ;;  %v2262_v14 = vadd.f32 %v2261_v63, %v2260_v4  ;;  %v2325_v15 = vpop.f32.mrf.mxu1  ;;  %v1417_v32 = vsel %vm1302_vm0, %v1379_v20, 0.0  ;;  %v3175_v4 = vpop.permute.xlu0 %1578 }
 0x15b   :  { %v2263_v23 = vpop.f32.mrf.mxu0  ;;  %1337 = vadd.xlane.f32.xlu1 %v1336_v18  ;;  %v2326_v56 = vadd.f32 %v2325_v15, %v2324_v6 }
 0x15c   :  { %v1194_v21 = vadd.f32 %v2262_v14, %v3001_v58  ;;  %v2327_v59 = vpop.f32.mrf.mxu1  ;;  %v1339_v57 = vsel %vm1302_vm0, %v3130_v2, 0.0  ;;  %v1380_v60 = vmul.f32 %v3130_v2, %v3130_v2  ;;  %v3153_v10 = vpop.permute.xlu1 %1598 }
 0x15d   :  { %v2264_v24 = vpop.f32.mrf.mxu0  ;;  %1340 = vadd.xlane.f32.xlu0 %v1339_v57 }
 0x15e   :  { %v3143_v46 = vadd.f32 %v2326_v56, %v1194_v21  ;;  %v2265_v0 = vadd.f32 %v2264_v24, %v2263_v23  ;;  %v2328_v30 = vpop.f32.mrf.mxu1  ;;  %v1420_v51 = vsel %vm1302_vm0, %v1380_v60, 0.0  ;;  %v3179_v6 = vpop.permute.xlu0 %1623 }
 0x15f   :  { %v2329_v58 = vadd.f32 %v2328_v30, %v2327_v59  ;;  %v2266_v28 = vpop.f32.mrf.mxu0  ;;  %1418 = vadd.xlane.f32.xlu1 %v1417_v32 }
 0x160   :  { %v1199_v22 = vadd.f32 %v2265_v0, %v1102_v26  ;;  %v2330_v31 = vpop.f32.mrf.mxu1  ;;  %v1342_v9 = vsel %vm1302_vm0, %v3143_v46, 0.0  ;;  %v1381_v12 = vmul.f32 %v3143_v46, %v3143_v46  ;;  %v3164_v50 = vpop.permute.xlu1 %1603 }
 0x161   :  { %v2267_v33 = vpop.f32.mrf.mxu0  ;;  %1421 = vadd.xlane.f32.xlu0 %v1420_v51 }
 0x162   :  { %v3147_v52 = vadd.f32 %v2329_v58, %v1199_v22  ;;  %v2268_v29 = vadd.f32 %v2267_v33, %v2266_v28  ;;  %v2331_v47 = vpop.f32.mrf.mxu1  ;;  %v1423_v53 = vsel %vm1302_vm0, %v1381_v12, 0.0  ;;  %v3192_v14 = vpop.permute.xlu0 %1633 }
 0x163   :  { %1343 = vadd.xlane.f32.xlu1 %v1342_v9  ;;  %v2332_v39 = vadd.f32 %v2331_v47, %v2330_v31 }
 0x164   :  { %3419 = vst [vmem:[#allocation2_spill] sm:$0xff] %v3147_v52  ;;  %v1202_v13 = vadd.f32 %v2268_v29, %v3011_v17  ;;  %v1345_v42 = vsel %vm1302_vm0, %v3147_v52, 0.0  ;;  %v1382_v40 = vmul.f32 %v3147_v52, %v3147_v52  ;;  %v3171_v3 = vpop.permute.xlu1 %1608 }
 0x165   :  { %1346 = vadd.xlane.f32.xlu0 %v1345_v42 }
 0x166   :  { %v3160_v43 = vadd.f32 %v2332_v39, %v1202_v13  ;;  %v1426_v48 = vsel %vm1302_vm0, %v1382_v40, 0.0  ;;  %v3196_v18 = vpop.permute.xlu0 %1643 }
 0x167   :  { %1424 = vadd.xlane.f32.xlu1 %v1423_v53  ;;  %3421 = vst [vmem:[#allocation4_spill] sm:$0xff] %v3196_v18 }
 0x168   :  { %3420 = vst [vmem:[#allocation3_spill] sm:$0xff] %v3160_v43  ;;  %v1348_v17 = vsel %vm1302_vm0, %v3160_v43, 0.0  ;;  %v1383_v35 = vmul.f32 %v3160_v43, %v3160_v43  ;;  %v3173_v11 = vpop.permute.xlu1 %1613 }
 0x169   :  { %1427 = vadd.xlane.f32.xlu0 %v1426_v48 }
 0x16a   :  { %v1429_v36 = vsel %vm1302_vm0, %v1383_v35, 0.0  ;;  %v3200_v23 = vpop.permute.xlu0 %1653 }
 0x16b   :  { %1349 = vadd.xlane.f32.xlu1 %v1348_v17  ;;  %3423 = vst [vmem:[#allocation6_spill] sm:$0xff] %v3200_v23 }
 0x16c   :  { %v3177_v5 = vpop.permute.xlu1 %1618 }
 0x16e   :  { %v3204_v56 = vpop.permute.xlu0 %1695 }
 0x16f   :  { %1430 = vadd.xlane.f32.xlu1 %v1429_v36 }
 0x170   :  { %v3190_v63 = vpop.permute.xlu1 %1628 }
 0x172   :  { %v3208_v57 = vpop.permute.xlu0 %1705 }
 0x174   :  { %v3194_v15 = vpop.permute.xlu1 %1638 }
 0x176   :  { %v3212_v24 = vpop.permute.xlu0 %1715 }
 0x178   :  { %v3198_v20 = vpop.permute.xlu1 %1648 }
 0x179   :  { %3422 = vst [vmem:[#allocation5_spill] sm:$0xff] %v3198_v20 }
 0x17a   :  { %v3216_v0 = vpop.permute.xlu0 %1725 }
 0x17c   :  { %v3202_v21 = vpop.permute.xlu1 %1690 }
 0x17e   :  { %v3220_v32 = vpop.permute.xlu0 %1735 }
 0x17f   :  { %1755 = vperm.xlu0 %2334, %v1685_v7  }
 0x180   :  { %1760 = vperm.xlu1 %2335, %v1686_v8   ;;  %v3206_v59 = vpop.permute.xlu1 %1700 }
 0x182   :  { %v3224_v28 = vpop.permute.xlu0 %1745 }
 0x183   :  { %1765 = vperm.xlu0 %2334, %v1687_v1  }
 0x184   :  { %v3210_v60 = vpop.permute.xlu1 %1710 }
 0x188   :  { %v3214_v26 = vpop.permute.xlu1 %1720 }
 0x18c   :  { %v3218_v30 = vpop.permute.xlu1 %1730 }
 0x190   :  { %v3222_v58 = vpop.permute.xlu1 %1740 }
 0x194   :  { %v3226_v51 = vpop.permute.xlu1 %1750 }
 0x1b6   :  { %v1305_v22 = vpop.xlane.xlu0 %1304 }
 0x1b7   :  { %v1352_v31 = vmul.f32 0.03125, %v1305_v22 }
 0x1b9   :  { %v1448_v29 = vmul.f32 %v1352_v31, %v1352_v31 }
 0x1ba   :  { %v1386_v33 = vpop.xlane.xlu0 %1385 }
 0x1bb   :  { %v1432_v47 = vmul.f32 0.03125, %v1386_v33 }
 0x1bc   :  { %v1389_v9 = vpop.xlane.xlu1 %1388 }
 0x1bd   :  { %v1464_v12 = vsub.f32 %v1432_v47, %v1448_v29  ;;  %v1433_v48 = vmul.f32 0.03125, %v1389_v9 }
 0x1be   :  { %v1308_v13 = vpop.xlane.xlu0 %1307 }
 0x1bf   :  { %v1480_v39 = vmax.f32 %v1464_v12, 0.0  ;;  %v3228_v42 = vmul.f32 0.03125, %v1308_v13 }
 0x1c0   :  { %v1311_v40 = vpop.xlane.xlu1 %1310 }
 0x1c1   :  { %v1512_v53 = vadd.f32 1e-05, %v1480_v39  ;;  %v1449_v17 = vmul.f32 %v3228_v42, %v3228_v42  ;;  %v3232_v35 = vmul.f32 0.03125, %v1311_v40 }
 0x1c2   :  { %v1392_v36 = vpop.xlane.xlu0 %1391 }
 0x1c3   :  { %2400 = vrsqrt.f32 %v1512_v53  ;;  %v1465_v7 = vsub.f32 %v1433_v48, %v1449_v17  ;;  %v1450_v8 = vmul.f32 %v3232_v35, %v3232_v35  ;;  %v1434_v1 = vmul.f32 0.03125, %v1392_v36 }
 0x1c4   :  { %v1314_v22 = vpop.xlane.xlu1 %1313 }
 0x1c5   :  { %v1481_v33 = vmax.f32 %v1465_v7, 0.0  ;;  %v3236_v29 = vmul.f32 0.03125, %v1314_v22  ;;  %v1466_v47 = vsub.f32 %v1434_v1, %v1450_v8 }
 0x1c6   :  { %v1317_v12 = vpop.xlane.xlu0 %1316 }
 0x1c7   :  { %v1513_v13 = vadd.f32 1e-05, %v1481_v33  ;;  %v3238_v9 = vmul.f32 0.03125, %v1317_v12  ;;  %v1482_v39 = vmax.f32 %v1466_v47, 0.0  ;;  %v1451_v40 = vmul.f32 %v3236_v29, %v3236_v29 }
 0x1c8   :  { %v1395_v23 = vpop.xlane.xlu1 %1394 }
 0x1c9   :  { %2402 = vrsqrt.f32 %v1513_v13  ;;  %v1435_v53 = vmul.f32 0.03125, %v1395_v23  ;;  %v1514_v48 = vadd.f32 1e-05, %v1482_v39  ;;  %v1452_v36 = vmul.f32 %v3238_v9, %v3238_v9 }
 0x1ca   :  { %v1398_v17 = vpop.xlane.xlu0 %1397  ;;  %v1496_v13 = vsub.f32 %v3017_v44, %v1352_v31 }
 0x1cb   :  { %v1467_v7 = vsub.f32 %v1435_v53, %v1451_v40  ;;  %v1436_v22 = vmul.f32 0.03125, %v1398_v17  ;;  %2404 = vrsqrt.f32 %v1514_v48 }
 0x1cc   :  { %v1320_v8 = vpop.xlane.xlu1 %1319 }
 0x1cd   :  { %v1483_v1 = vmax.f32 %v1467_v7, 0.0  ;;  %v1468_v33 = vsub.f32 %v1436_v22, %v1452_v36  ;;  %v3244_v12 = vmul.f32 0.03125, %v1320_v8  ;;  %v1497_v22 = vsub.f32 %v3023_v61, %v3228_v42 }
 0x1ce   :  { %v1323_v47 = vpop.xlane.xlu0 %1322 }
 0x1cf   :  { %v1515_v20 = vadd.f32 1e-05, %v1483_v1  ;;  %v1484_v43 = vmax.f32 %v1468_v33, 0.0  ;;  %v1453_v23 = vmul.f32 %v3244_v12, %v3244_v12  ;;  %v3249_v39 = vmul.f32 0.03125, %v1323_v47 }
 0x1d0   :  { %v2401_v18 = vpop.eup %2400  ;;  %v1401_v52 = vpop.xlane.xlu1 %1400 }
 0x1d1   :  { %v1544_v40 = vmul.f32 %v2401_v18, %v1496_v13  ;;  %2406 = vrsqrt.f32 %v1515_v20  ;;  %v1516_v53 = vadd.f32 1e-05, %v1484_v43  ;;  %v1437_v48 = vmul.f32 0.03125, %v1401_v52 }
 0x1d2   :  { %v1454_v17 = vmul.f32 %v3249_v39, %v3249_v39  ;;  %v1404_v36 = vpop.xlane.xlu0 %1403 }
 0x1d3   :  { %v1656_v7 = vmul.f32 %v3175_v4, %v1544_v40  ;;  %2408 = vrsqrt.f32 %v1516_v53  ;;  %v1469_v44 = vsub.f32 %v1437_v48, %v1453_v23  ;;  %v1438_v31 = vmul.f32 0.03125, %v1404_v36 }
 0x1d4   :  { %v1326_v8 = vpop.xlane.xlu1 %1325  ;;  %v1498_v23 = vsub.f32 %v3033_v25, %v3232_v35 }
 0x1d5   :  { %v1768_v1 = vadd.f32 %v3202_v21, %v1656_v7  ;;  %v1485_v33 = vmax.f32 %v1469_v44, 0.0  ;;  %v1470_v18 = vsub.f32 %v1438_v31, %v1454_v17  ;;  %v3257_v20 = vmul.f32 0.03125, %v1326_v8 }
 0x1d6   :  { %v2403_v52 = vpop.eup %2402  ;;  %v1329_v43 = vpop.xlane.xlu0 %1328 }
 0x1d7   :  { %vm1784_vm2 = vcmp.gt.f32.partialorder %v1768_v1, 0.0  ;;  %v1800_v47 = vmul.f32 0.2, %v1768_v1  ;;  %v1545_v13 = vmul.f32 %v2403_v52, %v1497_v22  ;;  %v1517_v4 = vadd.f32 1e-05, %v1485_v33 }
 0x1d8   :  { %v1486_v40 = vmax.f32 %v1470_v18, 0.0  ;;  %v1455_v61 = vmul.f32 %v3257_v20, %v3257_v20  ;;  %v3263_v42 = vmul.f32 0.03125, %v1329_v43  ;;  %v1407_v21 = vpop.xlane.xlu1 %1406  ;;  %v2405_v53 = vpop.eup %2404 }
 0x1d9   :  { %v1816_v48 = vsel %vm1784_vm2, %v1768_v1, %v1800_v47  ;;  %v1657_v17 = vmul.f32 %v3107_v38, %v1545_v13  ;;  %2410 = vrsqrt.f32 %v1517_v4  ;;  %v1439_v36 = vmul.f32 0.03125, %v1407_v21 }
 0x1da   :  { %v2061_v7 = vpack.c.bf16 %v1816_v48, %v1816_v48  ;;  %v1546_v44 = vmul.f32 %v2405_v53, %v1498_v23  ;;  %v1518_v31 = vadd.f32 1e-05, %v1486_v40  ;;  %v1410_v22 = vpop.xlane.xlu0 %1409  ;;  %v1456_v25 = vmul.f32 %v3263_v42, %v3263_v42 }
 0x1db   :  { %v1769_v8 = vadd.f32 %v3204_v56, %v1657_v17  ;;  %v1471_v35 = vsub.f32 %v1439_v36, %v1455_v61  ;;  %v1440_v33 = vmul.f32 0.03125, %v1410_v22  ;;  %v1499_v1 = vsub.f32 %v3041_v55, %v3236_v29 }
 0x1dc   :  { %1897 = vst.msk [vmem:[%s3416_s4] sm:$0xf] %vm1896_vm1, %v2061_v7  ;;  %v1658_v38 = vmul.f32 %v3123_v41, %v1546_v44  ;;  %2412 = vrsqrt.f32 %v1518_v31  ;;  %v1332_v18 = vpop.xlane.xlu1 %1331  ;;  %v1500_v4 = vsub.f32 %v3050_v37, %v3238_v9 }
 0x1dd   :  { %vm1785_vm3 = vcmp.gt.f32.partialorder %v1769_v8, 0.0  ;;  %v1801_v52 = vmul.f32 0.2, %v1769_v8  ;;  %v1487_v56 = vmax.f32 %v1471_v35, 0.0  ;;  %v1472_v43 = vsub.f32 %v1440_v33, %v1456_v25 }
 0x1de   :  { %v2407_v47 = vpop.eup %2406  ;;  %v1770_v13 = vadd.f32 %v3206_v59, %v1658_v38  ;;  %v3279_v23 = vmul.f32 0.03125, %v1332_v18  ;;  %v1335_v40 = vpop.xlane.xlu0 %1334 }
 0x1df   :  { %v1817_v61 = vsel %vm1785_vm3, %v1769_v8, %v1801_v52  ;;  %v1547_v41 = vmul.f32 %v2407_v47, %v1499_v1  ;;  %v1519_v21 = vadd.f32 1e-05, %v1487_v56  ;;  %v1488_v53 = vmax.f32 %v1472_v43, 0.0 }
 0x1e0   :  { %v2409_v55 = vpop.eup %2408  ;;  %v2062_v29 = vpack.c.bf16 %v1817_v61, %v1817_v61  ;;  %vm1786_vm4 = vcmp.gt.f32.partialorder %v1770_v13, 0.0  ;;  %v1802_v48 = vmul.f32 0.2, %v1770_v13  ;;  %v1413_v17 = vpop.xlane.xlu1 %1412  ;;  %v1457_v9 = vmul.f32 %v3279_v23, %v3279_v23 }
 0x1e1   :  { %v1659_v36 = vmul.f32 %v3141_v19, %v1547_v41  ;;  %v1548_v7 = vmul.f32 %v2409_v55, %v1500_v4  ;;  %2414 = vrsqrt.f32 %v1519_v21  ;;  %v1520_v59 = vadd.f32 1e-05, %v1488_v53 }
 0x1e2   :  { %1898 = vst.msk [vmem:[%s3416_s4 + $0x4] sm:$0xf] %vm1896_vm1, %v2062_v29  ;;  %v1818_v37 = vsel %vm1786_vm4, %v1770_v13, %v1802_v48  ;;  %v3288_v44 = vmul.f32 0.03125, %v1335_v40  ;;  %v1441_v31 = vmul.f32 0.03125, %v1413_v17  ;;  %v1416_v22 = vpop.xlane.xlu0 %1415  ;;  %v1502_v21 = vsub.f32 %v3069_v54, %v3249_v39 }
 0x1e3   :  { %v2063_v8 = vpack.c.bf16 %v1818_v37, %v1818_v37  ;;  %v1771_v25 = vadd.f32 %v3208_v57, %v1659_v36  ;;  %v1660_v19 = vmul.f32 %v3153_v10, %v1548_v7  ;;  %2416 = vrsqrt.f32 %v1520_v59 }
 0x1e4   :  { %v1458_v35 = vmul.f32 %v3288_v44, %v3288_v44  ;;  %v1473_v33 = vsub.f32 %v1441_v31, %v1457_v9  ;;  %v1442_v38 = vmul.f32 0.03125, %v1416_v22  ;;  %v1338_v1 = vpop.xlane.xlu1 %1337  ;;  %v1501_v57 = vsub.f32 %v3061_v16, %v3244_v12 }
 0x1e5   :  { %1899 = vst.msk [vmem:[%s3416_s4 + $0x8] sm:$0xf] %vm1896_vm1, %v2063_v8  ;;  %vm1787_vm5 = vcmp.gt.f32.partialorder %v1771_v25, 0.0  ;;  %v1803_v18 = vmul.f32 0.2, %v1771_v25  ;;  %v1772_v52 = vadd.f32 %v3210_v60, %v1660_v19  ;;  %v3301_v47 = vmul.f32 0.03125, %v1338_v1 }
 0x1e6   :  { %v2411_v10 = vpop.eup %2410  ;;  %v1489_v56 = vmax.f32 %v1473_v33, 0.0  ;;  %v1474_v43 = vsub.f32 %v1442_v38, %v1458_v35  ;;  %v1341_v13 = vpop.xlane.xlu0 %1340  ;;  %v1503_v39 = vsub.f32 %v3080_v49, %v3257_v20 }
 0x1e7   :  { %v1819_v4 = vsel %vm1787_vm5, %v1771_v25, %v1803_v18  ;;  %vm1788_vm6 = vcmp.gt.f32.partialorder %v1772_v52, 0.0  ;;  %v1804_v40 = vmul.f32 0.2, %v1772_v52  ;;  %v1549_v61 = vmul.f32 %v2411_v10, %v1501_v57 }
 0x1e8   :  { %v2064_v41 = vpack.c.bf16 %v1819_v4, %v1819_v4  ;;  %v1521_v53 = vadd.f32 1e-05, %v1489_v56  ;;  %v1490_v55 = vmax.f32 %v1474_v43, 0.0  ;;  %v1419_v60 = vpop.xlane.xlu1 %1418  ;;  %v3306_v12 = vmul.f32 0.03125, %v1341_v13 }
 0x1e9   :  { %v2413_v29 = vpop.eup %2412  ;;  %v1820_v48 = vsel %vm1788_vm6, %v1772_v52, %v1804_v40  ;;  %v1661_v16 = vmul.f32 %v3164_v50, %v1549_v61  ;;  %v1459_v50 = vmul.f32 %v3301_v47, %v3301_v47  ;;  %v1443_v37 = vmul.f32 0.03125, %v1419_v60 }
 0x1ea   :  { %1900 = vst.msk [vmem:[%s3416_s4 + $0xc] sm:$0xf] %vm1896_vm1, %v2064_v41  ;;  %v2065_v17 = vpack.c.bf16 %v1820_v48, %v1820_v48  ;;  %v1550_v36 = vmul.f32 %v2413_v29, %v1502_v21  ;;  %2418 = vrsqrt.f32 %v1521_v53  ;;  %v1522_v7 = vadd.f32 1e-05, %v1490_v55  ;;  %v1422_v59 = vpop.xlane.xlu0 %1421 }
 0x1eb   :  { %v1773_v54 = vadd.f32 %v3212_v24, %v1661_v16  ;;  %v1460_v31 = vmul.f32 %v3306_v12, %v3306_v12  ;;  %v1444_v22 = vmul.f32 0.03125, %v1422_v59  ;;  %v1475_v49 = vsub.f32 %v1443_v37, %v1459_v50 }
 0x1ec   :  { %1901 = vst.msk [vmem:[%s3416_s4 + $0x10] sm:$0xf] %vm1896_vm1, %v2065_v17  ;;  %v1662_v9 = vmul.f32 %v3171_v3, %v1550_v36  ;;  %2420 = vrsqrt.f32 %v1522_v7  ;;  %v1344_v24 = vpop.xlane.xlu1 %1343  ;;  %v1504_v3 = vsub.f32 %v3088_v62, %v3263_v42 }
 0x1ed   :  { %vm1789_vm7 = vcmp.gt.f32.partialorder %v1773_v54, 0.0  ;;  %v1805_v8 = vmul.f32 0.2, %v1773_v54  ;;  %v3324_v20 = vmul.f32 0.03125, %v1344_v24  ;;  %v1476_v35 = vsub.f32 %v1444_v22, %v1460_v31 }
 0x1ee   :  { %v2415_v25 = vpop.eup %2414  ;;  %v1774_v19 = vadd.f32 %v3214_v26, %v1662_v9  ;;  %v1347_v33 = vpop.xlane.xlu0 %1346  ;;  %v1491_v18 = vmax.f32 %v1475_v49, 0.0  ;;  %v1506_v9 = vsub.f32 %v3109_v45, %v3288_v44 }
 0x1ef   :  { %v1821_v38 = vsel %vm1789_vm7, %v1773_v54, %v1805_v8  ;;  %v1551_v1 = vmul.f32 %v2415_v25, %v1503_v39  ;;  %v1492_v56 = vmax.f32 %v1476_v35, 0.0  ;;  %v1461_v26 = vmul.f32 %v3324_v20, %v3324_v20 }
 0x1f0   :  { %v2417_v52 = vpop.eup %2416  ;;  %v2066_v57 = vpack.c.bf16 %v1821_v38, %v1821_v38  ;;  %vm1790_vm8 = vcmp.gt.f32.partialorder %v1774_v19, 0.0  ;;  %v1806_v10 = vmul.f32 0.2, %v1774_v19  ;;  %v1425_v43 = vpop.xlane.xlu1 %1424  ;;  %v1523_v40 = vadd.f32 1e-05, %v1491_v18 }
 0x1f1   :  { %v1663_v13 = vmul.f32 %v3173_v11, %v1551_v1  ;;  %v1552_v4 = vmul.f32 %v2417_v52, %v1504_v3  ;;  %v1524_v42 = vadd.f32 1e-05, %v1492_v56  ;;  %v3336_v61 = vmul.f32 0.03125, %v1347_v33 }
 0x1f2   :  { %1902 = vst.msk [vmem:[%s3416_s4 + $0x14] sm:$0xf] %vm1896_vm1, %v2066_v57  ;;  %v1822_v62 = vsel %vm1790_vm8, %v1774_v19, %v1806_v10  ;;  %v1445_v41 = vmul.f32 0.03125, %v1425_v43  ;;  %v1428_v21 = vpop.xlane.xlu0 %1427  ;;  %2422 = vrsqrt.f32 %v1523_v40  ;;  %v1508_v43 = vsub.f32 %v3130_v2, %v3306_v12 }
 0x1f3   :  { %v2067_v53 = vpack.c.bf16 %v1822_v62, %v1822_v62  ;;  %v1775_v55 = vadd.f32 %v3216_v0, %v1663_v13  ;;  %v1664_v11 = vmul.f32 %v3177_v5, %v1552_v4  ;;  %2424 = vrsqrt.f32 %v1524_v42 }
 0x1f4   :  { %v1462_v60 = vmul.f32 %v3336_v61, %v3336_v61  ;;  %v1477_v29 = vsub.f32 %v1445_v41, %v1461_v26  ;;  %v1350_v48 = vpop.xlane.xlu1 %1349  ;;  %v1446_v36 = vmul.f32 0.03125, %v1428_v21  ;;  %v1505_v5 = vsub.f32 %v3099_v27, %v3279_v23 }
 0x1f5   :  { %1903 = vst.msk [vmem:[%s3416_s4 + $0x18] sm:$0xf] %vm1896_vm1, %v2067_v53  ;;  %vm1791_vm9 = vcmp.gt.f32.partialorder %v1775_v55, 0.0  ;;  %v1807_v16 = vmul.f32 0.2, %v1775_v55  ;;  %v1776_v17 = vadd.f32 %v3218_v30, %v1664_v11  ;;  %v3349_v7 = vmul.f32 0.03125, %v1350_v48 }
 0x1f6   :  { %v1493_v0 = vmax.f32 %v1477_v29, 0.0  ;;  %v1478_v50 = vsub.f32 %v1446_v36, %v1462_v60  ;;  %v1509_v26 = vsub.f32 %v3143_v46, %v3324_v20  ;;  %v3425_v29 = vld [vmem:[#allocation4_spill] sm:$0xff]  ;;  %v3426_v20 = vld [vmem:[#allocation3_spill] sm:$0xff] }
 0x1f7   :  { %v2419_v59 = vpop.eup %2418  ;;  %v1823_v54 = vsel %vm1791_vm9, %v1775_v55, %v1807_v16  ;;  %vm1792_vm10 = vcmp.gt.f32.partialorder %v1776_v17, 0.0  ;;  %v1808_v39 = vmul.f32 0.2, %v1776_v17  ;;  %v1463_v27 = vmul.f32 %v3349_v7, %v3349_v7 }
 0x1f8   :  { %v2068_v37 = vpack.c.bf16 %v1823_v54, %v1823_v54  ;;  %v1553_v31 = vmul.f32 %v2419_v59, %v1505_v5  ;;  %v1525_v22 = vadd.f32 1e-05, %v1493_v0  ;;  %v1431_v24 = vpop.xlane.xlu1 %1430  ;;  %v1494_v49 = vmax.f32 %v1478_v50, 0.0 }
 0x1f9   :  { %v2421_v30 = vpop.eup %2420  ;;  %v1824_v8 = vsel %vm1792_vm10, %v1776_v17, %v1808_v39  ;;  %v1447_v23 = vmul.f32 0.03125, %v1431_v24  ;;  %v3427_v17 = vld [vmem:[#allocation5_spill] sm:$0xff] }
 0x1fa   :  { %1904 = vst.msk [vmem:[%s3416_s4 + $0x1c] sm:$0xf] %vm1896_vm1, %v2068_v37  ;;  %v2069_v25 = vpack.c.bf16 %v1824_v8, %v1824_v8  ;;  %v1665_v19 = vmul.f32 %v3179_v6, %v1553_v31  ;;  %v1554_v35 = vmul.f32 %v2421_v30, %v1506_v9  ;;  %2426 = vrsqrt.f32 %v1525_v22  ;;  %v3428_v31 = vld [vmem:[#allocation6_spill] sm:$0xff] }
 0x1fb   :  { %v1526_v45 = vadd.f32 1e-05, %v1494_v49  ;;  %v1479_v44 = vsub.f32 %v1447_v23, %v1463_v27  ;;  %v1507_v6 = vsub.f32 %v3120_v34, %v3301_v47 }
 0x1fc   :  { %1905 = vst.msk [vmem:[%s3416_s4 + $0x20] sm:$0xf] %vm1896_vm1, %v2069_v25  ;;  %v1777_v33 = vadd.f32 %v3220_v32, %v1665_v19  ;;  %v1666_v38 = vmul.f32 %v3190_v63, %v1554_v35  ;;  %v1761_v59 = vpop.permute.xlu1 %1760 }
 0x1fd   :  { %2428 = vrsqrt.f32 %v1526_v45  ;;  %v1495_v3 = vmax.f32 %v1479_v44, 0.0 }
 0x1fe   :  { %vm1793_vm11 = vcmp.gt.f32.partialorder %v1777_v33, 0.0  ;;  %v1809_v1 = vmul.f32 0.2, %v1777_v33  ;;  %v1778_v18 = vadd.f32 %v3222_v58, %v1666_v38 }
 0x1ff   :  { %v1527_v52 = vadd.f32 1e-05, %v1495_v3  ;;  %v2423_v57 = vpop.eup %2422 }
 0x200   :  { %v1825_v10 = vsel %vm1793_vm11, %v1777_v33, %v1809_v1  ;;  %vm1794_vm12 = vcmp.gt.f32.partialorder %v1778_v18, 0.0  ;;  %v1810_v56 = vmul.f32 0.2, %v1778_v18  ;;  %v2425_v32 = vpop.eup %2424  ;;  %v1555_v63 = vmul.f32 %v2423_v57, %v1507_v6 }
 0x201   :  { %v2070_v13 = vpack.c.bf16 %v1825_v10, %v1825_v10  ;;  %2430 = vrsqrt.f32 %v1527_v52  ;;  %v1556_v40 = vmul.f32 %v2425_v32, %v1508_v43 }
 0x202   :  { %v1826_v4 = vsel %vm1794_vm12, %v1778_v18, %v1810_v56  ;;  %v1667_v58 = vmul.f32 %v3192_v14, %v1555_v63 }
 0x203   :  { %1906 = vst.msk [vmem:[%s3416_s4 + $0x24] sm:$0xf] %vm1896_vm1, %v2070_v13  ;;  %v2071_v34 = vpack.c.bf16 %v1826_v4, %v1826_v4  ;;  %v1668_v47 = vmul.f32 %v3194_v15, %v1556_v40  ;;  %v3424_v15 = vld [vmem:[#allocation2_spill] sm:$0xff] }
 0x204   :  { %v1779_v2 = vadd.f32 %v3224_v28, %v1667_v58  ;;  %v1510_v53 = vsub.f32 %v3424_v15, %v3336_v61  ;;  %v1511_v61 = vsub.f32 %v3426_v20, %v3349_v7 }
 0x205   :  { %1907 = vst.msk [vmem:[%s3416_s4 + $0x28] sm:$0xf] %vm1896_vm1, %v2071_v34  ;;  %v1780_v12 = vadd.f32 %v3226_v51, %v1668_v47  ;;  %v1756_v51 = vpop.permute.xlu0 %1755 }
 0x206   :  { %vm1795_vm13 = vcmp.gt.f32.partialorder %v1779_v2, 0.0  ;;  %v1811_v42 = vmul.f32 0.2, %v1779_v2 }
 0x207   :  { %v2427_v62 = vpop.eup %2426  ;;  %vm1796_vm14 = vcmp.gt.f32.partialorder %v1780_v12, 0.0  ;;  %v1812_v41 = vmul.f32 0.2, %v1780_v12 }
 0x208   :  { %v1557_v14 = vmul.f32 %v2427_v62, %v1509_v26  ;;  %v1827_v21 = vsel %vm1795_vm13, %v1779_v2, %v1811_v42 }
 0x209   :  { %v2072_v11 = vpack.c.bf16 %v1827_v21, %v1827_v21  ;;  %v1828_v60 = vsel %vm1796_vm14, %v1780_v12, %v1812_v41  ;;  %v1766_v24 = vpop.permute.xlu0 %1765 }
 0x20a   :  { %v2429_v55 = vpop.eup %2428  ;;  %v1669_v28 = vmul.f32 %v3425_v29, %v1557_v14  ;;  %v2073_v48 = vpack.c.bf16 %v1828_v60, %v1828_v60 }
 0x20b   :  { %v1558_v16 = vmul.f32 %v2429_v55, %v1510_v53  ;;  %1908 = vst.msk [vmem:[%s3416_s4 + $0x2c] sm:$0xf] %vm1896_vm1, %v2072_v11 }
 0x20c   :  { %v1781_v46 = vadd.f32 %v1756_v51, %v1669_v28  ;;  %1909 = vst.msk [vmem:[%s3416_s4 + $0x30] sm:$0xf] %vm1896_vm1, %v2073_v48 }
 0x20d   :  { %v1670_v36 = vmul.f32 %v3427_v17, %v1558_v16 }
 0x20e   :  { %v2431_v5 = vpop.eup %2430  ;;  %vm1797_vm15 = vcmp.gt.f32.partialorder %v1781_v46, 0.0  ;;  %v1813_v0 = vmul.f32 0.2, %v1781_v46 }
 0x20f   :  { %v1782_v54 = vadd.f32 %v1761_v59, %v1670_v36  ;;  %v1559_v39 = vmul.f32 %v2431_v5, %v1511_v61 }
 0x210   :  { %v1829_v50 = vsel %vm1797_vm15, %v1781_v46, %v1813_v0 }
 0x211   :  { %v2074_v37 = vpack.c.bf16 %v1829_v50, %v1829_v50  ;;  %vm1798_vm0 = vcmp.gt.f32.partialorder %v1782_v54, 0.0  ;;  %v1814_v9 = vmul.f32 0.2, %v1782_v54  ;;  %v1671_v22 = vmul.f32 %v3428_v31, %v1559_v39 }
 0x213   :  { %1910 = vst.msk [vmem:[%s3416_s4 + $0x34] sm:$0xf] %vm1896_vm1, %v2074_v37  ;;  %v1830_v7 = vsel %vm1798_vm0, %v1782_v54, %v1814_v9  ;;  %v1783_v30 = vadd.f32 %v1766_v24, %v1671_v22 }
 0x214   :  { %v2075_v8 = vpack.c.bf16 %v1830_v7, %v1830_v7 }
 0x215   :  { %vm1799_vm2 = vcmp.gt.f32.partialorder %v1783_v30, 0.0  ;;  %v1815_v49 = vmul.f32 0.2, %v1783_v30 }
 0x216   :  { %1911 = vst.msk [vmem:[%s3416_s4 + $0x38] sm:$0xf] %vm1896_vm1, %v2075_v8 }
 0x217   :  { %v1831_v27 = vsel %vm1799_vm2, %v1783_v30, %v1815_v49 }
 0x218   :  { %v2076_v23 = vpack.c.bf16 %v1831_v27, %v1831_v27 }
 0x21a   :  { %1912 = vst.msk [vmem:[%s3416_s4 + $0x3c] sm:$0xf] %vm1896_vm1, %v2076_v23 }

// kernel: discriminator_forward.11
= control target key start
LH: loop header
LB: loop body
LE: loop exit
PB: predicated region body
PF: predicated region fallthrough
CT: control target
= control target key end

     0   :  { %v1926_v22 = vmov 1966171168   ;;  %v276_v24 = vlaneseq  ;;  %vm1480_vm0 = vcmask 1024   ;;  %s2369_s1 = inlined_call_operand.vmem [shape: bf16[2048,1], index: 1, kind: input, shape index: {}]   ;;  %s2370_s0 = inlined_call_operand.vmem [shape: bf16[2,2048], index: 0, kind: input, shape index: {}]   ;;  %s2371_s2 = inlined_call_operand.vmem [shape: f32[2,1], index: 2, kind: output, shape index: {}]  }
   0x1   :  { %v1792_v0 = vld [vmem:[%s2369_s1 + $0x78] sm:$0xff]   ;;  %v1796_v4 = vld [vmem:[%s2369_s1 + $0x70] sm:$0xff]   ;;  %v1800_v8 = vld [vmem:[%s2369_s1 + $0x68] sm:$0xff]   ;;  %v274_v23 = vunpack.c.l.s4 %v1926_v22 }
   0x2   :  { %v1793_v1 = vld [vmem:[%s2369_s1 + $0xf8] sm:$0xff]   ;;  %1615 = vmatprep.subr.bf16.mxu0 %v1792_v0  ;;  %v1797_v5 = vld [vmem:[%s2369_s1 + $0xf0] sm:$0xff]   ;;  %v1801_v9 = vld [vmem:[%s2369_s1 + $0xe8] sm:$0xff]   ;;  %v277_v30 = vshrl.u32 %v276_v24, 7 }
   0x3   :  { %v1794_v2 = vld [vmem:[%s2369_s1 + $0x38] sm:$0xff]   ;;  %1637 = vmatprep.subr.bf16.mxu1 %v1793_v1  ;;  %v1798_v6 = vld [vmem:[%s2369_s1 + $0x30] sm:$0xff]   ;;  %v1802_v10 = vld [vmem:[%s2369_s1 + $0x28] sm:$0xff]   ;;  %v275_v29 = vunpack.c.0.s8 %v274_v23 }
   0x4   :  { %v1795_v3 = vld [vmem:[%s2369_s1 + $0xb8] sm:$0xff]   ;;  %1616 = vmatpush3.bf16.msra.mxu0 %v1794_v2  ;;  %v1799_v7 = vld [vmem:[%s2369_s1 + $0xb0] sm:$0xff]   ;;  %v1803_v11 = vld [vmem:[%s2369_s1 + $0xa8] sm:$0xff]  }
   0x5   :  { %1638 = vmatpush3.bf16.msra.mxu1 %v1795_v3  ;;  %1617 = vmatprep.subr.bf16.mxu0 %v1796_v4  ;;  %v1804_v12 = vld [vmem:[%s2369_s1 + $0x60] sm:$0xff]   ;;  %v1808_v16 = vld [vmem:[%s2369_s1 + $0x58] sm:$0xff]   ;;  %v1812_v20 = vld [vmem:[%s2369_s1 + $0x50] sm:$0xff]   ;;  %v2032_v35 = vsub.s32 %v275_v29, %v277_v30 }
   0x6   :  { %1639 = vmatprep.subr.bf16.mxu1 %v1797_v5  ;;  %v1805_v13 = vld [vmem:[%s2369_s1 + $0xe0] sm:$0xff]   ;;  %v1809_v17 = vld [vmem:[%s2369_s1 + $0xd8] sm:$0xff]   ;;  %v1813_v21 = vld [vmem:[%s2369_s1 + $0xd0] sm:$0xff]  }
   0x7   :  { %v1806_v14 = vld [vmem:[%s2369_s1 + $0x20] sm:$0xff]   ;;  %v1810_v18 = vld [vmem:[%s2369_s1 + $0x18] sm:$0xff]   ;;  %v1814_v25 = vld [vmem:[%s2369_s1 + $0x10] sm:$0xff]  }
   0x8   :  { %1618 = vmatpush3.bf16.msra.mxu0 %v1798_v6  ;;  %v1807_v15 = vld [vmem:[%s2369_s1 + $0xa0] sm:$0xff]   ;;  %v1811_v19 = vld [vmem:[%s2369_s1 + $0x98] sm:$0xff]   ;;  %v1815_v26 = vld [vmem:[%s2369_s1 + $0x90] sm:$0xff]  }
   0x9   :  { %1640 = vmatpush3.bf16.msra.mxu1 %v1799_v7  ;;  %1619 = vmatprep.subr.bf16.mxu0 %v1800_v8  ;;  %v1816_v27 = vld [vmem:[%s2369_s1 + $0x48] sm:$0xff]   ;;  %v1820_v33 = vld [vmem:[%s2369_s1 + $0x40] sm:$0xff]   ;;  %v1826_v41 = vld [vmem:[%s2369_s1 + $0x178] sm:$0xff]  }
   0xa   :  { %1641 = vmatprep.subr.bf16.mxu1 %v1801_v9  ;;  %v1817_v28 = vld [vmem:[%s2369_s1 + $0xc8] sm:$0xff]   ;;  %v1821_v34 = vld [vmem:[%s2369_s1 + $0xc0] sm:$0xff]   ;;  %v1827_v42 = vld [vmem:[%s2369_s1 + $0x1f8] sm:$0xff]  }
   0xb   :  { %v1818_v31 = vld [vmem:[%s2369_s1 + $0x8] sm:$0xff]   ;;  %v1822_v36 = vld [vmem:[%s2369_s1] sm:$0xff]   ;;  %v1828_v47 = vld [vmem:[%s2369_s1 + $0x138] sm:$0xff]  }
   0xc   :  { %1620 = vmatpush3.bf16.msra.mxu0 %v1802_v10  ;;  %v1819_v32 = vld [vmem:[%s2369_s1 + $0x88] sm:$0xff]   ;;  %v1823_v37 = vld [vmem:[%s2369_s1 + $0x80] sm:$0xff]   ;;  %v1830_v50 = vld [vmem:[%s2369_s1 + $0x170] sm:$0xff]  }
   0xd   :  { %1642 = vmatpush3.bf16.msra.mxu1 %v1803_v11  ;;  %1621 = vmatprep.subr.bf16.mxu0 %v1804_v12  ;;  %v12_v38 = vld [vmem:[%s2370_s0] sm:$0xff]  ;;  %v1829_v52 = vld [vmem:[%s2369_s1 + $0x1b8] sm:$0xff]   ;;  %v1831_v54 = vld [vmem:[%s2369_s1 + $0x1f0] sm:$0xff]  }
   0xe   :  { %1643 = vmatprep.subr.bf16.mxu1 %v1805_v13  ;;  %v272_v39 = vcombine.high %v12_v38, %v12_v38  ;;  %v279_v40 = vrot.slane %v12_v38, %v2032_v35  ;;  %v1832_v55 = vld [vmem:[%s2369_s1 + $0x130] sm:$0xff]   ;;  %v1834_v57 = vld [vmem:[%s2369_s1 + $0x168] sm:$0xff]   ;;  %v1838_v61 = vld [vmem:[%s2369_s1 + $0x160] sm:$0xff]  }
   0xf   :  { %v1833_v58 = vld [vmem:[%s2369_s1 + $0x1b0] sm:$0xff]   ;;  %v1835_v59 = vld [vmem:[%s2369_s1 + $0x1e8] sm:$0xff]   ;;  %v1839_v63 = vld [vmem:[%s2369_s1 + $0x1e0] sm:$0xff]  }
  0x10   :  { %1622 = vmatpush3.bf16.msra.mxu0 %v1806_v14  ;;  %v287_v43 = vcombine.high %v279_v40, %v279_v40  ;;  %v295_v44 = vrot.slane %v279_v40, %v2032_v35  ;;  %v2052_v45 = vrot.slane %v272_v39, %v2032_v35  ;;  %v1836_v60 = vld [vmem:[%s2369_s1 + $0x128] sm:$0xff]   ;;  %v1840_v0 = vld [vmem:[%s2369_s1 + $0x120] sm:$0xff]   ;;  %v1842_v1 = vld [vmem:[%s2369_s1 + $0x158] sm:$0xff]  }
  0x11   :  { %1644 = vmatpush3.bf16.msra.mxu1 %v1807_v15  ;;  %1623 = vmatprep.subr.bf16.mxu0 %v1808_v16  ;;  %v1837_v62 = vld [vmem:[%s2369_s1 + $0x1a8] sm:$0xff]   ;;  %v1841_v2 = vld [vmem:[%s2369_s1 + $0x1a0] sm:$0xff]   ;;  %v1843_v3 = vld [vmem:[%s2369_s1 + $0x1d8] sm:$0xff]  }
  0x12   :  { %1645 = vmatprep.subr.bf16.mxu1 %v1809_v17  ;;  %v309_v46 = vrot.slane %v287_v43, %v2032_v35  ;;  %v288_v48 = vcombine.high %v2052_v45, %v2052_v45  ;;  %v317_v49 = vcombine.high %v295_v44, %v295_v44  ;;  %v1844_v4 = vld [vmem:[%s2369_s1 + $0x118] sm:$0xff]   ;;  %v2112_v5 = vld [vmem:[%s2370_s0 + $0x8] sm:$0xff]  ;;  %v1846_v6 = vld [vmem:[%s2369_s1 + $0x150] sm:$0xff]  }
  0x13   :  { %v1845_v7 = vld [vmem:[%s2369_s1 + $0x198] sm:$0xff]   ;;  %v1847_v8 = vld [vmem:[%s2369_s1 + $0x1d0] sm:$0xff]   ;;  %v1850_v10 = vld [vmem:[%s2369_s1 + $0x148] sm:$0xff]   ;;  %v2134_v12 = vrot.slane %v2112_v5, %v2032_v35 }
  0x14   :  { %1624 = vmatpush3.bf16.msra.mxu0 %v1810_v18  ;;  %1186 = vmatprep.mubr.bf16.mxu0 %v309_v46  ;;  %v319_v51 = vcombine.high %v309_v46, %v309_v46  ;;  %v316_v53 = vrot.slane %v288_v48, %v2032_v35  ;;  %v1848_v9 = vld [vmem:[%s2369_s1 + $0x110] sm:$0xff]   ;;  %v1851_v13 = vld [vmem:[%s2369_s1 + $0x1c8] sm:$0xff]   ;;  %v1854_v15 = vld [vmem:[%s2369_s1 + $0x140] sm:$0xff]   ;;  %v321_v46 = vcombine.high %v2112_v5, %v2112_v5 }
  0x15   :  { %1646 = vmatpush3.bf16.msra.mxu1 %v1811_v19  ;;  %1625 = vmatprep.subr.bf16.mxu0 %v1812_v20  ;;  %v1849_v11 = vld [vmem:[%s2369_s1 + $0x190] sm:$0xff]   ;;  %v1852_v14 = vld [vmem:[%s2369_s1 + $0x108] sm:$0xff]   ;;  %v336_v17 = vcombine.high %v2134_v12, %v2134_v12  ;;  %v1855_v18 = vld [vmem:[%s2369_s1 + $0x1c0] sm:$0xff]   ;;  %v302_v20 = vrot.slane %v2052_v45, %v2032_v35 }
  0x16   :  { %1647 = vmatprep.subr.bf16.mxu1 %v1813_v21  ;;  %1226 = vmatprep.mubr.bf16.mxu1 %v319_v51  ;;  %v320_v56 = vcombine.high %v316_v53, %v316_v53  ;;  %v1853_v16 = vld [vmem:[%s2369_s1 + $0x188] sm:$0xff]   ;;  %v1856_v19 = vld [vmem:[%s2369_s1 + $0x100] sm:$0xff]   ;;  %v1858_v21 = vld [vmem:[%s2369_s1 + $0x278] sm:$0xff]  }
  0x17   :  { %v1857_v22 = vld [vmem:[%s2369_s1 + $0x180] sm:$0xff]   ;;  %v358_v23 = vrot.slane %v336_v17, %v2032_v35  ;;  %v1859_v24 = vld [vmem:[%s2369_s1 + $0x2f8] sm:$0xff]   ;;  %v1863_v30 = vld [vmem:[%s2369_s1 + $0x2f0] sm:$0xff]  }
  0x18   :  { %1626 = vmatpush3.bf16.msra.mxu0 %v1814_v25  ;;  %v1860_v25 = vld [vmem:[%s2369_s1 + $0x238] sm:$0xff]   ;;  %v1869_v38 = vld [vmem:[%s2369_s1 + $0x2a8] sm:$0xff]   ;;  %v1871_v39 = vld [vmem:[%s2369_s1 + $0x2e0] sm:$0xff]  }
  0x19   :  { %1648 = vmatpush3.bf16.msra.mxu1 %v1815_v26  ;;  %1627 = vmatprep.subr.bf16.mxu0 %v1816_v27  ;;  %v318_v26 = vcombine.high %v302_v20, %v302_v20  ;;  %v1862_v27 = vld [vmem:[%s2369_s1 + $0x270] sm:$0xff]   ;;  %v368_v29 = vcombine.high %v358_v23, %v358_v23  ;;  %v1872_v40 = vld [vmem:[%s2369_s1 + $0x220] sm:$0xff]   ;;  %v1875_v43 = vld [vmem:[%s2369_s1 + $0x2d8] sm:$0xff]  }
  0x1a   :  { %1649 = vmatprep.subr.bf16.mxu1 %v1817_v28  ;;  %v1861_v28 = vld [vmem:[%s2369_s1 + $0x2b8] sm:$0xff]   ;;  %v1878_v45 = vld [vmem:[%s2369_s1 + $0x250] sm:$0xff]   ;;  %v1905_v17 = vld [vmem:[%s2369_s1 + $0x3a0] sm:$0xff]  }
  0x1b   :  { %v1879_v48 = vld [vmem:[%s2369_s1 + $0x2d0] sm:$0xff]  }
  0x1c   :  { %1628 = vmatpush3.bf16.msra.mxu0 %v1818_v31  ;;  %v1864_v31 = vld [vmem:[%s2369_s1 + $0x230] sm:$0xff]  }
  0x1d   :  { %1650 = vmatpush3.bf16.msra.mxu1 %v1819_v32  ;;  %1629 = vmatprep.subr.bf16.mxu0 %v1820_v33  ;;  %v1866_v32 = vld [vmem:[%s2369_s1 + $0x268] sm:$0xff]   ;;  %v1865_v33 = vld [vmem:[%s2369_s1 + $0x2b0] sm:$0xff]  }
  0x1e   :  { %1651 = vmatprep.subr.bf16.mxu1 %v1821_v34  ;;  %v1867_v34 = vld [vmem:[%s2369_s1 + $0x2e8] sm:$0xff]   ;;  %v1881_v51 = vld [vmem:[%s2369_s1 + $0x290] sm:$0xff]  }
  0x20   :  { %1630 = vmatpush3.bf16.msra.mxu0 %v1822_v36  ;;  %v1868_v36 = vld [vmem:[%s2369_s1 + $0x228] sm:$0xff]  }
  0x21   :  { %1652 = vmatpush3.bf16.msra.mxu1 %v1823_v37  ;;  %1659 = vmatprep.subr.bf16.mxu0 %v1826_v41  ;;  %v1870_v37 = vld [vmem:[%s2369_s1 + $0x260] sm:$0xff]   ;;  %v1874_v41 = vld [vmem:[%s2369_s1 + $0x258] sm:$0xff]  }
  0x22   :  { %1681 = vmatprep.subr.bf16.mxu1 %v1827_v42  ;;  %v1873_v42 = vld [vmem:[%s2369_s1 + $0x2a0] sm:$0xff]  }
  0x23   :  { %1187 = vmatmul.mubr.bf16.vlgmr.msra.gmra.mxu0 %v295_v44  ;;  %v1876_v44 = vld [vmem:[%s2369_s1 + $0x218] sm:$0xff]  }
  0x24   :  { %1660 = vmatpush3.bf16.msra.mxu0 %v1828_v47  ;;  %1227 = vmatmul.mubr.bf16.vlgmr.msra.gmra.mxu1 %v317_v49  ;;  %v1877_v47 = vld [vmem:[%s2369_s1 + $0x298] sm:$0xff]   ;;  %v1880_v49 = vld [vmem:[%s2369_s1 + $0x210] sm:$0xff]  }
  0x25   :  { %1661 = vmatprep.subr.bf16.mxu0 %v1830_v50  ;;  %1682 = vmatpush3.bf16.msra.mxu1 %v1829_v52  ;;  %v1882_v50 = vld [vmem:[%s2369_s1 + $0x248] sm:$0xff]   ;;  %v2240_v52 = vrot.slane %v321_v46, %v2032_v35 }
  0x26   :  { %1266 = vmatprep.mubr.bf16.mxu0 %v316_v53  ;;  %1683 = vmatprep.subr.bf16.mxu1 %v1831_v54  ;;  %v1883_v53 = vld [vmem:[%s2369_s1 + $0x2c8] sm:$0xff]  }
  0x27   :  { %1306 = vmatprep.mubr.bf16.mxu1 %v320_v56  ;;  %v1884_v54 = vld [vmem:[%s2369_s1 + $0x208] sm:$0xff]  }
  0x28   :  { %1662 = vmatpush3.bf16.msra.mxu0 %v1832_v55  ;;  %v1886_v55 = vld [vmem:[%s2369_s1 + $0x240] sm:$0xff]   ;;  %v1885_v56 = vld [vmem:[%s2369_s1 + $0x288] sm:$0xff]  }
  0x29   :  { %1663 = vmatprep.subr.bf16.mxu0 %v1834_v57  ;;  %1684 = vmatpush3.bf16.msra.mxu1 %v1833_v58  ;;  %v337_v57 = vcombine.high %v2240_v52, %v2240_v52  ;;  %v1887_v58 = vld [vmem:[%s2369_s1 + $0x2c0] sm:$0xff]  }
  0x2a   :  { %1685 = vmatprep.subr.bf16.mxu1 %v1835_v59  ;;  %v1888_v59 = vld [vmem:[%s2369_s1 + $0x200] sm:$0xff]  }
  0x2c   :  { %1664 = vmatpush3.bf16.msra.mxu0 %v1836_v60  ;;  %v344_v60 = vrot.slane %v2134_v12, %v2032_v35  ;;  %v1902_v12 = vld [vmem:[%s2369_s1 + $0x360] sm:$0xff]  }
  0x2d   :  { %1665 = vmatprep.subr.bf16.mxu0 %v1838_v61  ;;  %1686 = vmatpush3.bf16.msra.mxu1 %v1837_v62  ;;  %v1890_v61 = vld [vmem:[%s2369_s1 + $0x378] sm:$0xff]   ;;  %v1889_v62 = vld [vmem:[%s2369_s1 + $0x280] sm:$0xff]  }
  0x2e   :  { %1687 = vmatprep.subr.bf16.mxu1 %v1839_v63  ;;  %v365_v63 = vrot.slane %v337_v57, %v2032_v35 }
  0x30   :  { %1666 = vmatpush3.bf16.msra.mxu0 %v1840_v0  ;;  %v1891_v0 = vld [vmem:[%s2369_s1 + $0x3f8] sm:$0xff]   ;;  %v369_v5 = vcombine.high %v365_v63, %v365_v63 }
  0x31   :  { %1667 = vmatprep.subr.bf16.mxu0 %v1842_v1  ;;  %1688 = vmatpush3.bf16.msra.mxu1 %v1841_v2  ;;  %v1892_v1 = vld [vmem:[%s2369_s1 + $0x338] sm:$0xff]   ;;  %v366_v2 = vcombine.high %v344_v60, %v344_v60 }
  0x32   :  { %1689 = vmatprep.subr.bf16.mxu1 %v1843_v3  ;;  %v1894_v3 = vld [vmem:[%s2369_s1 + $0x370] sm:$0xff]  }
  0x34   :  { %1668 = vmatpush3.bf16.msra.mxu0 %v1844_v4  ;;  %v1893_v4 = vld [vmem:[%s2369_s1 + $0x3b8] sm:$0xff]  }
  0x35   :  { %1669 = vmatprep.subr.bf16.mxu0 %v1846_v6  ;;  %1690 = vmatpush3.bf16.msra.mxu1 %v1845_v7  ;;  %v1895_v6 = vld [vmem:[%s2369_s1 + $0x3f0] sm:$0xff]  }
  0x36   :  { %1691 = vmatprep.subr.bf16.mxu1 %v1847_v8  ;;  %v1896_v7 = vld [vmem:[%s2369_s1 + $0x330] sm:$0xff]   ;;  %v1898_v8 = vld [vmem:[%s2369_s1 + $0x368] sm:$0xff]  }
  0x38   :  { %1670 = vmatpush3.bf16.msra.mxu0 %v1848_v9  ;;  %v1897_v9 = vld [vmem:[%s2369_s1 + $0x3b0] sm:$0xff]  }
  0x39   :  { %1671 = vmatprep.subr.bf16.mxu0 %v1850_v10  ;;  %1692 = vmatpush3.bf16.msra.mxu1 %v1849_v11  ;;  %v1899_v10 = vld [vmem:[%s2369_s1 + $0x3e8] sm:$0xff]  }
  0x3a   :  { %1693 = vmatprep.subr.bf16.mxu1 %v1851_v13  ;;  %v1900_v11 = vld [vmem:[%s2369_s1 + $0x328] sm:$0xff]  }
  0x3b   :  { %v1901_v13 = vld [vmem:[%s2369_s1 + $0x3a8] sm:$0xff]  }
  0x3c   :  { %1672 = vmatpush3.bf16.msra.mxu0 %v1852_v14  ;;  %v1903_v14 = vld [vmem:[%s2369_s1 + $0x3e0] sm:$0xff]  }
  0x3d   :  { %1673 = vmatprep.subr.bf16.mxu0 %v1854_v15  ;;  %1694 = vmatpush3.bf16.msra.mxu1 %v1853_v16  ;;  %v1904_v15 = vld [vmem:[%s2369_s1 + $0x320] sm:$0xff]   ;;  %v1906_v16 = vld [vmem:[%s2369_s1 + $0x358] sm:$0xff]  }
  0x3e   :  { %1695 = vmatprep.subr.bf16.mxu1 %v1855_v18  ;;  %v1907_v18 = vld [vmem:[%s2369_s1 + $0x3d8] sm:$0xff]  }
  0x40   :  { %1674 = vmatpush3.bf16.msra.mxu0 %v1856_v19  ;;  %v1908_v19 = vld [vmem:[%s2369_s1 + $0x318] sm:$0xff]  }
  0x41   :  { %1703 = vmatprep.subr.bf16.mxu0 %v1858_v21  ;;  %1696 = vmatpush3.bf16.msra.mxu1 %v1857_v22  ;;  %v1909_v21 = vld [vmem:[%s2369_s1 + $0x398] sm:$0xff]   ;;  %v1911_v22 = vld [vmem:[%s2369_s1 + $0x3d0] sm:$0xff]  }
  0x42   :  { %1725 = vmatprep.subr.bf16.mxu1 %v1859_v24  ;;  %v1914_v24 = vld [vmem:[%s2369_s1 + $0x348] sm:$0xff]  }
  0x43   :  { %1267 = vmatmul.mubr.bf16.vlgmr.msra.gmra.mxu0 %v302_v20  ;;  %v1910_v20 = vld [vmem:[%s2369_s1 + $0x350] sm:$0xff]  }
  0x44   :  { %1704 = vmatpush3.bf16.msra.mxu0 %v1860_v25  ;;  %1346 = vmatprep.mubr.bf16.mxu0 %v358_v23  ;;  %v1912_v23 = vld [vmem:[%s2369_s1 + $0x310] sm:$0xff]  }
  0x45   :  { %1307 = vmatmul.mubr.bf16.vlgmr.msra.gmra.mxu1 %v318_v26  ;;  %1705 = vmatprep.subr.bf16.mxu0 %v1862_v27  ;;  %v1913_v25 = vld [vmem:[%s2369_s1 + $0x390] sm:$0xff]   ;;  %v1915_v26 = vld [vmem:[%s2369_s1 + $0x3c8] sm:$0xff]  }
  0x46   :  { %1726 = vmatpush3.bf16.msra.mxu1 %v1861_v28  ;;  %1386 = vmatprep.mubr.bf16.mxu1 %v368_v29  ;;  %v1916_v27 = vld [vmem:[%s2369_s1 + $0x308] sm:$0xff]   ;;  %v1918_v28 = vld [vmem:[%s2369_s1 + $0x340] sm:$0xff]  }
  0x47   :  { %1727 = vmatprep.subr.bf16.mxu1 %v1863_v30  ;;  %v1917_v29 = vld [vmem:[%s2369_s1 + $0x388] sm:$0xff]   ;;  %v1919_v30 = vld [vmem:[%s2369_s1 + $0x3c0] sm:$0xff]  }
  0x48   :  { %1706 = vmatpush3.bf16.msra.mxu0 %v1864_v31  ;;  %v1920_v31 = vld [vmem:[%s2369_s1 + $0x300] sm:$0xff]  }
  0x49   :  { %1707 = vmatprep.subr.bf16.mxu0 %v1866_v32  ;;  %v351_v32 = vrot.slane %v2240_v52, %v2032_v35 }
  0x4a   :  { %1728 = vmatpush3.bf16.msra.mxu1 %v1865_v33  ;;  %v1921_v33 = vld [vmem:[%s2369_s1 + $0x380] sm:$0xff]  }
  0x4b   :  { %1729 = vmatprep.subr.bf16.mxu1 %v1867_v34  ;;  %v367_v34 = vcombine.high %v351_v32, %v351_v32 }
  0x4c   :  { %1708 = vmatpush3.bf16.msra.mxu0 %v1868_v36 }
  0x4d   :  { %1709 = vmatprep.subr.bf16.mxu0 %v1870_v37 }
  0x4e   :  { %1730 = vmatpush3.bf16.msra.mxu1 %v1869_v38 }
  0x4f   :  { %1731 = vmatprep.subr.bf16.mxu1 %v1871_v39 }
  0x50   :  { %1710 = vmatpush3.bf16.msra.mxu0 %v1872_v40 }
  0x51   :  { %1711 = vmatprep.subr.bf16.mxu0 %v1874_v41 }
  0x52   :  { %1732 = vmatpush3.bf16.msra.mxu1 %v1873_v42 }
  0x53   :  { %1733 = vmatprep.subr.bf16.mxu1 %v1875_v43 }
  0x54   :  { %1712 = vmatpush3.bf16.msra.mxu0 %v1876_v44 }
  0x55   :  { %1713 = vmatprep.subr.bf16.mxu0 %v1878_v45 }
  0x56   :  { %1734 = vmatpush3.bf16.msra.mxu1 %v1877_v47 }
  0x57   :  { %1735 = vmatprep.subr.bf16.mxu1 %v1879_v48 }
  0x58   :  { %1714 = vmatpush3.bf16.msra.mxu0 %v1880_v49 }
  0x59   :  { %1715 = vmatprep.subr.bf16.mxu0 %v1882_v50 }
  0x5a   :  { %1736 = vmatpush3.bf16.msra.mxu1 %v1881_v51 }
  0x5b   :  { %1737 = vmatprep.subr.bf16.mxu1 %v1883_v53 }
  0x5c   :  { %1716 = vmatpush3.bf16.msra.mxu0 %v1884_v54 }
  0x5d   :  { %1717 = vmatprep.subr.bf16.mxu0 %v1886_v55 }
  0x5e   :  { %1738 = vmatpush3.bf16.msra.mxu1 %v1885_v56 }
  0x5f   :  { %1739 = vmatprep.subr.bf16.mxu1 %v1887_v58 }
  0x60   :  { %1718 = vmatpush3.bf16.msra.mxu0 %v1888_v59 }
  0x61   :  { %1747 = vmatprep.subr.bf16.mxu0 %v1890_v61 }
  0x62   :  { %1740 = vmatpush3.bf16.msra.mxu1 %v1889_v62 }
  0x63   :  { %1347 = vmatmul.mubr.bf16.vlgmr.msra.gmra.mxu0 %v344_v60  ;;  %1769 = vmatprep.subr.bf16.mxu1 %v1891_v0 }
  0x64   :  { %1748 = vmatpush3.bf16.msra.mxu0 %v1892_v1  ;;  %1426 = vmatprep.mubr.bf16.mxu0 %v365_v63 }
  0x65   :  { %1387 = vmatmul.mubr.bf16.vlgmr.msra.gmra.mxu1 %v366_v2  ;;  %1749 = vmatprep.subr.bf16.mxu0 %v1894_v3 }
  0x66   :  { %1770 = vmatpush3.bf16.msra.mxu1 %v1893_v4  ;;  %1466 = vmatprep.mubr.bf16.mxu1 %v369_v5 }
  0x67   :  { %1771 = vmatprep.subr.bf16.mxu1 %v1895_v6 }
  0x68   :  { %1750 = vmatpush3.bf16.msra.mxu0 %v1896_v7 }
  0x69   :  { %1751 = vmatprep.subr.bf16.mxu0 %v1898_v8 }
  0x6a   :  { %1772 = vmatpush3.bf16.msra.mxu1 %v1897_v9 }
  0x6b   :  { %1773 = vmatprep.subr.bf16.mxu1 %v1899_v10 }
  0x6c   :  { %1752 = vmatpush3.bf16.msra.mxu0 %v1900_v11 }
  0x6d   :  { %1753 = vmatprep.subr.bf16.mxu0 %v1902_v12 }
  0x6e   :  { %1774 = vmatpush3.bf16.msra.mxu1 %v1901_v13 }
  0x6f   :  { %1775 = vmatprep.subr.bf16.mxu1 %v1903_v14 }
  0x70   :  { %1754 = vmatpush3.bf16.msra.mxu0 %v1904_v15 }
  0x71   :  { %1755 = vmatprep.subr.bf16.mxu0 %v1906_v16 }
  0x72   :  { %1776 = vmatpush3.bf16.msra.mxu1 %v1905_v17 }
  0x73   :  { %1777 = vmatprep.subr.bf16.mxu1 %v1907_v18 }
  0x74   :  { %1756 = vmatpush3.bf16.msra.mxu0 %v1908_v19 }
  0x75   :  { %1757 = vmatprep.subr.bf16.mxu0 %v1910_v20 }
  0x76   :  { %1778 = vmatpush3.bf16.msra.mxu1 %v1909_v21 }
  0x77   :  { %1779 = vmatprep.subr.bf16.mxu1 %v1911_v22 }
  0x78   :  { %1758 = vmatpush3.bf16.msra.mxu0 %v1912_v23 }
  0x79   :  { %1759 = vmatprep.subr.bf16.mxu0 %v1914_v24 }
  0x7a   :  { %1780 = vmatpush3.bf16.msra.mxu1 %v1913_v25 }
  0x7b   :  { %1781 = vmatprep.subr.bf16.mxu1 %v1915_v26 }
  0x7c   :  { %1760 = vmatpush3.bf16.msra.mxu0 %v1916_v27 }
  0x7d   :  { %1761 = vmatprep.subr.bf16.mxu0 %v1918_v28 }
  0x7e   :  { %1782 = vmatpush3.bf16.msra.mxu1 %v1917_v29 }
  0x7f   :  { %1783 = vmatprep.subr.bf16.mxu1 %v1919_v30 }
  0x80   :  { %1762 = vmatpush3.bf16.msra.mxu0 %v1920_v31 }
  0x82   :  { %1784 = vmatpush3.bf16.msra.mxu1 %v1921_v33 }
  0x83   :  { %1427 = vmatmul.mubr.bf16.vlgmr.msra.gmra.mxu0 %v351_v32 }
  0x85   :  { %1467 = vmatmul.mubr.bf16.vlgmr.msra.gmra.mxu1 %v367_v34 }
  0xe3   :  { %v1631_v36 = vpop.f32.mrf.mxu0 }
  0xe4   :  { %v1653_v37 = vpop.f32.mrf.mxu1 }
  0xe5   :  { %v1632_v38 = vpop.f32.mrf.mxu0 }
  0xe6   :  { %v1633_v39 = vadd.f32 %v1632_v38, %v1631_v36  ;;  %v1654_v40 = vpop.f32.mrf.mxu1 }
  0xe7   :  { %v1634_v41 = vpop.f32.mrf.mxu0  ;;  %v1655_v42 = vadd.f32 %v1654_v40, %v1653_v37 }
  0xe8   :  { %v1656_v43 = vpop.f32.mrf.mxu1 }
  0xe9   :  { %v1635_v35 = vpop.f32.mrf.mxu0  ;;  %v1229_v44 = vadd.f32 %v1655_v42, %v1633_v39 }
  0xea   :  { %v1657_v45 = vpop.f32.mrf.mxu1 }
 0x103   :  { %v1675_v46 = vpop.f32.mrf.mxu0 }
 0x105   :  { %v1697_v47 = vpop.f32.mrf.mxu1  ;;  %v1676_v48 = vpop.f32.mrf.mxu0 }
 0x106   :  { %v1677_v62 = vadd.f32 %v1676_v48, %v1675_v46 }
 0x107   :  { %v1698_v49 = vpop.f32.mrf.mxu1  ;;  %v1678_v50 = vpop.f32.mrf.mxu0 }
 0x108   :  { %v1269_v63 = vadd.f32 %v1677_v62, %v1229_v44  ;;  %v1699_v0 = vadd.f32 %v1698_v49, %v1697_v47 }
 0x109   :  { %v1700_v51 = vpop.f32.mrf.mxu1  ;;  %v1679_v52 = vpop.f32.mrf.mxu0 }
 0x10a   :  { %v1309_v2 = vadd.f32 %v1699_v0, %v1269_v63 }
 0x10b   :  { %v1701_v53 = vpop.f32.mrf.mxu1 }
 0x123   :  { %v1719_v54 = vpop.f32.mrf.mxu0 }
 0x125   :  { %v1741_v55 = vpop.f32.mrf.mxu1  ;;  %v1720_v56 = vpop.f32.mrf.mxu0 }
 0x126   :  { %v1721_v1 = vadd.f32 %v1720_v56, %v1719_v54 }
 0x127   :  { %v1742_v57 = vpop.f32.mrf.mxu1  ;;  %v1722_v58 = vpop.f32.mrf.mxu0 }
 0x128   :  { %v1349_v3 = vadd.f32 %v1721_v1, %v1309_v2  ;;  %v1743_v4 = vadd.f32 %v1742_v57, %v1741_v55 }
 0x129   :  { %v1744_v59 = vpop.f32.mrf.mxu1  ;;  %v1723_v60 = vpop.f32.mrf.mxu0 }
 0x12a   :  { %v1389_v8 = vadd.f32 %v1743_v4, %v1349_v3 }
 0x12b   :  { %v1745_v61 = vpop.f32.mrf.mxu1 }
 0x143   :  { %v1763_v5 = vpop.f32.mrf.mxu0 }
 0x145   :  { %v1785_v6 = vpop.f32.mrf.mxu1  ;;  %v1764_v7 = vpop.f32.mrf.mxu0 }
 0x146   :  { %v1765_v9 = vadd.f32 %v1764_v7, %v1763_v5 }
 0x147   :  { %v1786_v10 = vpop.f32.mrf.mxu1  ;;  %v1766_v11 = vpop.f32.mrf.mxu0 }
 0x148   :  { %v1429_v12 = vadd.f32 %v1765_v9, %v1389_v8  ;;  %v1787_v13 = vadd.f32 %v1786_v10, %v1785_v6 }
 0x149   :  { %v1788_v14 = vpop.f32.mrf.mxu1  ;;  %v1767_v15 = vpop.f32.mrf.mxu0 }
 0x14a   :  { %v1469_v16 = vadd.f32 %v1787_v13, %v1429_v12 }
 0x14b   :  { %v1789_v17 = vpop.f32.mrf.mxu1 }
 0x14c   :  { %v1614_v18 = vmul.f32 -1.442695, %v1469_v16 }
 0x14e   :  { %1922 = vpow2.f32 %v1614_v18 }
 0x15b   :  { %v1923_v19 = vpop.eup %1922 }
 0x15c   :  { %v1477_v20 = vadd.f32 1.0, %v1923_v19 }
 0x15e   :  { %1924 = vrcp.f32 %v1477_v20 }
 0x16b   :  { %v1925_v21 = vpop.eup %1924 }
 0x16c   :  { %1481 = vst.msk [vmem:[%s2371_s2] sm:$0x3] %vm1480_vm0, %v1925_v21 }

</bundles_post_ra>
